<compile_context>
chip_gen: v5e
topology: v5e:2x2
jax: 0.10.0
libtpu: 0.0.40
codegen_flags: <defaults>
</compile_context>

<pallas_src>
import jax
import jax.numpy as jnp
import numpy as np
from jax.experimental import pallas as pl
from jax.experimental.pallas import tpu as pltpu


# ----------------------------- Pallas kernel ------------------------------- #
def _encoder_gru_kernel(tok_ref,   # VMEM (S, 1) int32 -- token ids
                        emb_ref,   # VMEM (V, H) bf16  -- embedding table (resident)
                        h0_ref,    # VMEM (1, H) f32   -- initial hidden
                        wx_ref,    # VMEM (H, 3H) bf16 -- W_ih^T, cols [r|z|n]
                        wh_ref,    # VMEM (H, 3H) bf16 -- W_hh^T, cols [r|z|n]
                        bx_ref,    # VMEM (1, 3H) f32  -- b_ih
                        bh_ref,    # VMEM (1, 3H) f32  -- b_hh
                        out_ref):  # VMEM (S, H) f32   -- per-step outputs
    S = out_ref.shape[0]
    V, H = emb_ref.shape

    # ---- Embedding gather as a one-hot MXU matmul (exact row selection) ---- #
    ids = tok_ref[...]                                            # (S, 1) int32
    iota = jax.lax.broadcasted_iota(jnp.int32, (S, V), 1)         # (S, V)
    onehot = (ids == iota).astype(jnp.bfloat16)                   # (S, V)
    x = jnp.dot(onehot, emb_ref[...],
                preferred_element_type=jnp.float32)               # (S, H) f32 (== bf16 rows)

    # ---- Hoisted input-to-hidden matmul: off the serial critical path ------ #
    gx = jnp.dot(x.astype(jnp.bfloat16), wx_ref[...],
                 preferred_element_type=jnp.float32) + bx_ref[...]  # (S, 3H) f32

    # ---- Serial GRU recurrence (unrolled; S is small and static) ----------- #
    # TODO(synk): for long sequences switch to lax.fori_loop with per-tile stores.
    h = h0_ref[...]                                               # (1, H) f32
    wh = wh_ref[...]                                              # (H, 3H) bf16
    bh = bh_ref[...]                                              # (1, 3H) f32
    rows = []
    for s in range(S):
        gh = jnp.dot(h.astype(jnp.bfloat16), wh,
                     preferred_element_type=jnp.float32) + bh     # (1, 3H)
        gx_s = gx[s:s + 1, :]                                     # (1, 3H) static slice
        rz = jax.nn.sigmoid(gx_s[:, :2 * H] + gh[:, :2 * H])      # fused r|z sigmoid
        r = rz[:, :H]
        z = rz[:, H:2 * H]
        n = jnp.tanh(gx_s[:, 2 * H:] + r * gh[:, 2 * H:])
        h = (1.0 - z) * n + z * h                                 # (1, H) f32
        rows.append(h)

    # One full unmasked (S, H) store (no per-step masked single-row stores).
    out_ref[...] = jnp.concatenate(rows, axis=0)


# ------------------------------ JAX wrapper -------------------------------- #
def pack_params(torch_params):
    """Build kernel params from PyTorch-layout GRU/Embedding params."""
    emb = torch_params["embedding"]            # (V, H)  f32
    w_ih = torch_params["w_ih"]                # (3H, H) gate order [r|z|n]
    w_hh = torch_params["w_hh"]                # (3H, H)
    b_ih = torch_params["b_ih"]                # (3H,)
    b_hh = torch_params["b_hh"]                # (3H,)
    H = emb.shape[1]
    return {
        "embedding": emb.astype(jnp.bfloat16),
        "wx": w_ih.T.astype(jnp.bfloat16),     # (H, 3H)
        "wh": w_hh.T.astype(jnp.bfloat16),     # (H, 3H)
        "bx": b_ih.reshape(1, 3 * H).astype(jnp.float32),
        "bh": b_hh.reshape(1, 3 * H).astype(jnp.float32),
    }


def encoder_rnn_forward(tokens, hidden, packed):
    """Runs the EncoderRNN over a whole token sequence in one pallas_call.

    tokens: int32 (seq_len,)
    hidden: f32   (1, 1, H)  initial hidden
    returns (outputs (seq_len, 1, H), final_hidden (1, 1, H)).
    For seq_len == 1 this matches EncoderRNN.forward(input, hidden) exactly.
    """
    emb = packed["embedding"]                  # (V, H)  bf16
    wx, wh = packed["wx"], packed["wh"]        # (H, 3H) bf16
    bx, bh = packed["bx"], packed["bh"]        # (1, 3H) f32
    V, H = emb.shape
    S = tokens.shape[0]
    h0 = hidden.reshape(1, H).astype(jnp.float32)
    tok2d = tokens.astype(jnp.int32).reshape(S, 1)

    vmem = pltpu.MemorySpace.VMEM
    outs = pl.pallas_call(
        _encoder_gru_kernel,
        out_shape=jax.ShapeDtypeStruct((S, H), jnp.float32),
        in_specs=[pl.BlockSpec(memory_space=vmem)] * 7,   # all inputs VMEM-resident
        out_specs=pl.BlockSpec(memory_space=vmem),
        compiler_params=pltpu.CompilerParams(
            vmem_limit_bytes=32 * 1024 * 1024),           # headroom if H is scaled up
    )(tok2d, emb, h0, wx, wh, bx, bh)

    outputs = outs.reshape(S, 1, H)            # (seq, batch=1, H)
    new_hidden = outs[S - 1].reshape(1, 1, H)  # GRU output == hidden
    return outputs, new_hidden


# --------------------------- Parameter creation ----------------------------- #
def init_torch_params(key, input_size, hidden_size):
    """PyTorch-layout parameters: weight_ih/hh_l0 (3H, H), bias_ih/hh_l0 (3H,)."""
    k_emb, k_wi, k_wh, k_bi, k_bh = jax.random.split(key, 5)
    bound = 1.0 / np.sqrt(hidden_size)
    return {
        "embedding": jax.random.normal(k_emb, (input_size, hidden_size), jnp.float32),
        "w_ih": jax.random.uniform(k_wi, (3 * hidden_size, hidden_size),
                                   jnp.float32, -bound, bound),
        "w_hh": jax.random.uniform(k_wh, (3 * hidden_size, hidden_size),
                                   jnp.float32, -bound, bound),
        "b_ih": jax.random.uniform(k_bi, (3 * hidden_size,), jnp.float32, -bound, bound),
        "b_hh": jax.random.uniform(k_bh, (3 * hidden_size,), jnp.float32, -bound, bound),
    }


# ----------------------------- Pure-JAX reference --------------------------- #
def reference_forward(tokens, hidden, torch_params):
    """Standard PyTorch GRU equations, matching the kernel's bf16-weight numerics."""
    emb = torch_params["embedding"].astype(jnp.bfloat16)
    w_ih_t = torch_params["w_ih"].T.astype(jnp.bfloat16)
    w_hh_t = torch_params["w_hh"].T.astype(jnp.bfloat16)
    b_ih = torch_params["b_ih"]
    b_hh = torch_params["b_hh"]
    H = hidden.shape[-1]
    h = hidden.reshape(1, H).astype(jnp.float32)

    outs = []
    for t in range(int(tokens.shape[0])):
        x = emb[tokens[t]].reshape(1, H)
        gi = jnp.dot(x, w_ih_t, preferred_element_type=jnp.float32) + b_ih
        gh = jnp.dot(h.astype(jnp.bfloat16), w_hh_t,
                     preferred_element_type=jnp.float32) + b_hh
        r = jax.nn.sigmoid(gi[:, :H] + gh[:, :H])
        z = jax.nn.sigmoid(gi[:, H:2 * H] + gh[:, H:2 * H])
        n = jnp.tanh(gi[:, 2 * H:] + r * gh[:, 2 * H:])
        h = (1.0 - z) * n + z * h
        outs.append(h)
    return jnp.stack(outs, axis=0).reshape(-1, 1, H), h.reshape(1, 1, H)


if __name__ == "__main__":
    input_size = 32       # small vocab
    hidden_size = 256     # module default (lane-aligned)
    seq_len = 8

    key = jax.random.PRNGKey(0)
    k_param, k_tok, k_hid = jax.random.split(key, 3)
    torch_params = init_torch_params(k_param, input_size, hidden_size)
    packed = pack_params(torch_params)

    # ---- Full-sequence encode (fused kernel), zero init hidden -------------- #
    tokens = jax.random.randint(k_tok, (seq_len,), 0, input_size, dtype=jnp.int32)
    hidden0 = jnp.zeros((1, 1, hidden_size), jnp.float32)     # initHidden()

    out, new_hidden = encoder_rnn_forward(tokens, hidden0, packed)
    out = jax.block_until_ready(out)
    new_hidden = jax.block_until_ready(new_hidden)

    ref_out, ref_hidden = reference_forward(tokens, hidden0, torch_params)
    assert out.shape == (seq_len, 1, hidden_size)
    assert new_hidden.shape == (1, 1, hidden_size)
    np.testing.assert_allclose(np.asarray(out), np.asarray(ref_out),
                               rtol=2e-2, atol=2e-2)
    np.testing.assert_allclose(np.asarray(new_hidden), np.asarray(ref_hidden),
                               rtol=2e-2, atol=2e-2)

    # ---- Single-token call (exact original module signature) ---------------- #
    tok1 = tokens[:1]
    hid1 = 0.1 * jax.random.normal(k_hid, (1, 1, hidden_size), jnp.float32)
    out1, hid1_new = encoder_rnn_forward(tok1, hid1, packed)
    out1 = jax.block_until_ready(out1)
    ref_out1, ref_hid1 = reference_forward(tok1, hid1, torch_params)
    np.testing.assert_allclose(np.asarray(out1), np.asarray(ref_out1),
                               rtol=2e-2, atol=2e-2)
    np.testing.assert_allclose(np.asarray(hid1_new), np.asarray(ref_hid1),
                               rtol=2e-2, atol=2e-2)

    print("KERNEL_OK")
</pallas_src>

<mosaic_0001>
module attributes {stable_mosaic.version = 11 : i64} {
  func.func @_encoder_gru_kernel(%arg0: memref<8x1xi32, #tpu.memory_space<vmem>>, %arg1: memref<32x256xbf16, #tpu.memory_space<vmem>>, %arg2: memref<1x256xf32, #tpu.memory_space<vmem>>, %arg3: memref<256x768xbf16, #tpu.memory_space<vmem>>, %arg4: memref<256x768xbf16, #tpu.memory_space<vmem>>, %arg5: memref<1x768xf32, #tpu.memory_space<vmem>>, %arg6: memref<1x768xf32, #tpu.memory_space<vmem>>, %arg7: memref<8x256xf32, #tpu.memory_space<vmem>>) attributes {dimension_semantics = [], scalar_prefetch = 0 : i64, scratch_operands = 0 : i64, tpu.core_type = #tpu.core_type<tc>} {
    %c0 = arith.constant 0 : index
    %c0_0 = arith.constant 0 : index
    %0 = vector.load %arg0[%c0, %c0_0] : memref<8x1xi32, #tpu.memory_space<vmem>>, vector<8x1xi32>
    %1 = tpu.iota {dimensions = array<i32: 1>} : vector<8x32xi32>
    %2 = vector.broadcast %0 : vector<8x1xi32> to vector<8x32xi32>
    %3 = arith.cmpi eq, %2, %1 : vector<8x32xi32>
    %4 = arith.extui %3 : vector<8x32xi1> to vector<8x32xi32>
    %5 = arith.sitofp %4 : vector<8x32xi32> to vector<8x32xf32>
    %6 = arith.truncf %5 : vector<8x32xf32> to vector<8x32xbf16>
    %c0_1 = arith.constant 0 : index
    %c0_2 = arith.constant 0 : index
    %7 = vector.load %arg1[%c0_1, %c0_2] : memref<32x256xbf16, #tpu.memory_space<vmem>>, vector<32x256xbf16>
    %cst = arith.constant dense<0.000000e+00> : vector<8x256xf32>
    %8 = tpu.matmul %6, %7, %cst {dimension_numbers = #tpu.dot_dimension_numbers<[1], [0], [0], [1], [0, 0, 1, 1], [], []>} : vector<8x32xbf16>, vector<32x256xbf16>, vector<8x256xf32> -> vector<8x256xf32>
    %9 = arith.truncf %8 : vector<8x256xf32> to vector<8x256xbf16>
    %c0_3 = arith.constant 0 : index
    %c0_4 = arith.constant 0 : index
    %10 = vector.load %arg3[%c0_3, %c0_4] : memref<256x768xbf16, #tpu.memory_space<vmem>>, vector<256x768xbf16>
    %cst_5 = arith.constant dense<0.000000e+00> : vector<8x768xf32>
    %11 = tpu.matmul %9, %10, %cst_5 {dimension_numbers = #tpu.dot_dimension_numbers<[1], [0], [0], [1], [0, 0, 1, 1], [], []>} : vector<8x256xbf16>, vector<256x768xbf16>, vector<8x768xf32> -> vector<8x768xf32>
    %c0_6 = arith.constant 0 : index
    %c0_7 = arith.constant 0 : index
    %12 = vector.load %arg5[%c0_6, %c0_7] : memref<1x768xf32, #tpu.memory_space<vmem>>, vector<1x768xf32>
    %13 = vector.broadcast %12 : vector<1x768xf32> to vector<8x768xf32>
    %14 = arith.addf %11, %13 : vector<8x768xf32>
    %c0_8 = arith.constant 0 : index
    %c0_9 = arith.constant 0 : index
    %15 = vector.load %arg2[%c0_8, %c0_9] : memref<1x256xf32, #tpu.memory_space<vmem>>, vector<1x256xf32>
    %c0_10 = arith.constant 0 : index
    %c0_11 = arith.constant 0 : index
    %16 = vector.load %arg4[%c0_10, %c0_11] : memref<256x768xbf16, #tpu.memory_space<vmem>>, vector<256x768xbf16>
    %c0_12 = arith.constant 0 : index
    %c0_13 = arith.constant 0 : index
    %17 = vector.load %arg6[%c0_12, %c0_13] : memref<1x768xf32, #tpu.memory_space<vmem>>, vector<1x768xf32>
    %18 = arith.truncf %15 : vector<1x256xf32> to vector<1x256xbf16>
    %cst_14 = arith.constant dense<0.000000e+00> : vector<1x768xf32>
    %19 = tpu.matmul %18, %16, %cst_14 {dimension_numbers = #tpu.dot_dimension_numbers<[1], [0], [0], [1], [0, 0, 1, 1], [], []>} : vector<1x256xbf16>, vector<256x768xbf16>, vector<1x768xf32> -> vector<1x768xf32>
    %20 = arith.addf %19, %17 : vector<1x768xf32>
    %21 = vector.extract_strided_slice %14 {offsets = [0, 0], sizes = [1, 768], strides = [1, 1]} : vector<8x768xf32> to vector<1x768xf32>
    %22 = vector.extract_strided_slice %21 {offsets = [0, 0], sizes = [1, 512], strides = [1, 1]} : vector<1x768xf32> to vector<1x512xf32>
    %23 = vector.extract_strided_slice %20 {offsets = [0, 0], sizes = [1, 512], strides = [1, 1]} : vector<1x768xf32> to vector<1x512xf32>
    %24 = arith.addf %22, %23 : vector<1x512xf32>
    %25 = arith.negf %24 : vector<1x512xf32>
    %26 = math.exp %25 : vector<1x512xf32>
    %cst_15 = arith.constant 1.000000e+00 : f32
    %27 = vector.broadcast %cst_15 : f32 to vector<1x512xf32>
    %28 = arith.addf %27, %26 : vector<1x512xf32>
    %29 = arith.divf %27, %28 : vector<1x512xf32>
    %30 = vector.extract_strided_slice %29 {offsets = [0, 0], sizes = [1, 256], strides = [1, 1]} : vector<1x512xf32> to vector<1x256xf32>
    %31 = vector.extract_strided_slice %29 {offsets = [0, 256], sizes = [1, 256], strides = [1, 1]} : vector<1x512xf32> to vector<1x256xf32>
    %32 = vector.extract_strided_slice %21 {offsets = [0, 512], sizes = [1, 256], strides = [1, 1]} : vector<1x768xf32> to vector<1x256xf32>
    %33 = vector.extract_strided_slice %20 {offsets = [0, 512], sizes = [1, 256], strides = [1, 1]} : vector<1x768xf32> to vector<1x256xf32>
    %34 = arith.mulf %30, %33 : vector<1x256xf32>
    %35 = arith.addf %32, %34 : vector<1x256xf32>
    %36 = math.tanh %35 : vector<1x256xf32>
    %cst_16 = arith.constant 1.000000e+00 : f32
    %37 = vector.broadcast %cst_16 : f32 to vector<1x256xf32>
    %38 = arith.subf %37, %31 : vector<1x256xf32>
    %39 = arith.mulf %38, %36 : vector<1x256xf32>
    %40 = arith.mulf %31, %15 : vector<1x256xf32>
    %41 = arith.addf %39, %40 : vector<1x256xf32>
    %42 = arith.truncf %41 : vector<1x256xf32> to vector<1x256xbf16>
    %cst_17 = arith.constant dense<0.000000e+00> : vector<1x768xf32>
    %43 = tpu.matmul %42, %16, %cst_17 {dimension_numbers = #tpu.dot_dimension_numbers<[1], [0], [0], [1], [0, 0, 1, 1], [], []>} : vector<1x256xbf16>, vector<256x768xbf16>, vector<1x768xf32> -> vector<1x768xf32>
    %44 = arith.addf %43, %17 : vector<1x768xf32>
    %45 = vector.extract_strided_slice %14 {offsets = [1, 0], sizes = [1, 768], strides = [1, 1]} : vector<8x768xf32> to vector<1x768xf32>
    %46 = vector.extract_strided_slice %45 {offsets = [0, 0], sizes = [1, 512], strides = [1, 1]} : vector<1x768xf32> to vector<1x512xf32>
    %47 = vector.extract_strided_slice %44 {offsets = [0, 0], sizes = [1, 512], strides = [1, 1]} : vector<1x768xf32> to vector<1x512xf32>
    %48 = arith.addf %46, %47 : vector<1x512xf32>
    %49 = arith.negf %48 : vector<1x512xf32>
    %50 = math.exp %49 : vector<1x512xf32>
    %cst_18 = arith.constant 1.000000e+00 : f32
    %51 = vector.broadcast %cst_18 : f32 to vector<1x512xf32>
    %52 = arith.addf %51, %50 : vector<1x512xf32>
    %53 = arith.divf %51, %52 : vector<1x512xf32>
    %54 = vector.extract_strided_slice %53 {offsets = [0, 0], sizes = [1, 256], strides = [1, 1]} : vector<1x512xf32> to vector<1x256xf32>
    %55 = vector.extract_strided_slice %53 {offsets = [0, 256], sizes = [1, 256], strides = [1, 1]} : vector<1x512xf32> to vector<1x256xf32>
    %56 = vector.extract_strided_slice %45 {offsets = [0, 512], sizes = [1, 256], strides = [1, 1]} : vector<1x768xf32> to vector<1x256xf32>
    %57 = vector.extract_strided_slice %44 {offsets = [0, 512], sizes = [1, 256], strides = [1, 1]} : vector<1x768xf32> to vector<1x256xf32>
    %58 = arith.mulf %54, %57 : vector<1x256xf32>
    %59 = arith.addf %56, %58 : vector<1x256xf32>
    %60 = math.tanh %59 : vector<1x256xf32>
    %cst_19 = arith.constant 1.000000e+00 : f32
    %61 = vector.broadcast %cst_19 : f32 to vector<1x256xf32>
    %62 = arith.subf %61, %55 : vector<1x256xf32>
    %63 = arith.mulf %62, %60 : vector<1x256xf32>
    %64 = arith.mulf %55, %41 : vector<1x256xf32>
    %65 = arith.addf %63, %64 : vector<1x256xf32>
    %66 = arith.truncf %65 : vector<1x256xf32> to vector<1x256xbf16>
    %cst_20 = arith.constant dense<0.000000e+00> : vector<1x768xf32>
    %67 = tpu.matmul %66, %16, %cst_20 {dimension_numbers = #tpu.dot_dimension_numbers<[1], [0], [0], [1], [0, 0, 1, 1], [], []>} : vector<1x256xbf16>, vector<256x768xbf16>, vector<1x768xf32> -> vector<1x768xf32>
    %68 = arith.addf %67, %17 : vector<1x768xf32>
    %69 = vector.extract_strided_slice %14 {offsets = [2, 0], sizes = [1, 768], strides = [1, 1]} : vector<8x768xf32> to vector<1x768xf32>
    %70 = vector.extract_strided_slice %69 {offsets = [0, 0], sizes = [1, 512], strides = [1, 1]} : vector<1x768xf32> to vector<1x512xf32>
    %71 = vector.extract_strided_slice %68 {offsets = [0, 0], sizes = [1, 512], strides = [1, 1]} : vector<1x768xf32> to vector<1x512xf32>
    %72 = arith.addf %70, %71 : vector<1x512xf32>
    %73 = arith.negf %72 : vector<1x512xf32>
    %74 = math.exp %73 : vector<1x512xf32>
    %cst_21 = arith.constant 1.000000e+00 : f32
    %75 = vector.broadcast %cst_21 : f32 to vector<1x512xf32>
    %76 = arith.addf %75, %74 : vector<1x512xf32>
    %77 = arith.divf %75, %76 : vector<1x512xf32>
    %78 = vector.extract_strided_slice %77 {offsets = [0, 0], sizes = [1, 256], strides = [1, 1]} : vector<1x512xf32> to vector<1x256xf32>
    %79 = vector.extract_strided_slice %77 {offsets = [0, 256], sizes = [1, 256], strides = [1, 1]} : vector<1x512xf32> to vector<1x256xf32>
    %80 = vector.extract_strided_slice %69 {offsets = [0, 512], sizes = [1, 256], strides = [1, 1]} : vector<1x768xf32> to vector<1x256xf32>
    %81 = vector.extract_strided_slice %68 {offsets = [0, 512], sizes = [1, 256], strides = [1, 1]} : vector<1x768xf32> to vector<1x256xf32>
    %82 = arith.mulf %78, %81 : vector<1x256xf32>
    %83 = arith.addf %80, %82 : vector<1x256xf32>
    %84 = math.tanh %83 : vector<1x256xf32>
    %cst_22 = arith.constant 1.000000e+00 : f32
    %85 = vector.broadcast %cst_22 : f32 to vector<1x256xf32>
    %86 = arith.subf %85, %79 : vector<1x256xf32>
    %87 = arith.mulf %86, %84 : vector<1x256xf32>
    %88 = arith.mulf %79, %65 : vector<1x256xf32>
    %89 = arith.addf %87, %88 : vector<1x256xf32>
    %90 = arith.truncf %89 : vector<1x256xf32> to vector<1x256xbf16>
    %cst_23 = arith.constant dense<0.000000e+00> : vector<1x768xf32>
    %91 = tpu.matmul %90, %16, %cst_23 {dimension_numbers = #tpu.dot_dimension_numbers<[1], [0], [0], [1], [0, 0, 1, 1], [], []>} : vector<1x256xbf16>, vector<256x768xbf16>, vector<1x768xf32> -> vector<1x768xf32>
    %92 = arith.addf %91, %17 : vector<1x768xf32>
    %93 = vector.extract_strided_slice %14 {offsets = [3, 0], sizes = [1, 768], strides = [1, 1]} : vector<8x768xf32> to vector<1x768xf32>
    %94 = vector.extract_strided_slice %93 {offsets = [0, 0], sizes = [1, 512], strides = [1, 1]} : vector<1x768xf32> to vector<1x512xf32>
    %95 = vector.extract_strided_slice %92 {offsets = [0, 0], sizes = [1, 512], strides = [1, 1]} : vector<1x768xf32> to vector<1x512xf32>
    %96 = arith.addf %94, %95 : vector<1x512xf32>
    %97 = arith.negf %96 : vector<1x512xf32>
    %98 = math.exp %97 : vector<1x512xf32>
    %cst_24 = arith.constant 1.000000e+00 : f32
    %99 = vector.broadcast %cst_24 : f32 to vector<1x512xf32>
    %100 = arith.addf %99, %98 : vector<1x512xf32>
    %101 = arith.divf %99, %100 : vector<1x512xf32>
    %102 = vector.extract_strided_slice %101 {offsets = [0, 0], sizes = [1, 256], strides = [1, 1]} : vector<1x512xf32> to vector<1x256xf32>
    %103 = vector.extract_strided_slice %101 {offsets = [0, 256], sizes = [1, 256], strides = [1, 1]} : vector<1x512xf32> to vector<1x256xf32>
    %104 = vector.extract_strided_slice %93 {offsets = [0, 512], sizes = [1, 256], strides = [1, 1]} : vector<1x768xf32> to vector<1x256xf32>
    %105 = vector.extract_strided_slice %92 {offsets = [0, 512], sizes = [1, 256], strides = [1, 1]} : vector<1x768xf32> to vector<1x256xf32>
    %106 = arith.mulf %102, %105 : vector<1x256xf32>
    %107 = arith.addf %104, %106 : vector<1x256xf32>
    %108 = math.tanh %107 : vector<1x256xf32>
    %cst_25 = arith.constant 1.000000e+00 : f32
    %109 = vector.broadcast %cst_25 : f32 to vector<1x256xf32>
    %110 = arith.subf %109, %103 : vector<1x256xf32>
    %111 = arith.mulf %110, %108 : vector<1x256xf32>
    %112 = arith.mulf %103, %89 : vector<1x256xf32>
    %113 = arith.addf %111, %112 : vector<1x256xf32>
    %114 = arith.truncf %113 : vector<1x256xf32> to vector<1x256xbf16>
    %cst_26 = arith.constant dense<0.000000e+00> : vector<1x768xf32>
    %115 = tpu.matmul %114, %16, %cst_26 {dimension_numbers = #tpu.dot_dimension_numbers<[1], [0], [0], [1], [0, 0, 1, 1], [], []>} : vector<1x256xbf16>, vector<256x768xbf16>, vector<1x768xf32> -> vector<1x768xf32>
    %116 = arith.addf %115, %17 : vector<1x768xf32>
    %117 = vector.extract_strided_slice %14 {offsets = [4, 0], sizes = [1, 768], strides = [1, 1]} : vector<8x768xf32> to vector<1x768xf32>
    %118 = vector.extract_strided_slice %117 {offsets = [0, 0], sizes = [1, 512], strides = [1, 1]} : vector<1x768xf32> to vector<1x512xf32>
    %119 = vector.extract_strided_slice %116 {offsets = [0, 0], sizes = [1, 512], strides = [1, 1]} : vector<1x768xf32> to vector<1x512xf32>
    %120 = arith.addf %118, %119 : vector<1x512xf32>
    %121 = arith.negf %120 : vector<1x512xf32>
    %122 = math.exp %121 : vector<1x512xf32>
    %cst_27 = arith.constant 1.000000e+00 : f32
    %123 = vector.broadcast %cst_27 : f32 to vector<1x512xf32>
    %124 = arith.addf %123, %122 : vector<1x512xf32>
    %125 = arith.divf %123, %124 : vector<1x512xf32>
    %126 = vector.extract_strided_slice %125 {offsets = [0, 0], sizes = [1, 256], strides = [1, 1]} : vector<1x512xf32> to vector<1x256xf32>
    %127 = vector.extract_strided_slice %125 {offsets = [0, 256], sizes = [1, 256], strides = [1, 1]} : vector<1x512xf32> to vector<1x256xf32>
    %128 = vector.extract_strided_slice %117 {offsets = [0, 512], sizes = [1, 256], strides = [1, 1]} : vector<1x768xf32> to vector<1x256xf32>
    %129 = vector.extract_strided_slice %116 {offsets = [0, 512], sizes = [1, 256], strides = [1, 1]} : vector<1x768xf32> to vector<1x256xf32>
    %130 = arith.mulf %126, %129 : vector<1x256xf32>
    %131 = arith.addf %128, %130 : vector<1x256xf32>
    %132 = math.tanh %131 : vector<1x256xf32>
    %cst_28 = arith.constant 1.000000e+00 : f32
    %133 = vector.broadcast %cst_28 : f32 to vector<1x256xf32>
    %134 = arith.subf %133, %127 : vector<1x256xf32>
    %135 = arith.mulf %134, %132 : vector<1x256xf32>
    %136 = arith.mulf %127, %113 : vector<1x256xf32>
    %137 = arith.addf %135, %136 : vector<1x256xf32>
    %138 = arith.truncf %137 : vector<1x256xf32> to vector<1x256xbf16>
    %cst_29 = arith.constant dense<0.000000e+00> : vector<1x768xf32>
    %139 = tpu.matmul %138, %16, %cst_29 {dimension_numbers = #tpu.dot_dimension_numbers<[1], [0], [0], [1], [0, 0, 1, 1], [], []>} : vector<1x256xbf16>, vector<256x768xbf16>, vector<1x768xf32> -> vector<1x768xf32>
    %140 = arith.addf %139, %17 : vector<1x768xf32>
    %141 = vector.extract_strided_slice %14 {offsets = [5, 0], sizes = [1, 768], strides = [1, 1]} : vector<8x768xf32> to vector<1x768xf32>
    %142 = vector.extract_strided_slice %141 {offsets = [0, 0], sizes = [1, 512], strides = [1, 1]} : vector<1x768xf32> to vector<1x512xf32>
    %143 = vector.extract_strided_slice %140 {offsets = [0, 0], sizes = [1, 512], strides = [1, 1]} : vector<1x768xf32> to vector<1x512xf32>
    %144 = arith.addf %142, %143 : vector<1x512xf32>
    %145 = arith.negf %144 : vector<1x512xf32>
    %146 = math.exp %145 : vector<1x512xf32>
    %cst_30 = arith.constant 1.000000e+00 : f32
    %147 = vector.broadcast %cst_30 : f32 to vector<1x512xf32>
    %148 = arith.addf %147, %146 : vector<1x512xf32>
    %149 = arith.divf %147, %148 : vector<1x512xf32>
    %150 = vector.extract_strided_slice %149 {offsets = [0, 0], sizes = [1, 256], strides = [1, 1]} : vector<1x512xf32> to vector<1x256xf32>
    %151 = vector.extract_strided_slice %149 {offsets = [0, 256], sizes = [1, 256], strides = [1, 1]} : vector<1x512xf32> to vector<1x256xf32>
    %152 = vector.extract_strided_slice %141 {offsets = [0, 512], sizes = [1, 256], strides = [1, 1]} : vector<1x768xf32> to vector<1x256xf32>
    %153 = vector.extract_strided_slice %140 {offsets = [0, 512], sizes = [1, 256], strides = [1, 1]} : vector<1x768xf32> to vector<1x256xf32>
    %154 = arith.mulf %150, %153 : vector<1x256xf32>
    %155 = arith.addf %152, %154 : vector<1x256xf32>
    %156 = math.tanh %155 : vector<1x256xf32>
    %cst_31 = arith.constant 1.000000e+00 : f32
    %157 = vector.broadcast %cst_31 : f32 to vector<1x256xf32>
    %158 = arith.subf %157, %151 : vector<1x256xf32>
    %159 = arith.mulf %158, %156 : vector<1x256xf32>
    %160 = arith.mulf %151, %137 : vector<1x256xf32>
    %161 = arith.addf %159, %160 : vector<1x256xf32>
    %162 = arith.truncf %161 : vector<1x256xf32> to vector<1x256xbf16>
    %cst_32 = arith.constant dense<0.000000e+00> : vector<1x768xf32>
    %163 = tpu.matmul %162, %16, %cst_32 {dimension_numbers = #tpu.dot_dimension_numbers<[1], [0], [0], [1], [0, 0, 1, 1], [], []>} : vector<1x256xbf16>, vector<256x768xbf16>, vector<1x768xf32> -> vector<1x768xf32>
    %164 = arith.addf %163, %17 : vector<1x768xf32>
    %165 = vector.extract_strided_slice %14 {offsets = [6, 0], sizes = [1, 768], strides = [1, 1]} : vector<8x768xf32> to vector<1x768xf32>
    %166 = vector.extract_strided_slice %165 {offsets = [0, 0], sizes = [1, 512], strides = [1, 1]} : vector<1x768xf32> to vector<1x512xf32>
    %167 = vector.extract_strided_slice %164 {offsets = [0, 0], sizes = [1, 512], strides = [1, 1]} : vector<1x768xf32> to vector<1x512xf32>
    %168 = arith.addf %166, %167 : vector<1x512xf32>
    %169 = arith.negf %168 : vector<1x512xf32>
    %170 = math.exp %169 : vector<1x512xf32>
    %cst_33 = arith.constant 1.000000e+00 : f32
    %171 = vector.broadcast %cst_33 : f32 to vector<1x512xf32>
    %172 = arith.addf %171, %170 : vector<1x512xf32>
    %173 = arith.divf %171, %172 : vector<1x512xf32>
    %174 = vector.extract_strided_slice %173 {offsets = [0, 0], sizes = [1, 256], strides = [1, 1]} : vector<1x512xf32> to vector<1x256xf32>
    %175 = vector.extract_strided_slice %173 {offsets = [0, 256], sizes = [1, 256], strides = [1, 1]} : vector<1x512xf32> to vector<1x256xf32>
    %176 = vector.extract_strided_slice %165 {offsets = [0, 512], sizes = [1, 256], strides = [1, 1]} : vector<1x768xf32> to vector<1x256xf32>
    %177 = vector.extract_strided_slice %164 {offsets = [0, 512], sizes = [1, 256], strides = [1, 1]} : vector<1x768xf32> to vector<1x256xf32>
    %178 = arith.mulf %174, %177 : vector<1x256xf32>
    %179 = arith.addf %176, %178 : vector<1x256xf32>
    %180 = math.tanh %179 : vector<1x256xf32>
    %cst_34 = arith.constant 1.000000e+00 : f32
    %181 = vector.broadcast %cst_34 : f32 to vector<1x256xf32>
    %182 = arith.subf %181, %175 : vector<1x256xf32>
    %183 = arith.mulf %182, %180 : vector<1x256xf32>
    %184 = arith.mulf %175, %161 : vector<1x256xf32>
    %185 = arith.addf %183, %184 : vector<1x256xf32>
    %186 = arith.truncf %185 : vector<1x256xf32> to vector<1x256xbf16>
    %cst_35 = arith.constant dense<0.000000e+00> : vector<1x768xf32>
    %187 = tpu.matmul %186, %16, %cst_35 {dimension_numbers = #tpu.dot_dimension_numbers<[1], [0], [0], [1], [0, 0, 1, 1], [], []>} : vector<1x256xbf16>, vector<256x768xbf16>, vector<1x768xf32> -> vector<1x768xf32>
    %188 = arith.addf %187, %17 : vector<1x768xf32>
    %189 = vector.extract_strided_slice %14 {offsets = [7, 0], sizes = [1, 768], strides = [1, 1]} : vector<8x768xf32> to vector<1x768xf32>
    %190 = vector.extract_strided_slice %189 {offsets = [0, 0], sizes = [1, 512], strides = [1, 1]} : vector<1x768xf32> to vector<1x512xf32>
    %191 = vector.extract_strided_slice %188 {offsets = [0, 0], sizes = [1, 512], strides = [1, 1]} : vector<1x768xf32> to vector<1x512xf32>
    %192 = arith.addf %190, %191 : vector<1x512xf32>
    %193 = arith.negf %192 : vector<1x512xf32>
    %194 = math.exp %193 : vector<1x512xf32>
    %cst_36 = arith.constant 1.000000e+00 : f32
    %195 = vector.broadcast %cst_36 : f32 to vector<1x512xf32>
    %196 = arith.addf %195, %194 : vector<1x512xf32>
    %197 = arith.divf %195, %196 : vector<1x512xf32>
    %198 = vector.extract_strided_slice %197 {offsets = [0, 0], sizes = [1, 256], strides = [1, 1]} : vector<1x512xf32> to vector<1x256xf32>
    %199 = vector.extract_strided_slice %197 {offsets = [0, 256], sizes = [1, 256], strides = [1, 1]} : vector<1x512xf32> to vector<1x256xf32>
    %200 = vector.extract_strided_slice %189 {offsets = [0, 512], sizes = [1, 256], strides = [1, 1]} : vector<1x768xf32> to vector<1x256xf32>
    %201 = vector.extract_strided_slice %188 {offsets = [0, 512], sizes = [1, 256], strides = [1, 1]} : vector<1x768xf32> to vector<1x256xf32>
    %202 = arith.mulf %198, %201 : vector<1x256xf32>
    %203 = arith.addf %200, %202 : vector<1x256xf32>
    %204 = math.tanh %203 : vector<1x256xf32>
    %cst_37 = arith.constant 1.000000e+00 : f32
    %205 = vector.broadcast %cst_37 : f32 to vector<1x256xf32>
    %206 = arith.subf %205, %199 : vector<1x256xf32>
    %207 = arith.mulf %206, %204 : vector<1x256xf32>
    %208 = arith.mulf %199, %185 : vector<1x256xf32>
    %209 = arith.addf %207, %208 : vector<1x256xf32>
    %210 = tpu.concatenate %41, %65, %89, %113, %137, %161, %185, %209 in 0 : vector<1x256xf32>, vector<1x256xf32>, vector<1x256xf32>, vector<1x256xf32>, vector<1x256xf32>, vector<1x256xf32>, vector<1x256xf32>, vector<1x256xf32> -> vector<8x256xf32>
    %c0_38 = arith.constant 0 : index
    %c0_39 = arith.constant 0 : index
    %211 = vector.load %arg7[%c0_38, %c0_39] : memref<8x256xf32, #tpu.memory_space<vmem>>, vector<8x256xf32>
    tpu.vector_store %arg7[%c0_38, %c0_39], %210 {strides = array<i32>} : memref<8x256xf32, #tpu.memory_space<vmem>>, vector<8x256xf32>,
    return
  }
}

</mosaic_0001>

<bundles_post_ra>
// kernel: tpu_custom_call.1
= control target key start
LH: loop header
LB: loop body
LE: loop exit
PB: predicated region body
PF: predicated region fallthrough
CT: control target
= control target key end

     0   :  { %12 = vsyncpa [#allocation3], 0  ;;  %s6478_s0 = inlined_call_operand.vmem [shape: s32[8,1], index: 0, kind: input, shape index: {}]   ;;  %s6479_s1 = inlined_call_operand.hbm [shape: bf16[32,256], index: 1, kind: input, shape index: {}]   ;;  %s6480_s2 = inlined_call_operand.hbm [shape: f32[1,256], index: 2, kind: input, shape index: {}]   ;;  %s6481_s3 = inlined_call_operand.hbm [shape: bf16[256,768], index: 3, kind: input, shape index: {}]   ;;  %s6482_s4 = inlined_call_operand.hbm [shape: bf16[256,768], index: 4, kind: input, shape index: {}]   ;;  %s6483_s5 = inlined_call_operand.vmem [shape: f32[1,768], index: 5, kind: input, shape index: {}]   ;;  %s6484_s6 = inlined_call_operand.vmem [shape: f32[1,768], index: 6, kind: input, shape index: {}]   ;;  %s6485_s7 = inlined_call_operand.hbm [shape: f32[8,256], index: 7, kind: output, shape index: {}]  }
   0x1   :  { %13 = vsyncpa [#allocation6], 0 }
   0x2   :  { %14 = vsyncpa [#allocation9], 0  ;;  %s36_s26 = sshll.u32 %s6480_s2, 4  ;;  %s37_s26 = int_to_ptr.hbm [resolvable:$true] %s36_s26 }
   0x3   :  { %15 = vsyncpa [#allocation4], 0  ;;  %s5084_s27 = smov [#allocation5]   ;;  %s22_s8 = sshll.u32 %s6479_s1, 4  ;;  %s23_s8 = int_to_ptr.hbm [resolvable:$true] %s22_s8 }
   0x4   :  { %s38_s28 = sshll.u32 %s5084_s27, 4  ;;  %s5085_s9 = smov [#allocation2]   ;;  %s39_s28 = int_to_ptr.vmem [resolvable:$true] %s38_s28 }
   0x5   :  { %41 = dma.hbm_to_vmem [thread:$0]  %s37_s26, 32, %s39_s28, [#allocation6]  }
   0x6   :  { %s24_s10 = sshll.u32 %s5085_s9, 4  ;;  %s5086_s11 = smov 128   ;;  %s25_s10 = int_to_ptr.vmem [resolvable:$true] %s24_s10 }
   0x7   :  { %s5087_s12 = smov 8   ;;  %s46_s2 = sshll.u32 %s6481_s3, 4  ;;  %s47_s2 = int_to_ptr.hbm [resolvable:$true] %s46_s2 }
   0x8   :  { %30 = dma.hbm_to_vmem [thread:$0]  %s23_s8, 512, %s25_s10, [#allocation3], %s5086_s11, %s5086_s11, %s5087_s12  }
   0x9   :  { %s5088_s15 = smov [#allocation7]   ;;  %s59_s1 = sshll.u32 %s6482_s4, 4  ;;  %s60_s1 = int_to_ptr.hbm [resolvable:$true] %s59_s1 }
   0xa   :  { %s48_s16 = sshll.u32 %s5088_s15, 4  ;;  %s5089_s19 = smov 384   ;;  %s49_s16 = int_to_ptr.vmem [resolvable:$true] %s48_s16 }
   0xb   :  { %s5090_s20 = smov 24   ;;  %s5091_s21 = smov [#allocation8]  }
   0xc   :  { %54 = dma.hbm_to_vmem [thread:$0]  %s47_s2, 12288, %s49_s16, [#allocation6], %s5089_s19, %s5089_s19, %s5090_s20  }
   0xd   :  { %s61_s22 = sshll.u32 %s5091_s21, 4  ;;  %s62_s22 = int_to_ptr.vmem [resolvable:$true] %s61_s22 }
   0xe   :  { %67 = dma.hbm_to_vmem [thread:$0]  %s60_s1, 12288, %s62_s22, [#allocation9], %s5089_s19, %s5089_s19, %s5090_s20  }
   0xf   :  { %5076 = dma.done.wait [#allocation3], 512  }
  0x10   :  { %5077 = vsyncadd [#allocation3], 4294966784 }
  0x11   :  { %5078 = dma.done.wait [#allocation6], 12320  }
  0x12   :  { %5079 = vsyncadd [#allocation6], 4294954976 }
  0x13   :  { %5080 = dma.done.wait [#allocation9], 12288  }
  0x14   :  { %5081 = vsyncadd [#allocation9], 4294955008  ;;  %v5092_v0 = vmov 0   ;;  %v89_v1 = vld [vmem:[%s6478_s0] sm:$0xff]  ;;  %v3780_v2 = vld [vmem:[#allocation2 + $0x10] sm:$0xf] }
  0x15   :  { %4795 = vset.pattern.permute.xlu0 %v5092_v0  ;;  %v4591_v3 = vld [vmem:[#allocation2 + $0x14] sm:$0xf0]  ;;  %v4590_v5 = vld [vmem:[#allocation2 + $0x14] sm:$0xf]  ;;  %v3782_v6 = vld [vmem:[#allocation2 + $0x18] sm:$0xf0] }
  0x16   :  { %93 = vperm.xlu0 %4795, %v89_v1   ;;  %v3781_v4 = vor.u32 %v4591_v3, %v3780_v2  ;;  %v3785_v7 = vor.u32 %v4590_v5, %v3782_v6  ;;  %v3772_v8 = vld [vmem:[#allocation2] sm:$0xf]  ;;  %v4589_v9 = vld [vmem:[#allocation2 + $0x4] sm:$0xf0]  ;;  %v4588_v10 = vld [vmem:[#allocation2 + $0x4] sm:$0xf] }
  0x17   :  { %v3773_v11 = vor.u32 %v4589_v9, %v3772_v8  ;;  %v3774_v12 = vld [vmem:[#allocation2 + $0x8] sm:$0xf0]  ;;  %v3958_v14 = vld [vmem:[#allocation7 + $0x150] sm:$0xf]  ;;  %v4634_v19 = vld [vmem:[#allocation7 + $0x154] sm:$0xf] }
  0x18   :  { %133 = vmatpush.bf16.msra.mxu0 %v3781_v4  ;;  %146 = vmatpush.bf16.msra.mxu1 %v3785_v7  ;;  %v3777_v13 = vor.u32 %v4588_v10, %v3774_v12  ;;  %v4637_v15 = vld [vmem:[#allocation7 + $0x164] sm:$0xf0]  ;;  %v4150_v16 = vld [vmem:[#allocation7 + $0x2d0] sm:$0xf]  ;;  %v3960_v20 = vld [vmem:[#allocation7 + $0x168] sm:$0xf0] }
  0x19   :  { %v3959_v17 = vor.u32 %v4637_v15, %v3958_v14  ;;  %v4685_v18 = vld [vmem:[#allocation7 + $0x2e4] sm:$0xf0]  ;;  %v3963_v22 = vor.u32 %v4634_v19, %v3960_v20  ;;  %v4682_v23 = vld [vmem:[#allocation7 + $0x2d4] sm:$0xf]  ;;  %v4152_v24 = vld [vmem:[#allocation7 + $0x2e8] sm:$0xf0]  ;;  %v90_v19 = vlaneseq }
  0x1a   :  { %v4151_v21 = vor.u32 %v4685_v18, %v4150_v16  ;;  %v3934_v25 = vld [vmem:[#allocation7 + $0x120] sm:$0xf]  ;;  %v4155_v26 = vor.u32 %v4682_v23, %v4152_v24  ;;  %v4631_v27 = vld [vmem:[#allocation7 + $0x134] sm:$0xf0]  ;;  %v4628_v32 = vld [vmem:[#allocation7 + $0x124] sm:$0xf] }
  0x1b   :  { %745 = vmatpush.bf16.msra.mxu2 %v3959_v17  ;;  %v4126_v28 = vld [vmem:[#allocation7 + $0x2a0] sm:$0xf]  ;;  %v4679_v29 = vld [vmem:[#allocation7 + $0x2b4] sm:$0xf0]  ;;  %v3935_v30 = vor.u32 %v4631_v27, %v3934_v25  ;;  %v3936_v33 = vld [vmem:[#allocation7 + $0x138] sm:$0xf0] }
  0x1c   :  { %134 = vmatpush.bf16.msra.mxu0 %v3773_v11  ;;  %147 = vmatpush.bf16.msra.mxu1 %v3777_v13  ;;  %v4127_v31 = vor.u32 %v4679_v29, %v4126_v28  ;;  %v4676_v34 = vld [vmem:[#allocation7 + $0x2a4] sm:$0xf]  ;;  %v3939_v35 = vor.u32 %v4628_v32, %v3936_v33  ;;  %v4128_v36 = vld [vmem:[#allocation7 + $0x2b8] sm:$0xf0]  ;;  %v3910_v37 = vld [vmem:[#allocation7 + $0xf0] sm:$0xf] }
  0x1d   :  { %758 = vmatpush.bf16.msra.mxu3 %v4151_v21  ;;  %v4625_v38 = vld [vmem:[#allocation7 + $0x104] sm:$0xf0]  ;;  %v4131_v39 = vor.u32 %v4676_v34, %v4128_v36  ;;  %v4102_v40 = vld [vmem:[#allocation7 + $0x270] sm:$0xf]  ;;  %v4622_v42 = vld [vmem:[#allocation7 + $0xf4] sm:$0xf] }
  0x1e   :  { %v4673_v41 = vld [vmem:[#allocation7 + $0x284] sm:$0xf0]  ;;  %v3911_v43 = vor.u32 %v4625_v38, %v3910_v37  ;;  %v3912_v44 = vld [vmem:[#allocation7 + $0x108] sm:$0xf0]  ;;  %v4670_v45 = vld [vmem:[#allocation7 + $0x274] sm:$0xf] }
  0x1f   :  { %746 = vmatpush.bf16.msra.mxu2 %v3935_v30  ;;  %v4104_v46 = vld [vmem:[#allocation7 + $0x288] sm:$0xf0]  ;;  %v4103_v47 = vor.u32 %v4673_v41, %v4102_v40  ;;  %v3915_v48 = vor.u32 %v4622_v42, %v3912_v44  ;;  %v3886_v49 = vld [vmem:[#allocation7 + $0xc0] sm:$0xf]  ;;  %v4619_v50 = vld [vmem:[#allocation7 + $0xd4] sm:$0xf0] }
  0x20   :  { %771 = vmatpush.bf16.msrb.mxu0 %v3963_v22  ;;  %784 = vmatpush.bf16.msrb.mxu1 %v4155_v26  ;;  %v4078_v51 = vld [vmem:[#allocation7 + $0x240] sm:$0xf]  ;;  %v4107_v52 = vor.u32 %v4670_v45, %v4104_v46  ;;  %v4667_v53 = vld [vmem:[#allocation7 + $0x254] sm:$0xf0]  ;;  %v4616_v54 = vld [vmem:[#allocation7 + $0xc4] sm:$0xf]  ;;  %v3887_v58 = vor.u32 %v4619_v50, %v3886_v49 }
  0x21   :  { %759 = vmatpush.bf16.msra.mxu3 %v4127_v31  ;;  %v3888_v55 = vld [vmem:[#allocation7 + $0xd8] sm:$0xf0]  ;;  %v4664_v56 = vld [vmem:[#allocation7 + $0x244] sm:$0xf]  ;;  %v4079_v59 = vor.u32 %v4667_v53, %v4078_v51  ;;  %v3862_v61 = vld [vmem:[#allocation7 + $0x90] sm:$0xf] }
  0x22   :  { %v4080_v57 = vld [vmem:[#allocation7 + $0x258] sm:$0xf0]  ;;  %v3891_v60 = vor.u32 %v4616_v54, %v3888_v55  ;;  %v4613_v62 = vld [vmem:[#allocation7 + $0xa4] sm:$0xf0]  ;;  %v4054_v63 = vld [vmem:[#allocation7 + $0x210] sm:$0xf] }
  0x23   :  { %747 = vmatpush.bf16.msra.mxu2 %v3911_v43  ;;  %v4083_v0 = vor.u32 %v4664_v56, %v4080_v57  ;;  %v4661_v1 = vld [vmem:[#allocation7 + $0x224] sm:$0xf0]  ;;  %v4610_v2 = vld [vmem:[#allocation7 + $0x94] sm:$0xf]  ;;  %v3864_v3 = vld [vmem:[#allocation7 + $0xa8] sm:$0xf0]  ;;  %v3863_v6 = vor.u32 %v4613_v62, %v3862_v61 }
  0x24   :  { %772 = vmatpush.bf16.msrb.mxu0 %v3939_v35  ;;  %785 = vmatpush.bf16.msrb.mxu1 %v4131_v39  ;;  %v4658_v4 = vld [vmem:[#allocation7 + $0x214] sm:$0xf]  ;;  %v4056_v5 = vld [vmem:[#allocation7 + $0x228] sm:$0xf0]  ;;  %v4055_v7 = vor.u32 %v4661_v1, %v4054_v63  ;;  %v3867_v8 = vor.u32 %v4610_v2, %v3864_v3  ;;  %v3838_v9 = vld [vmem:[#allocation7 + $0x60] sm:$0xf] }
  0x25   :  { %760 = vmatpush.bf16.msra.mxu3 %v4103_v47  ;;  %v4607_v10 = vld [vmem:[#allocation7 + $0x74] sm:$0xf0]  ;;  %v4030_v11 = vld [vmem:[#allocation7 + $0x1e0] sm:$0xf]  ;;  %v4059_v12 = vor.u32 %v4658_v4, %v4056_v5  ;;  %v4604_v14 = vld [vmem:[#allocation7 + $0x64] sm:$0xf] }
  0x26   :  { %v4655_v13 = vld [vmem:[#allocation7 + $0x1f4] sm:$0xf0]  ;;  %v3840_v15 = vld [vmem:[#allocation7 + $0x78] sm:$0xf0]  ;;  %v4652_v16 = vld [vmem:[#allocation7 + $0x1e4] sm:$0xf]  ;;  %v3839_v18 = vor.u32 %v4607_v10, %v3838_v9 }
  0x27   :  { %748 = vmatpush.bf16.msra.mxu2 %v3887_v58  ;;  %v4032_v17 = vld [vmem:[#allocation7 + $0x1f8] sm:$0xf0]  ;;  %v4031_v20 = vor.u32 %v4655_v13, %v4030_v11  ;;  %v3843_v21 = vor.u32 %v4604_v14, %v3840_v15  ;;  %v3814_v22 = vld [vmem:[#allocation7 + $0x30] sm:$0xf]  ;;  %v4601_v23 = vld [vmem:[#allocation7 + $0x44] sm:$0xf0] }
  0x28   :  { %773 = vmatpush.bf16.msrb.mxu0 %v3915_v48  ;;  %786 = vmatpush.bf16.msrb.mxu1 %v4107_v52  ;;  %v4006_v24 = vld [vmem:[#allocation7 + $0x1b0] sm:$0xf]  ;;  %v4035_v25 = vor.u32 %v4652_v16, %v4032_v17  ;;  %v4649_v26 = vld [vmem:[#allocation7 + $0x1c4] sm:$0xf0]  ;;  %v4598_v27 = vld [vmem:[#allocation7 + $0x34] sm:$0xf]  ;;  %v3815_v31 = vor.u32 %v4601_v23, %v3814_v22 }
  0x29   :  { %761 = vmatpush.bf16.msra.mxu3 %v4079_v59  ;;  %v3816_v28 = vld [vmem:[#allocation7 + $0x48] sm:$0xf0]  ;;  %v4646_v29 = vld [vmem:[#allocation7 + $0x1b4] sm:$0xf]  ;;  %v91_v32 = vand.u32 127, %v90_v19  ;;  %v4007_v33 = vor.u32 %v4649_v26, %v4006_v24  ;;  %v5093_v52 = vmov 0.0  }
  0x2a   :  { %v4008_v30 = vld [vmem:[#allocation7 + $0x1c8] sm:$0xf0]  ;;  %v3819_v34 = vor.u32 %v4598_v27, %v3816_v28  ;;  %v3790_v35 = vld [vmem:[#allocation7] sm:$0xf]  ;;  %v4595_v36 = vld [vmem:[#allocation7 + $0x14] sm:$0xf0] }
  0x2b   :  { %749 = vmatpush.bf16.msra.mxu2 %v3863_v6  ;;  %v4011_v37 = vor.u32 %v4646_v29, %v4008_v30  ;;  %v3982_v38 = vld [vmem:[#allocation7 + $0x180] sm:$0xf]  ;;  %v4643_v39 = vld [vmem:[#allocation7 + $0x194] sm:$0xf0]  ;;  %v4592_v40 = vld [vmem:[#allocation7 + $0x4] sm:$0xf]  ;;  %v3791_v45 = vor.u32 %v4595_v36, %v3790_v35 }
  0x2c   :  { %774 = vmatpush.bf16.msrb.mxu0 %v3891_v60  ;;  %787 = vmatpush.bf16.msrb.mxu1 %v4083_v0  ;;  %v3792_v41 = vld [vmem:[#allocation7 + $0x18] sm:$0xf0]  ;;  %v4640_v42 = vld [vmem:[#allocation7 + $0x184] sm:$0xf]  ;;  %v3966_v46 = vld [vmem:[#allocation7 + $0x158] sm:$0xf]  ;;  %v3983_v54 = vor.u32 %v4643_v39, %v3982_v38 }
  0x2d   :  { %762 = vmatpush.bf16.msra.mxu3 %v4055_v7  ;;  %v3984_v43 = vld [vmem:[#allocation7 + $0x198] sm:$0xf0]  ;;  %v4638_v47 = vld [vmem:[#allocation7 + $0x16c] sm:$0xf0]  ;;  %v4158_v48 = vld [vmem:[#allocation7 + $0x2d8] sm:$0xf]  ;;  %v3795_v55 = vor.u32 %v4592_v40, %v3792_v41 }
  0x2e   :  { %v4686_v49 = vld [vmem:[#allocation7 + $0x2ec] sm:$0xf0]  ;;  %v4635_v50 = vld [vmem:[#allocation7 + $0x15c] sm:$0xf]  ;;  %v3968_v51 = vld [vmem:[#allocation7 + $0x170] sm:$0xf0]  ;;  %v3987_v59 = vor.u32 %v4640_v42, %v3984_v43  ;;  %v3967_v60 = vor.u32 %v4638_v47, %v3966_v46 }
  0x2f   :  { %750 = vmatpush.bf16.msra.mxu2 %v3839_v18  ;;  %vm123_vm1 = vcmask 261120   ;;  %v4683_v56 = vld [vmem:[#allocation7 + $0x2dc] sm:$0xf]  ;;  %v4160_v57 = vld [vmem:[#allocation7 + $0x2f0] sm:$0xf0]  ;;  %v4159_v61 = vor.u32 %v4686_v49, %v4158_v48  ;;  %v3971_v62 = vor.u32 %v4635_v50, %v3968_v51  ;;  %s3757_s28 = sshll.u32 %s6485_s7, 4  ;;  %s3758_s28 = int_to_ptr.hbm [resolvable:$true] %s3757_s28 }
  0x30   :  { %775 = vmatpush.bf16.msrb.mxu0 %v3867_v8  ;;  %788 = vmatpush.bf16.msrb.mxu1 %v4059_v12  ;;  %v3942_v63 = vld [vmem:[#allocation7 + $0x128] sm:$0xf]  ;;  %v4632_v0 = vld [vmem:[#allocation7 + $0x13c] sm:$0xf0]  ;;  %v4163_v2 = vor.u32 %v4683_v56, %v4160_v57  ;;  %v4629_v4 = vld [vmem:[#allocation7 + $0x12c] sm:$0xf] }
  0x31   :  { %763 = vmatpush.bf16.msra.mxu3 %v4031_v20  ;;  %v4134_v1 = vld [vmem:[#allocation7 + $0x2a8] sm:$0xf]  ;;  %v4680_v3 = vld [vmem:[#allocation7 + $0x2bc] sm:$0xf0]  ;;  %v3944_v5 = vld [vmem:[#allocation7 + $0x140] sm:$0xf0]  ;;  %v3943_v8 = vor.u32 %v4632_v0, %v3942_v63 }
  0x32   :  { %v4677_v6 = vld [vmem:[#allocation7 + $0x2ac] sm:$0xf]  ;;  %v4136_v7 = vld [vmem:[#allocation7 + $0x2c0] sm:$0xf0]  ;;  %v4135_v9 = vor.u32 %v4680_v3, %v4134_v1  ;;  %v3947_v10 = vor.u32 %v4629_v4, %v3944_v5  ;;  %v3918_v11 = vld [vmem:[#allocation7 + $0xf8] sm:$0xf] }
  0x33   :  { %751 = vmatpush.bf16.msra.mxu2 %v3815_v31  ;;  %v4626_v12 = vld [vmem:[#allocation7 + $0x10c] sm:$0xf0]  ;;  %v4110_v13 = vld [vmem:[#allocation7 + $0x278] sm:$0xf]  ;;  %v4139_v14 = vor.u32 %v4677_v6, %v4136_v7  ;;  %v4623_v16 = vld [vmem:[#allocation7 + $0xfc] sm:$0xf] }
  0x34   :  { %776 = vmatpush.bf16.msrb.mxu0 %v3843_v21  ;;  %789 = vmatpush.bf16.msrb.mxu1 %v4035_v25  ;;  %v4674_v15 = vld [vmem:[#allocation7 + $0x28c] sm:$0xf0]  ;;  %v3920_v17 = vld [vmem:[#allocation7 + $0x110] sm:$0xf0]  ;;  %v4671_v18 = vld [vmem:[#allocation7 + $0x27c] sm:$0xf]  ;;  %v3919_v20 = vor.u32 %v4626_v12, %v3918_v11 }
  0x35   :  { %764 = vmatpush.bf16.msra.mxu3 %v4007_v33  ;;  %v4112_v19 = vld [vmem:[#allocation7 + $0x290] sm:$0xf0]  ;;  %v4111_v21 = vor.u32 %v4674_v15, %v4110_v13  ;;  %v3923_v22 = vor.u32 %v4623_v16, %v3920_v17  ;;  %v3894_v23 = vld [vmem:[#allocation7 + $0xc8] sm:$0xf]  ;;  %v4620_v24 = vld [vmem:[#allocation7 + $0xdc] sm:$0xf0] }
  0x36   :  { %v4086_v25 = vld [vmem:[#allocation7 + $0x248] sm:$0xf]  ;;  %v4115_v26 = vor.u32 %v4671_v18, %v4112_v19  ;;  %v4668_v27 = vld [vmem:[#allocation7 + $0x25c] sm:$0xf0]  ;;  %v4617_v28 = vld [vmem:[#allocation7 + $0xcc] sm:$0xf] }
  0x37   :  { %752 = vmatpush.bf16.msra.mxu2 %v3791_v45  ;;  %v3896_v29 = vld [vmem:[#allocation7 + $0xe0] sm:$0xf0]  ;;  %v4665_v30 = vld [vmem:[#allocation7 + $0x24c] sm:$0xf]  ;;  %v4087_v33 = vor.u32 %v4668_v27, %v4086_v25  ;;  %v3870_v35 = vld [vmem:[#allocation7 + $0x98] sm:$0xf] }
  0x38   :  { %777 = vmatpush.bf16.msrb.mxu0 %v3819_v34  ;;  %790 = vmatpush.bf16.msrb.mxu1 %v4011_v37  ;;  %v4088_v31 = vld [vmem:[#allocation7 + $0x260] sm:$0xf0]  ;;  %v3899_v34 = vor.u32 %v4617_v28, %v3896_v29  ;;  %v4614_v36 = vld [vmem:[#allocation7 + $0xac] sm:$0xf0]  ;;  %v4062_v37 = vld [vmem:[#allocation7 + $0x218] sm:$0xf] }
  0x39   :  { %765 = vmatpush.bf16.msra.mxu3 %v3983_v54  ;;  %v4091_v38 = vor.u32 %v4665_v30, %v4088_v31  ;;  %v4662_v39 = vld [vmem:[#allocation7 + $0x22c] sm:$0xf0]  ;;  %v4611_v40 = vld [vmem:[#allocation7 + $0x9c] sm:$0xf]  ;;  %v3872_v41 = vld [vmem:[#allocation7 + $0xb0] sm:$0xf0] }
  0x3a   :  { %v4659_v42 = vld [vmem:[#allocation7 + $0x21c] sm:$0xf]  ;;  %v4064_v43 = vld [vmem:[#allocation7 + $0x230] sm:$0xf0]  ;;  %v4063_v45 = vor.u32 %v4662_v39, %v4062_v37  ;;  %v3875_v46 = vor.u32 %v4611_v40, %v3872_v41  ;;  %v3846_v47 = vld [vmem:[#allocation7 + $0x68] sm:$0xf] }
  0x3b   :  { %797 = vmatpush.bf16.msrb.mxu2 %v3967_v60  ;;  %v4608_v48 = vld [vmem:[#allocation7 + $0x7c] sm:$0xf0]  ;;  %v4038_v49 = vld [vmem:[#allocation7 + $0x1e8] sm:$0xf]  ;;  %v4067_v50 = vor.u32 %v4659_v42, %v4064_v43  ;;  %v4653_v54 = vld [vmem:[#allocation7 + $0x1ec] sm:$0xf] }
  0x3c   :  { %778 = vmatpush.bf16.msrb.mxu0 %v3795_v55  ;;  %791 = vmatpush.bf16.msrb.mxu1 %v3987_v59  ;;  %v4656_v51 = vld [vmem:[#allocation7 + $0x1fc] sm:$0xf0]  ;;  %v4040_v55 = vld [vmem:[#allocation7 + $0x200] sm:$0xf0]  ;;  %v3847_v56 = vor.u32 %v4608_v48, %v3846_v47  ;;  %v3822_v59 = vld [vmem:[#allocation7 + $0x38] sm:$0xf] }
  0x3d   :  { %810 = vmatpush.bf16.msrb.mxu3 %v4159_v61  ;;  %v4039_v57 = vor.u32 %v4656_v51, %v4038_v49  ;;  %v4602_v60 = vld [vmem:[#allocation7 + $0x4c] sm:$0xf0]  ;;  %v4014_v61 = vld [vmem:[#allocation7 + $0x1b8] sm:$0xf]  ;;  %v4599_v0 = vld [vmem:[#allocation7 + $0x3c] sm:$0xf] }
  0x3e   :  { %v4650_v63 = vld [vmem:[#allocation7 + $0x1cc] sm:$0xf0]  ;;  %v3824_v1 = vld [vmem:[#allocation7 + $0x50] sm:$0xf0]  ;;  %v3823_v4 = vor.u32 %v4602_v60, %v3822_v59  ;;  %v4644_v12 = vld [vmem:[#allocation7 + $0x19c] sm:$0xf0] }
  0x3f   :  { %798 = vmatpush.bf16.msrb.mxu2 %v3943_v8  ;;  %v4016_v3 = vld [vmem:[#allocation7 + $0x1d0] sm:$0xf0]  ;;  %v4015_v5 = vor.u32 %v4650_v63, %v4014_v61  ;;  %v3827_v6 = vor.u32 %v4599_v0, %v3824_v1  ;;  %v3798_v8 = vld [vmem:[#allocation7 + $0x8] sm:$0xf]  ;;  %v4593_v13 = vld [vmem:[#allocation7 + $0xc] sm:$0xf] }
  0x40   :  { %v4641_v17 = vld [vmem:[#allocation7 + $0x18c] sm:$0xf]  ;;  %v3992_v18 = vld [vmem:[#allocation7 + $0x1a0] sm:$0xf0]  ;;  %v3976_v25 = vld [vmem:[#allocation7 + $0x178] sm:$0xf0] }
  0x41   :  { %811 = vmatpush.bf16.msrb.mxu3 %v4135_v9  ;;  %v4596_v9 = vld [vmem:[#allocation7 + $0x1c] sm:$0xf0]  ;;  %v3995_v19 = vor.u32 %v4641_v17, %v3992_v18  ;;  %v4168_v27 = vld [vmem:[#allocation7 + $0x2f8] sm:$0xf0]  ;;  %v4681_v39 = vld [vmem:[#allocation7 + $0x2c4] sm:$0xf0] }
  0x42   :  { %v3799_v11 = vor.u32 %v4596_v9, %v3798_v8  ;;  %v4630_v40 = vld [vmem:[#allocation7 + $0x134] sm:$0xf]  ;;  %v3952_v41 = vld [vmem:[#allocation7 + $0x148] sm:$0xf0]  ;;  %v4627_v47 = vld [vmem:[#allocation7 + $0x114] sm:$0xf0] }
  0x43   :  { %799 = vmatpush.bf16.msrb.mxu2 %v3919_v20  ;;  %v3974_v20 = vld [vmem:[#allocation7 + $0x160] sm:$0xf]  ;;  %v4678_v42 = vld [vmem:[#allocation7 + $0x2b4] sm:$0xf]  ;;  %v4144_v43 = vld [vmem:[#allocation7 + $0x2c8] sm:$0xf0]  ;;  %v3955_v48 = vor.u32 %v4630_v40, %v3952_v41 }
  0x44   :  { %v4147_v49 = vor.u32 %v4678_v42, %v4144_v43  ;;  %v4675_v51 = vld [vmem:[#allocation7 + $0x294] sm:$0xf0]  ;;  %v3902_v60 = vld [vmem:[#allocation7 + $0xd0] sm:$0xf]  ;;  %v4621_v61 = vld [vmem:[#allocation7 + $0xe4] sm:$0xf0] }
  0x45   :  { %812 = vmatpush.bf16.msrb.mxu3 %v4111_v21  ;;  %v4639_v21 = vld [vmem:[#allocation7 + $0x174] sm:$0xf0]  ;;  %v4094_v0 = vld [vmem:[#allocation7 + $0x250] sm:$0xf]  ;;  %v4669_v1 = vld [vmem:[#allocation7 + $0x264] sm:$0xf0] }
  0x46   :  { %v3878_v8 = vld [vmem:[#allocation7 + $0xa0] sm:$0xf]  ;;  %v4615_v9 = vld [vmem:[#allocation7 + $0xb4] sm:$0xf0]  ;;  %v4072_v17 = vld [vmem:[#allocation7 + $0x238] sm:$0xf0] }
  0x47   :  { %v3879_v18 = vor.u32 %v4615_v9, %v3878_v8  ;;  %v4600_v40 = vld [vmem:[#allocation7 + $0x44] sm:$0xf]  ;;  %v3832_v41 = vld [vmem:[#allocation7 + $0x58] sm:$0xf0] }
  0x48   :  { %v4648_v42 = vld [vmem:[#allocation7 + $0x1c4] sm:$0xf]  ;;  %v4024_v43 = vld [vmem:[#allocation7 + $0x1d8] sm:$0xf0] }
  0x49   :  { %813 = vmatpush.bf16.msrb.mxu3 %v4087_v33 }
  0x4d   :  { %814 = vmatpush.bf16.msrb.mxu3 %v4063_v45 }
  0x51   :  { %815 = vmatpush.bf16.msrb.mxu3 %v4039_v57 }
  0x55   :  { %816 = vmatpush.bf16.msrb.mxu3 %v4015_v5  ;;  %v4096_v5 = vld [vmem:[#allocation7 + $0x268] sm:$0xf0] }
  0x88   :  { %v94_v44 = vpop.permute.xlu0 %93 }
  0x89   :  { %vm95_vm0 = vcmp.eq.s32.totalorder %v94_v44, %v91_v32  ;;  %v3895_v32 = vor.u32 %v4620_v24, %v3894_v23  ;;  %v3871_v44 = vor.u32 %v4614_v36, %v3870_v35  ;;  %v4687_v23 = vld [vmem:[#allocation7 + $0x2f4] sm:$0xf0]  ;;  %v4636_v24 = vld [vmem:[#allocation7 + $0x164] sm:$0xf]  ;;  %v4633_v35 = vld [vmem:[#allocation7 + $0x144] sm:$0xf0] }
  0x8a   :  { %v3769_v53 = vsel %vm95_vm0, 1.0, %v5093_v52  ;;  %v4605_v52 = vld [vmem:[#allocation7 + $0x6c] sm:$0xf]  ;;  %v3979_v36 = vor.u32 %v4636_v24, %v3976_v25  ;;  %v4046_v24 = vld [vmem:[#allocation7 + $0x1f0] sm:$0xf] }
  0x8b   :  { %v98_v58 = vpack.c.bf16 %v3769_v53, %v3769_v53  ;;  %800 = vmatpush.bf16.msrb.mxu2 %v3895_v32  ;;  %v3848_v53 = vld [vmem:[#allocation7 + $0x80] sm:$0xf0]  ;;  %v3975_v32 = vor.u32 %v4639_v21, %v3974_v20  ;;  %v3854_v20 = vld [vmem:[#allocation7 + $0x70] sm:$0xf]  ;;  %v4609_v21 = vld [vmem:[#allocation7 + $0x84] sm:$0xf0] }
  0x8c   :  { %v4657_v25 = vld [vmem:[#allocation7 + $0x204] sm:$0xf0] }
  0x8d   :  { %3786 = vmatmul.msk.bf16.vlgmr.msra.gmra.mxu0 %vm123_vm1, %v98_v58  ;;  %3787 = vmatmul.msk.bf16.vlgmr.msra.gmra.mxu1 %vm123_vm1, %v98_v58  ;;  %v3851_v58 = vor.u32 %v4605_v52, %v3848_v53  ;;  %v4624_v52 = vld [vmem:[#allocation7 + $0x104] sm:$0xf]  ;;  %v3928_v53 = vld [vmem:[#allocation7 + $0x118] sm:$0xf0] }
  0x8e   :  { %823 = vmatpush.bf16.msra.mxu0 %v3971_v62  ;;  %836 = vmatpush.bf16.msra.mxu1 %v4163_v2  ;;  %v4043_v62 = vor.u32 %v4653_v54, %v4040_v55  ;;  %v4647_v2 = vld [vmem:[#allocation7 + $0x1bc] sm:$0xf]  ;;  %v4672_v54 = vld [vmem:[#allocation7 + $0x284] sm:$0xf] }
  0x8f   :  { %801 = vmatpush.bf16.msrb.mxu2 %v3871_v44  ;;  %v4019_v7 = vor.u32 %v4647_v2, %v4016_v3  ;;  %v4120_v55 = vld [vmem:[#allocation7 + $0x298] sm:$0xf0]  ;;  %v4618_v2 = vld [vmem:[#allocation7 + $0xd4] sm:$0xf]  ;;  %v3904_v3 = vld [vmem:[#allocation7 + $0xe8] sm:$0xf0] }
  0x90   :  { %v4123_v63 = vor.u32 %v4672_v54, %v4120_v55  ;;  %v4642_v54 = vld [vmem:[#allocation7 + $0x194] sm:$0xf]  ;;  %v4000_v55 = vld [vmem:[#allocation7 + $0x1a8] sm:$0xf0] }
  0x92   :  { %824 = vmatpush.bf16.msra.mxu0 %v3947_v10  ;;  %837 = vmatpush.bf16.msra.mxu1 %v4139_v14  ;;  %v3990_v10 = vld [vmem:[#allocation7 + $0x188] sm:$0xf]  ;;  %v3800_v14 = vld [vmem:[#allocation7 + $0x20] sm:$0xf0] }
  0x93   :  { %802 = vmatpush.bf16.msrb.mxu2 %v3847_v56  ;;  %v3991_v15 = vor.u32 %v4644_v12, %v3990_v10  ;;  %v3803_v16 = vor.u32 %v4593_v13, %v3800_v14  ;;  %v3907_v10 = vor.u32 %v4618_v2, %v3904_v3  ;;  %v4070_v12 = vld [vmem:[#allocation7 + $0x220] sm:$0xf]  ;;  %v4663_v13 = vld [vmem:[#allocation7 + $0x234] sm:$0xf0]  ;;  %v4612_v14 = vld [vmem:[#allocation7 + $0xa4] sm:$0xf]  ;;  %v4003_v3 = vor.u32 %v4642_v54, %v4000_v55 }
  0x94   :  { %v4222_v54 = vld [vmem:[#allocation8 + $0x60] sm:$0xf]  ;;  %v4703_v55 = vld [vmem:[#allocation8 + $0x74] sm:$0xf0] }
  0x95   :  { %817 = vmatpush.bf16.msrb.mxu3 %v3991_v15  ;;  %v3880_v15 = vld [vmem:[#allocation7 + $0xb8] sm:$0xf0] }
  0x96   :  { %825 = vmatpush.bf16.msra.mxu0 %v3923_v22  ;;  %838 = vmatpush.bf16.msra.mxu1 %v4115_v26  ;;  %v4166_v22 = vld [vmem:[#allocation7 + $0x2e0] sm:$0xf]  ;;  %v4684_v26 = vld [vmem:[#allocation7 + $0x2e4] sm:$0xf] }
  0x97   :  { %803 = vmatpush.bf16.msrb.mxu2 %v3823_v4  ;;  %v4167_v33 = vor.u32 %v4687_v23, %v4166_v22  ;;  %v4171_v37 = vor.u32 %v4684_v26, %v4168_v27  ;;  %v4666_v4 = vld [vmem:[#allocation7 + $0x254] sm:$0xf]  ;;  %v3883_v22 = vor.u32 %v4612_v14, %v3880_v15  ;;  %v3856_v27 = vld [vmem:[#allocation7 + $0x88] sm:$0xf0]  ;;  %v4772_v14 = vld [vmem:[#allocation8 + $0x2a4] sm:$0xf] }
  0x98   :  { %v4606_v26 = vld [vmem:[#allocation7 + $0x74] sm:$0xf]  ;;  %v4512_v15 = vld [vmem:[#allocation8 + $0x2b8] sm:$0xf0] }
  0x9a   :  { %826 = vmatpush.bf16.msra.mxu0 %v3899_v34  ;;  %839 = vmatpush.bf16.msra.mxu1 %v4091_v38  ;;  %v3950_v34 = vld [vmem:[#allocation7 + $0x130] sm:$0xf] }
  0x9b   :  { %804 = vmatpush.bf16.msrb.mxu2 %v3799_v11  ;;  %v4142_v38 = vld [vmem:[#allocation7 + $0x2b0] sm:$0xf]  ;;  %v3951_v44 = vor.u32 %v4633_v35, %v3950_v34  ;;  %v4099_v11 = vor.u32 %v4666_v4, %v4096_v5  ;;  %v3830_v34 = vld [vmem:[#allocation7 + $0x40] sm:$0xf]  ;;  %v4603_v35 = vld [vmem:[#allocation7 + $0x54] sm:$0xf0] }
  0x9c   :  { %v4143_v45 = vor.u32 %v4681_v39, %v4142_v38  ;;  %v4022_v38 = vld [vmem:[#allocation7 + $0x1c0] sm:$0xf]  ;;  %v4651_v39 = vld [vmem:[#allocation7 + $0x1d4] sm:$0xf0] }
  0x9e   :  { %827 = vmatpush.bf16.msra.mxu0 %v3875_v46  ;;  %840 = vmatpush.bf16.msra.mxu1 %v4067_v50  ;;  %v3926_v46 = vld [vmem:[#allocation7 + $0x100] sm:$0xf] }
  0x9f   :  { %v4118_v50 = vld [vmem:[#allocation7 + $0x280] sm:$0xf] }
  0xa0   :  { %v4119_v59 = vor.u32 %v4675_v51, %v4118_v50  ;;  %v3835_v50 = vor.u32 %v4600_v40, %v3832_v41  ;;  %v4027_v51 = vor.u32 %v4648_v42, %v4024_v43  ;;  %v4246_v42 = vld [vmem:[#allocation8 + $0x90] sm:$0xf]  ;;  %v4709_v43 = vld [vmem:[#allocation8 + $0xa4] sm:$0xf0] }
  0xa2   :  { %828 = vmatpush.bf16.msra.mxu0 %v3851_v58  ;;  %841 = vmatpush.bf16.msra.mxu1 %v4043_v62  ;;  %v3927_v58 = vor.u32 %v4627_v47, %v3926_v46  ;;  %v3931_v62 = vor.u32 %v4624_v52, %v3928_v53  ;;  %v4023_v46 = vor.u32 %v4651_v39, %v4022_v38  ;;  %v4597_v47 = vld [vmem:[#allocation7 + $0x24] sm:$0xf0]  ;;  %v4594_v52 = vld [vmem:[#allocation7 + $0x14] sm:$0xf]  ;;  %v3808_v53 = vld [vmem:[#allocation7 + $0x28] sm:$0xf0] }
  0xa3   :  { %v3811_v2 = vor.u32 %v4594_v52, %v3808_v53  ;;  %v4760_v38 = vld [vmem:[#allocation8 + $0x244] sm:$0xf]  ;;  %v4464_v39 = vld [vmem:[#allocation8 + $0x258] sm:$0xf0]  ;;  %v5214_v52 = vor.u32 %v4709_v43, %v4246_v42  ;;  %v4352_v42 = vld [vmem:[#allocation8 + $0x170] sm:$0xf0] }
  0xa5   :  { %6694 = vst [vmem:[#allocation29_spill] sm:$0xff] %v5214_v52 }
  0xa6   :  { %829 = vmatpush.bf16.msra.mxu0 %v3827_v6  ;;  %842 = vmatpush.bf16.msra.mxu1 %v4019_v7  ;;  %v3903_v6 = vor.u32 %v4621_v61, %v3902_v60  ;;  %v4095_v7 = vor.u32 %v4669_v1, %v4094_v0  ;;  %v4730_v60 = vld [vmem:[#allocation8 + $0x154] sm:$0xf]  ;;  %v4536_v1 = vld [vmem:[#allocation8 + $0x2e8] sm:$0xf0] }
  0xa7   :  { %v4778_v0 = vld [vmem:[#allocation8 + $0x2d4] sm:$0xf] }
  0xa8   :  { %v5170_v9 = vor.u32 %v4778_v0, %v4536_v1  ;;  %v5226_v0 = vor.u32 %v4703_v55, %v4222_v54  ;;  %v4779_v54 = vld [vmem:[#allocation8 + $0x2dc] sm:$0xf]  ;;  %v4544_v55 = vld [vmem:[#allocation8 + $0x2f0] sm:$0xf0] }
  0xaa   :  { %830 = vmatpush.bf16.msra.mxu0 %v3803_v16  ;;  %843 = vmatpush.bf16.msra.mxu1 %v3995_v19  ;;  %v4660_v16 = vld [vmem:[#allocation7 + $0x224] sm:$0xf]  ;;  %v4071_v19 = vor.u32 %v4663_v13, %v4070_v12  ;;  %v4320_v13 = vld [vmem:[#allocation8 + $0x138] sm:$0xf0]  ;;  %6698 = vst [vmem:[#allocation33_spill] sm:$0xff] %v5226_v0 }
  0xab   :  { %v4075_v23 = vor.u32 %v4660_v16, %v4072_v17  ;;  %v4724_v12 = vld [vmem:[#allocation8 + $0x124] sm:$0xf] }
 0x10a   :  { %v136_v28 = vpop.f32.mrf.mxu0  ;;  %v149_v29 = vpop.f32.mrf.mxu1 }
 0x10b   :  { %v5152_v30 = vpack.c.bf16 %v136_v28, %v136_v28  ;;  %v5154_v31 = vpack.c.bf16 %v149_v29, %v149_v29  ;;  %v4654_v28 = vld [vmem:[#allocation7 + $0x1f4] sm:$0xf]  ;;  %v4048_v29 = vld [vmem:[#allocation7 + $0x208] sm:$0xf0] }
 0x10d   :  { %753 = vmatmul.bf16.vlgmr.msra.gmra.mxu2 %v5152_v30  ;;  %766 = vmatmul.bf16.vlgmr.msra.gmra.mxu3 %v5154_v31 }
 0x10e   :  { %779 = vmatmul.bf16.vlgmr.msrb.gmra.mxu0 %v5152_v30  ;;  %792 = vmatmul.bf16.vlgmr.msrb.gmra.mxu1 %v5154_v31 }
 0x10f   :  { %849 = vmatpush.bf16.msra.mxu2 %v3975_v32  ;;  %862 = vmatpush.bf16.msra.mxu3 %v4167_v33  ;;  %v3855_v32 = vor.u32 %v4609_v21, %v3854_v20  ;;  %v4047_v33 = vor.u32 %v4657_v25, %v4046_v24  ;;  %v5180_v20 = vor.u32 %v4724_v12, %v4320_v13  ;;  %v4718_v24 = vld [vmem:[#allocation8 + $0xf4] sm:$0xf]  ;;  %v4296_v25 = vld [vmem:[#allocation8 + $0x108] sm:$0xf0] }
 0x110   :  { %875 = vmatpush.bf16.msrb.mxu0 %v3979_v36  ;;  %888 = vmatpush.bf16.msrb.mxu1 %v4171_v37  ;;  %v3859_v36 = vor.u32 %v4606_v26, %v3856_v27  ;;  %v4051_v37 = vor.u32 %v4654_v28, %v4048_v29  ;;  %v5182_v21 = vor.u32 %v4772_v14, %v4512_v15  ;;  %v4766_v26 = vld [vmem:[#allocation8 + $0x274] sm:$0xf]  ;;  %v4488_v27 = vld [vmem:[#allocation8 + $0x288] sm:$0xf0] }
 0x111   :  { %6684 = vst [vmem:[#allocation19_spill] sm:$0xff] %v5180_v20  ;;  %v4694_v12 = vld [vmem:[#allocation8 + $0x34] sm:$0xf]  ;;  %v4200_v13 = vld [vmem:[#allocation8 + $0x48] sm:$0xf0] }
 0x112   :  { %v138_v56 = vpop.f32.mrf.mxu0  ;;  %v151_v57 = vpop.f32.mrf.mxu1  ;;  %6685 = vst [vmem:[#allocation20_spill] sm:$0xff] %v5182_v21  ;;  %v4742_v14 = vld [vmem:[#allocation8 + $0x1b4] sm:$0xf]  ;;  %v4392_v15 = vld [vmem:[#allocation8 + $0x1c8] sm:$0xf0] }
 0x113   :  { %850 = vmatpush.bf16.msra.mxu2 %v3951_v44  ;;  %863 = vmatpush.bf16.msra.mxu3 %v4143_v45  ;;  %v3806_v44 = vld [vmem:[#allocation7 + $0x10] sm:$0xf]  ;;  %v3831_v45 = vor.u32 %v4603_v35, %v3830_v34  ;;  %v4733_v57 = vld [vmem:[#allocation8 + $0x164] sm:$0xf0]  ;;  %v5196_v34 = vor.u32 %v4718_v24, %v4296_v25  ;;  %v5198_v35 = vor.u32 %v4766_v26, %v4488_v27  ;;  %v4366_v24 = vld [vmem:[#allocation8 + $0x180] sm:$0xf] }
 0x114   :  { %876 = vmatpush.bf16.msrb.mxu0 %v3955_v48  ;;  %889 = vmatpush.bf16.msrb.mxu1 %v4147_v49  ;;  %v3998_v48 = vld [vmem:[#allocation7 + $0x190] sm:$0xf]  ;;  %v4645_v49 = vld [vmem:[#allocation7 + $0x1a4] sm:$0xf0]  ;;  %v3807_v61 = vor.u32 %v4597_v47, %v3806_v44  ;;  %v4739_v25 = vld [vmem:[#allocation8 + $0x194] sm:$0xf0]  ;;  %v5244_v27 = vor.u32 %v4694_v12, %v4200_v13 }
 0x115   :  { %v4342_v56 = vld [vmem:[#allocation8 + $0x150] sm:$0xf]  ;;  %6688 = vst [vmem:[#allocation23_spill] sm:$0xff] %v5196_v34  ;;  %v4757_v47 = vld [vmem:[#allocation8 + $0x224] sm:$0xf0] }
 0x116   :  { %v5164_v4 = vor.u32 %v4733_v57, %v4342_v56  ;;  %6689 = vst [vmem:[#allocation24_spill] sm:$0xff] %v5198_v35  ;;  %v901_v26 = vld [vmem:[#allocation5] sm:$0x3]  ;;  %v4725_v12 = vld [vmem:[#allocation8 + $0x12c] sm:$0xf] }
 0x117   :  { %851 = vmatpush.bf16.msra.mxu2 %v3927_v58  ;;  %864 = vmatpush.bf16.msra.mxu3 %v4119_v59  ;;  %v4534_v58 = vld [vmem:[#allocation8 + $0x2d0] sm:$0xf]  ;;  %v4781_v59 = vld [vmem:[#allocation8 + $0x2e4] sm:$0xf0]  ;;  %6704 = vst [vmem:[#allocation39_spill] sm:$0xff] %v5244_v27  ;;  %v5248_v43 = vperm.slane %v901_v26, 0 }
 0x118   :  { %877 = vmatpush.bf16.msrb.mxu0 %v3931_v62  ;;  %890 = vmatpush.bf16.msrb.mxu1 %v4123_v63  ;;  %v3999_v62 = vor.u32 %v4645_v49, %v3998_v48  ;;  %v4344_v63 = vld [vmem:[#allocation8 + $0x168] sm:$0xf0]  ;;  %6680 = vst [vmem:[#allocation15_spill] sm:$0xff] %v5164_v4  ;;  %v5166_v5 = vor.u32 %v4781_v59, %v4534_v58  ;;  %v4706_v48 = vld [vmem:[#allocation8 + $0x94] sm:$0xf] }
 0x119   :  { %v5168_v8 = vor.u32 %v4730_v60, %v4344_v63  ;;  %v4248_v49 = vld [vmem:[#allocation8 + $0xa8] sm:$0xf0]  ;;  %v4414_v58 = vld [vmem:[#allocation8 + $0x1e0] sm:$0xf]  ;;  %v4751_v59 = vld [vmem:[#allocation8 + $0x1f4] sm:$0xf0] }
 0x11a   :  { %v5220_v56 = vor.u32 %v4706_v48, %v4248_v49  ;;  %v4700_v60 = vld [vmem:[#allocation8 + $0x64] sm:$0xf]  ;;  %v4416_v63 = vld [vmem:[#allocation8 + $0x1f8] sm:$0xf0]  ;;  %v5228_v1 = vor.u32 %v4751_v59, %v4414_v58  ;;  %6706 = vst [vmem:[#allocation41_spill] sm:$0xff] %v5248_v43  ;;  %v5262_v58 = vperm.slane %v901_v26, 1 }
 0x11b   :  { %852 = vmatpush.bf16.msra.mxu2 %v3903_v6  ;;  %865 = vmatpush.bf16.msra.mxu3 %v4095_v7  ;;  %v4318_v6 = vld [vmem:[#allocation8 + $0x120] sm:$0xf]  ;;  %v4727_v7 = vld [vmem:[#allocation8 + $0x134] sm:$0xf0]  ;;  %6681 = vst [vmem:[#allocation16_spill] sm:$0xff] %v5168_v8 }
 0x11c   :  { %878 = vmatpush.bf16.msrb.mxu0 %v3907_v10  ;;  %891 = vmatpush.bf16.msrb.mxu1 %v4099_v11  ;;  %v4510_v10 = vld [vmem:[#allocation8 + $0x2a0] sm:$0xf]  ;;  %v4775_v11 = vld [vmem:[#allocation8 + $0x2b4] sm:$0xf0]  ;;  %v5174_v16 = vor.u32 %v4727_v7, %v4318_v6  ;;  %6696 = vst [vmem:[#allocation31_spill] sm:$0xff] %v5220_v56 }
 0x11d   :  { %805 = vmatmul.bf16.vlgmr.msrb.gmra.mxu2 %v5152_v30  ;;  %818 = vmatmul.bf16.vlgmr.msrb.gmra.mxu3 %v5154_v31  ;;  %v5176_v17 = vor.u32 %v4775_v11, %v4510_v10  ;;  %6699 = vst [vmem:[#allocation34_spill] sm:$0xff] %v5228_v1  ;;  %v4390_v10 = vld [vmem:[#allocation8 + $0x1b0] sm:$0xf]  ;;  %v4745_v11 = vld [vmem:[#allocation8 + $0x1c4] sm:$0xf0] }
 0x11e   :  { %831 = vmatmul.bf16.vlgmr.msra.gmra.mxu0 %v5152_v30  ;;  %844 = vmatmul.bf16.vlgmr.msra.gmra.mxu1 %v5154_v31  ;;  %6682 = vst [vmem:[#allocation17_spill] sm:$0xff] %v5174_v16  ;;  %v4736_v48 = vld [vmem:[#allocation8 + $0x184] sm:$0xf]  ;;  %v4368_v49 = vld [vmem:[#allocation8 + $0x198] sm:$0xf0] }
 0x11f   :  { %853 = vmatpush.bf16.msra.mxu2 %v3879_v18  ;;  %866 = vmatpush.bf16.msra.mxu3 %v4071_v19  ;;  %6683 = vst [vmem:[#allocation18_spill] sm:$0xff] %v5176_v17  ;;  %v4294_v18 = vld [vmem:[#allocation8 + $0xf0] sm:$0xf]  ;;  %v4721_v19 = vld [vmem:[#allocation8 + $0x104] sm:$0xf0] }
 0x120   :  { %879 = vmatpush.bf16.msrb.mxu0 %v3883_v22  ;;  %892 = vmatpush.bf16.msrb.mxu1 %v4075_v23  ;;  %v4486_v22 = vld [vmem:[#allocation8 + $0x270] sm:$0xf]  ;;  %v4769_v23 = vld [vmem:[#allocation8 + $0x284] sm:$0xf0]  ;;  %v5190_v28 = vor.u32 %v4721_v19, %v4294_v18  ;;  %v4174_v18 = vld [vmem:[#allocation8] sm:$0xf] }
 0x121   :  { %v5192_v29 = vor.u32 %v4769_v23, %v4486_v22  ;;  %v4691_v19 = vld [vmem:[#allocation8 + $0x14] sm:$0xf0]  ;;  %v5240_v23 = vor.u32 %v4745_v11, %v4390_v10  ;;  %6711 = vst [vmem:[#allocation46_spill] sm:$0xff] %v5262_v58  ;;  %v4776_v10 = vld [vmem:[#allocation8 + $0x2bc] sm:$0xf0]  ;;  %v5276_v11 = vor.u32 %v4779_v54, %v4544_v55 }
 0x122   :  { %6686 = vst [vmem:[#allocation21_spill] sm:$0xff] %v5190_v28  ;;  %v4328_v13 = vld [vmem:[#allocation8 + $0x140] sm:$0xf0]  ;;  %v4722_v26 = vld [vmem:[#allocation8 + $0x10c] sm:$0xf0] }
 0x123   :  { %854 = vmatpush.bf16.msra.mxu2 %v3855_v32  ;;  %867 = vmatpush.bf16.msra.mxu3 %v4047_v33  ;;  %6687 = vst [vmem:[#allocation22_spill] sm:$0xff] %v5192_v29  ;;  %v4270_v32 = vld [vmem:[#allocation8 + $0xc0] sm:$0xf]  ;;  %v4715_v33 = vld [vmem:[#allocation8 + $0xd4] sm:$0xf0] }
 0x124   :  { %880 = vmatpush.bf16.msrb.mxu0 %v3859_v36  ;;  %893 = vmatpush.bf16.msrb.mxu1 %v4051_v37  ;;  %v4712_v36 = vld [vmem:[#allocation8 + $0xc4] sm:$0xf]  ;;  %v4272_v37 = vld [vmem:[#allocation8 + $0xd8] sm:$0xf0]  ;;  %v5202_v40 = vor.u32 %v4715_v33, %v4270_v32  ;;  %6703 = vst [vmem:[#allocation38_spill] sm:$0xff] %v5240_v23  ;;  %v5246_v32 = vor.u32 %v4742_v14, %v4392_v15 }
 0x125   :  { %v5208_v44 = vor.u32 %v4712_v36, %v4272_v37  ;;  %v4688_v33 = vld [vmem:[#allocation8 + $0x4] sm:$0xf]  ;;  %v4734_v36 = vld [vmem:[#allocation8 + $0x16c] sm:$0xf0]  ;;  %v4542_v37 = vld [vmem:[#allocation8 + $0x2d8] sm:$0xf]  ;;  %v5282_v14 = vpack.c.bf16 %v5262_v58, %v5262_v58 }
 0x126   :  { %6690 = vst [vmem:[#allocation25_spill] sm:$0xff] %v5202_v40  ;;  %v4278_v54 = vld [vmem:[#allocation8 + $0xc8] sm:$0xf]  ;;  %v4716_v55 = vld [vmem:[#allocation8 + $0xdc] sm:$0xf0] }
 0x127   :  { %855 = vmatpush.bf16.msra.mxu2 %v3831_v45  ;;  %868 = vmatpush.bf16.msra.mxu3 %v4023_v46  ;;  %6692 = vst [vmem:[#allocation27_spill] sm:$0xff] %v5208_v44  ;;  %v5210_v45 = vor.u32 %v4760_v38, %v4464_v39  ;;  %v4438_v46 = vld [vmem:[#allocation8 + $0x210] sm:$0xf]  ;;  %v4731_v39 = vld [vmem:[#allocation8 + $0x15c] sm:$0xf] }
 0x128   :  { %881 = vmatpush.bf16.msrb.mxu0 %v3835_v50  ;;  %894 = vmatpush.bf16.msrb.mxu1 %v4027_v51  ;;  %v4754_v50 = vld [vmem:[#allocation8 + $0x214] sm:$0xf]  ;;  %v4440_v51 = vld [vmem:[#allocation8 + $0x228] sm:$0xf0]  ;;  %v5216_v53 = vor.u32 %v4757_v47, %v4438_v46  ;;  %6705 = vst [vmem:[#allocation40_spill] sm:$0xff] %v5246_v32  ;;  %v5252_v46 = vor.u32 %v4691_v19, %v4174_v18 }
 0x129   :  { %6693 = vst [vmem:[#allocation28_spill] sm:$0xff] %v5210_v45  ;;  %v5222_v57 = vor.u32 %v4754_v50, %v4440_v51  ;;  %v4782_v38 = vld [vmem:[#allocation8 + $0x2ec] sm:$0xf0]  ;;  %v5254_v47 = vor.u32 %v4739_v25, %v4366_v24  ;;  %v4773_v18 = vld [vmem:[#allocation8 + $0x2ac] sm:$0xf] }
 0x12a   :  { %6695 = vst [vmem:[#allocation30_spill] sm:$0xff] %v5216_v53  ;;  %v5264_v59 = vor.u32 %v4782_v38, %v4542_v37  ;;  %v4520_v19 = vld [vmem:[#allocation8 + $0x2c0] sm:$0xf0]  ;;  %v4302_v25 = vld [vmem:[#allocation8 + $0xf8] sm:$0xf] }
 0x12b   :  { %856 = vmatpush.bf16.msra.mxu2 %v3807_v61  ;;  %869 = vmatpush.bf16.msra.mxu3 %v3999_v62  ;;  %6697 = vst [vmem:[#allocation32_spill] sm:$0xff] %v5222_v57  ;;  %v4224_v61 = vld [vmem:[#allocation8 + $0x78] sm:$0xf0]  ;;  %v4748_v62 = vld [vmem:[#allocation8 + $0x1e4] sm:$0xf] }
 0x12c   :  { %882 = vmatpush.bf16.msrb.mxu0 %v3811_v2  ;;  %895 = vmatpush.bf16.msrb.mxu1 %v4003_v3  ;;  %v4198_v2 = vld [vmem:[#allocation8 + $0x30] sm:$0xf]  ;;  %v4697_v3 = vld [vmem:[#allocation8 + $0x44] sm:$0xf0]  ;;  %v5232_v6 = vor.u32 %v4700_v60, %v4224_v61  ;;  %v5234_v7 = vor.u32 %v4748_v62, %v4416_v63  ;;  %6707 = vst [vmem:[#allocation42_spill] sm:$0xff] %v5252_v46 }
 0x12d   :  { %v5238_v22 = vor.u32 %v4697_v3, %v4198_v2  ;;  %6708 = vst [vmem:[#allocation43_spill] sm:$0xff] %v5254_v47  ;;  %v5266_v60 = vor.u32 %v4731_v39, %v4352_v42  ;;  %v4326_v61 = vld [vmem:[#allocation8 + $0x128] sm:$0xf]  ;;  %v4728_v62 = vld [vmem:[#allocation8 + $0x13c] sm:$0xf0]  ;;  %v5268_v63 = vor.u32 %v4736_v48, %v4368_v49  ;;  %v5272_v2 = vpack.c.bf16 %v5248_v43, %v5248_v43 }
 0x12e   :  { %857 = vmatmul.bf16.vlgmr.msra.gmra.mxu2 %v5152_v30  ;;  %870 = vmatmul.bf16.vlgmr.msra.gmra.mxu3 %v5154_v31  ;;  %6700 = vst [vmem:[#allocation35_spill] sm:$0xff] %v5232_v6  ;;  %v4518_v3 = vld [vmem:[#allocation8 + $0x2a8] sm:$0xf]  ;;  %v5284_v15 = vor.u32 %v4728_v62, %v4326_v61  ;;  %v4719_v37 = vld [vmem:[#allocation8 + $0xfc] sm:$0xf]  ;;  %v5300_v39 = vor.u32 %v4722_v26, %v4302_v25 }
 0x12f   :  { %1499 = vmatpush.bf16.msrb.mxu2 %v5164_v4  ;;  %1512 = vmatpush.bf16.msrb.mxu3 %v5166_v5  ;;  %6701 = vst [vmem:[#allocation36_spill] sm:$0xff] %v5234_v7  ;;  %v5288_v24 = vor.u32 %v4776_v10, %v4518_v3  ;;  %v4304_v38 = vld [vmem:[#allocation8 + $0x110] sm:$0xf0]  ;;  %v4767_v42 = vld [vmem:[#allocation8 + $0x27c] sm:$0xf] }
 0x130   :  { %1525 = vmatpush.bf16.msra.mxu0 %v5168_v8  ;;  %1538 = vmatpush.bf16.msra.mxu1 %v5170_v9  ;;  %6702 = vst [vmem:[#allocation37_spill] sm:$0xff] %v5238_v22  ;;  %v4496_v48 = vld [vmem:[#allocation8 + $0x290] sm:$0xf0]  ;;  %v5307_v61 = vor.u32 %v4719_v37, %v4304_v38  ;;  %v4470_v62 = vld [vmem:[#allocation8 + $0x248] sm:$0xf] }
 0x131   :  { %883 = vmatmul.bf16.vlgmr.msrb.gmra.mxu0 %v5152_v30  ;;  %896 = vmatmul.bf16.vlgmr.msrb.gmra.mxu1 %v5154_v31  ;;  %v4462_v30 = vld [vmem:[#allocation8 + $0x240] sm:$0xf]  ;;  %v4763_v31 = vld [vmem:[#allocation8 + $0x254] sm:$0xf0]  ;;  %6712 = vst [vmem:[#allocation47_spill] sm:$0xff] %v5264_v59  ;;  %v5310_v10 = vor.u32 %v4767_v42, %v4496_v48 }
 0x132   :  { %v5204_v41 = vor.u32 %v4763_v31, %v4462_v30  ;;  %v4176_v30 = vld [vmem:[#allocation8 + $0x18] sm:$0xf0]  ;;  %v4350_v31 = vld [vmem:[#allocation8 + $0x158] sm:$0xf]  ;;  %6713 = vst [vmem:[#allocation48_spill] sm:$0xff] %v5266_v60 }
 0x133   :  { %1500 = vmatpush.bf16.msrb.mxu2 %v5174_v16  ;;  %1513 = vmatpush.bf16.msrb.mxu3 %v5176_v17  ;;  %v5258_v50 = vor.u32 %v4688_v33, %v4176_v30  ;;  %v5260_v51 = vor.u32 %v4734_v36, %v4350_v31  ;;  %6714 = vst [vmem:[#allocation49_spill] sm:$0xff] %v5268_v63  ;;  %v4494_v30 = vld [vmem:[#allocation8 + $0x278] sm:$0xf]  ;;  %v4770_v31 = vld [vmem:[#allocation8 + $0x28c] sm:$0xf0] }
 0x134   :  { %1526 = vmatpush.bf16.msra.mxu0 %v5180_v20  ;;  %1539 = vmatpush.bf16.msra.mxu1 %v5182_v21  ;;  %6691 = vst [vmem:[#allocation26_spill] sm:$0xff] %v5204_v41  ;;  %v5292_v33 = vor.u32 %v4725_v12, %v4328_v13  ;;  %v5296_v36 = vor.u32 %v4773_v18, %v4520_v19  ;;  %v4764_v3 = vld [vmem:[#allocation8 + $0x25c] sm:$0xf0]  ;;  %v4713_v12 = vld [vmem:[#allocation8 + $0xcc] sm:$0xf] }
 0x135   :  { %6709 = vst [vmem:[#allocation44_spill] sm:$0xff] %v5258_v50  ;;  %v5304_v49 = vor.u32 %v4770_v31, %v4494_v30  ;;  %v4280_v13 = vld [vmem:[#allocation8 + $0xe0] sm:$0xf0]  ;;  %v5313_v18 = vor.u32 %v4716_v55, %v4278_v54  ;;  %v4761_v19 = vld [vmem:[#allocation8 + $0x24c] sm:$0xf]  ;;  %v5316_v26 = vor.u32 %v4764_v3, %v4470_v62 }
 0x136   :  { %6710 = vst [vmem:[#allocation45_spill] sm:$0xff] %v5260_v51  ;;  %v4472_v25 = vld [vmem:[#allocation8 + $0x260] sm:$0xf0]  ;;  %v4254_v30 = vld [vmem:[#allocation8 + $0x98] sm:$0xf]  ;;  %v5319_v37 = vor.u32 %v4713_v12, %v4280_v13 }
 0x137   :  { %1501 = vmatpush.bf16.msrb.mxu2 %v5190_v28  ;;  %1514 = vmatpush.bf16.msrb.mxu3 %v5192_v29  ;;  %6715 = vst [vmem:[#allocation50_spill] sm:$0xff] %v5276_v11  ;;  %v4710_v31 = vld [vmem:[#allocation8 + $0xac] sm:$0xf0]  ;;  %v4446_v38 = vld [vmem:[#allocation8 + $0x218] sm:$0xf]  ;;  %v5322_v48 = vor.u32 %v4761_v19, %v4472_v25 }
 0x138   :  { %1527 = vmatpush.bf16.msra.mxu0 %v5196_v34  ;;  %1540 = vmatpush.bf16.msra.mxu1 %v5198_v35  ;;  %6716 = vst [vmem:[#allocation51_spill] sm:$0xff] %v5284_v15  ;;  %v4758_v42 = vld [vmem:[#allocation8 + $0x22c] sm:$0xf0]  ;;  %v4707_v54 = vld [vmem:[#allocation8 + $0x9c] sm:$0xf]  ;;  %v5325_v43 = vor.u32 %v4710_v31, %v4254_v30 }
 0x139   :  { %6717 = vst [vmem:[#allocation52_spill] sm:$0xff] %v5288_v24  ;;  %v4256_v55 = vld [vmem:[#allocation8 + $0xb0] sm:$0xf0]  ;;  %v4755_v62 = vld [vmem:[#allocation8 + $0x21c] sm:$0xf]  ;;  %v5328_v58 = vor.u32 %v4758_v42, %v4446_v38 }
 0x13a   :  { %6718 = vst [vmem:[#allocation53_spill] sm:$0xff] %v5292_v33  ;;  %v4448_v3 = vld [vmem:[#allocation8 + $0x230] sm:$0xf0]  ;;  %v4230_v12 = vld [vmem:[#allocation8 + $0x68] sm:$0xf] }
 0x13b   :  { %1502 = vmatpush.bf16.msrb.mxu2 %v5202_v40  ;;  %1515 = vmatpush.bf16.msrb.mxu3 %v5204_v41  ;;  %6719 = vst [vmem:[#allocation54_spill] sm:$0xff] %v5296_v36  ;;  %v4704_v13 = vld [vmem:[#allocation8 + $0x7c] sm:$0xf0]  ;;  %v4422_v19 = vld [vmem:[#allocation8 + $0x1e8] sm:$0xf] }
 0x13c   :  { %1528 = vmatpush.bf16.msra.mxu0 %v5208_v44  ;;  %1541 = vmatpush.bf16.msra.mxu1 %v5210_v45  ;;  %6720 = vst [vmem:[#allocation55_spill] sm:$0xff] %v5300_v39  ;;  %v4752_v25 = vld [vmem:[#allocation8 + $0x1fc] sm:$0xf0]  ;;  %v4701_v30 = vld [vmem:[#allocation8 + $0x6c] sm:$0xf] }
 0x13d   :  { %6721 = vst [vmem:[#allocation56_spill] sm:$0xff] %v5304_v49  ;;  %v4232_v31 = vld [vmem:[#allocation8 + $0x80] sm:$0xf0]  ;;  %v4749_v38 = vld [vmem:[#allocation8 + $0x1ec] sm:$0xf] }
 0x13e   :  { %6722 = vst [vmem:[#allocation57_spill] sm:$0xff] %v5307_v61  ;;  %v4424_v42 = vld [vmem:[#allocation8 + $0x200] sm:$0xf0] }
 0x13f   :  { %1503 = vmatpush.bf16.msrb.mxu2 %v5214_v52  ;;  %1516 = vmatpush.bf16.msrb.mxu3 %v5216_v53  ;;  %6723 = vst [vmem:[#allocation58_spill] sm:$0xff] %v5310_v10 }
 0x140   :  { %1529 = vmatpush.bf16.msra.mxu0 %v5220_v56  ;;  %1542 = vmatpush.bf16.msra.mxu1 %v5222_v57  ;;  %6724 = vst [vmem:[#allocation59_spill] sm:$0xff] %v5313_v18 }
 0x141   :  { %6725 = vst [vmem:[#allocation60_spill] sm:$0xff] %v5316_v26 }
 0x142   :  { %6726 = vst [vmem:[#allocation61_spill] sm:$0xff] %v5319_v37 }
 0x143   :  { %1504 = vmatpush.bf16.msrb.mxu2 %v5226_v0  ;;  %1517 = vmatpush.bf16.msrb.mxu3 %v5228_v1  ;;  %6727 = vst [vmem:[#allocation62_spill] sm:$0xff] %v5322_v48 }
 0x144   :  { %1530 = vmatpush.bf16.msra.mxu0 %v5232_v6  ;;  %1543 = vmatpush.bf16.msra.mxu1 %v5234_v7  ;;  %6728 = vst [vmem:[#allocation63_spill] sm:$0xff] %v5325_v43 }
 0x145   :  { %6729 = vst [vmem:[#allocation64_spill] sm:$0xff] %v5328_v58 }
 0x147   :  { %1505 = vmatpush.bf16.msrb.mxu2 %v5238_v22  ;;  %1518 = vmatpush.bf16.msrb.mxu3 %v5240_v23 }
 0x148   :  { %1531 = vmatpush.bf16.msra.mxu0 %v5244_v27  ;;  %1544 = vmatpush.bf16.msra.mxu1 %v5246_v32 }
 0x14b   :  { %1506 = vmatpush.bf16.msrb.mxu2 %v5252_v46  ;;  %1519 = vmatpush.bf16.msrb.mxu3 %v5254_v47 }
 0x14c   :  { %1532 = vmatpush.bf16.msra.mxu0 %v5258_v50  ;;  %1545 = vmatpush.bf16.msra.mxu1 %v5268_v63 }
 0x14e   :  { %1507 = vmatmul.bf16.vlgmr.msrb.gmra.mxu2 %v5272_v2  ;;  %1520 = vmatmul.bf16.vlgmr.msrb.gmra.mxu3 %v5282_v14 }
 0x14f   :  { %1551 = vmatpush.bf16.msra.mxu2 %v5260_v51  ;;  %1564 = vmatpush.bf16.msra.mxu3 %v5264_v59 }
 0x150   :  { %1577 = vmatpush.bf16.msrb.mxu0 %v5266_v60  ;;  %1590 = vmatpush.bf16.msrb.mxu1 %v5276_v11 }
 0x151   :  { %1533 = vmatmul.bf16.vlgmr.msra.gmra.mxu0 %v5272_v2  ;;  %1546 = vmatmul.bf16.vlgmr.msra.gmra.mxu1 %v5282_v14 }
 0x153   :  { %1552 = vmatpush.bf16.msra.mxu2 %v5284_v15  ;;  %1565 = vmatpush.bf16.msra.mxu3 %v5288_v24  ;;  %v4732_v15 = vld [vmem:[#allocation8 + $0x164] sm:$0xf] }
 0x154   :  { %1578 = vmatpush.bf16.msrb.mxu0 %v5292_v33  ;;  %1591 = vmatpush.bf16.msrb.mxu1 %v5296_v36  ;;  %v4689_v33 = vld [vmem:[#allocation8 + $0xc] sm:$0xf]  ;;  %v4376_v36 = vld [vmem:[#allocation8 + $0x1a0] sm:$0xf0] }
 0x157   :  { %1553 = vmatpush.bf16.msra.mxu2 %v5300_v39  ;;  %1566 = vmatpush.bf16.msra.mxu3 %v5304_v49  ;;  %v5334_v39 = vor.u32 %v4755_v62, %v4448_v3  ;;  %v4398_v62 = vld [vmem:[#allocation8 + $0x1b8] sm:$0xf]  ;;  %v4746_v3 = vld [vmem:[#allocation8 + $0x1cc] sm:$0xf0] }
 0x158   :  { %1579 = vmatpush.bf16.msrb.mxu0 %v5307_v61  ;;  %1592 = vmatpush.bf16.msrb.mxu1 %v5310_v10  ;;  %v5331_v61 = vor.u32 %v4707_v54, %v4256_v55  ;;  %v4206_v54 = vld [vmem:[#allocation8 + $0x38] sm:$0xf]  ;;  %v4698_v55 = vld [vmem:[#allocation8 + $0x4c] sm:$0xf0]  ;;  %v4692_v10 = vld [vmem:[#allocation8 + $0x1c] sm:$0xf0] }
 0x159   :  { %6731 = vst [vmem:[#allocation66_spill] sm:$0xff] %v5334_v39  ;;  %v4735_v49 = vld [vmem:[#allocation8 + $0x174] sm:$0xf0] }
 0x15a   :  { %6730 = vst [vmem:[#allocation65_spill] sm:$0xff] %v5331_v61 }
 0x15b   :  { %1554 = vmatpush.bf16.msra.mxu2 %v5313_v18  ;;  %1567 = vmatpush.bf16.msra.mxu3 %v5316_v26  ;;  %v5337_v18 = vor.u32 %v4704_v13, %v4230_v12  ;;  %v5340_v26 = vor.u32 %v4752_v25, %v4422_v19  ;;  %v4695_v12 = vld [vmem:[#allocation8 + $0x3c] sm:$0xf]  ;;  %v4208_v13 = vld [vmem:[#allocation8 + $0x50] sm:$0xf0]  ;;  %v4182_v25 = vld [vmem:[#allocation8 + $0x8] sm:$0xf] }
 0x15c   :  { %1580 = vmatpush.bf16.msrb.mxu0 %v5319_v37  ;;  %1593 = vmatpush.bf16.msrb.mxu1 %v5322_v48  ;;  %v5343_v37 = vor.u32 %v4701_v30, %v4232_v31  ;;  %v5346_v48 = vor.u32 %v4749_v38, %v4424_v42  ;;  %v4400_v19 = vld [vmem:[#allocation8 + $0x1d0] sm:$0xf0]  ;;  %v5352_v30 = vor.u32 %v4746_v3, %v4398_v62  ;;  %v4374_v31 = vld [vmem:[#allocation8 + $0x188] sm:$0xf]  ;;  %v4184_v42 = vld [vmem:[#allocation8 + $0x20] sm:$0xf0] }
 0x15d   :  { %6732 = vst [vmem:[#allocation67_spill] sm:$0xff] %v5337_v18  ;;  %v5355_v38 = vor.u32 %v4695_v12, %v4208_v13  ;;  %v5361_v62 = vor.u32 %v4692_v10, %v4182_v25  ;;  %v4360_v3 = vld [vmem:[#allocation8 + $0x178] sm:$0xf0] }
 0x15e   :  { %6733 = vst [vmem:[#allocation68_spill] sm:$0xff] %v5340_v26  ;;  %v5374_v10 = vor.u32 %v4732_v15, %v4360_v3  ;;  %v4771_v3 = vld [vmem:[#allocation8 + $0x294] sm:$0xf0] }
 0x15f   :  { %1555 = vmatpush.bf16.msra.mxu2 %v5325_v43  ;;  %1568 = vmatpush.bf16.msra.mxu3 %v5328_v58  ;;  %6734 = vst [vmem:[#allocation69_spill] sm:$0xff] %v5343_v37  ;;  %v4743_v43 = vld [vmem:[#allocation8 + $0x1bc] sm:$0xf]  ;;  %v5349_v58 = vor.u32 %v4698_v55, %v4206_v54  ;;  %v4550_v55 = vld [vmem:[#allocation8 + $0x2e0] sm:$0xf] }
 0x160   :  { %1581 = vmatpush.bf16.msrb.mxu0 %v5331_v61  ;;  %1594 = vmatpush.bf16.msrb.mxu1 %v5334_v39  ;;  %6735 = vst [vmem:[#allocation70_spill] sm:$0xff] %v5346_v48  ;;  %v4740_v61 = vld [vmem:[#allocation8 + $0x19c] sm:$0xf0]  ;;  %v5358_v54 = vor.u32 %v4743_v43, %v4400_v19  ;;  %v5369_v43 = vor.u32 %v4689_v33, %v4184_v42  ;;  %v4774_v33 = vld [vmem:[#allocation8 + $0x2b4] sm:$0xf] }
 0x161   :  { %6736 = vst [vmem:[#allocation71_spill] sm:$0xff] %v5349_v58  ;;  %v4358_v39 = vld [vmem:[#allocation8 + $0x160] sm:$0xf]  ;;  %v5364_v12 = vor.u32 %v4740_v61, %v4374_v31  ;;  %v4526_v61 = vld [vmem:[#allocation8 + $0x2b0] sm:$0xf] }
 0x162   :  { %6737 = vst [vmem:[#allocation72_spill] sm:$0xff] %v5352_v30  ;;  %v5366_v13 = vor.u32 %v4735_v49, %v4358_v39  ;;  %v4777_v49 = vld [vmem:[#allocation8 + $0x2c4] sm:$0xf0]  ;;  %v4726_v31 = vld [vmem:[#allocation8 + $0x134] sm:$0xf] }
 0x163   :  { %1556 = vmatpush.bf16.msra.mxu2 %v5337_v18  ;;  %1569 = vmatpush.bf16.msra.mxu3 %v5340_v26  ;;  %6738 = vst [vmem:[#allocation73_spill] sm:$0xff] %v5355_v38  ;;  %v4783_v18 = vld [vmem:[#allocation8 + $0x2f4] sm:$0xf0]  ;;  %v4737_v26 = vld [vmem:[#allocation8 + $0x18c] sm:$0xf] }
 0x164   :  { %1582 = vmatpush.bf16.msrb.mxu0 %v5343_v37  ;;  %1595 = vmatpush.bf16.msrb.mxu1 %v5346_v48  ;;  %6739 = vst [vmem:[#allocation74_spill] sm:$0xff] %v5358_v54  ;;  %v4780_v37 = vld [vmem:[#allocation8 + $0x2e4] sm:$0xf]  ;;  %v4552_v48 = vld [vmem:[#allocation8 + $0x2f8] sm:$0xf0]  ;;  %v5371_v19 = vor.u32 %v4783_v18, %v4550_v55  ;;  %v5376_v25 = vor.u32 %v4737_v26, %v4376_v36 }
 0x165   :  { %6740 = vst [vmem:[#allocation75_spill] sm:$0xff] %v5361_v62  ;;  %v5379_v39 = vor.u32 %v4780_v37, %v4552_v48  ;;  %v4528_v18 = vld [vmem:[#allocation8 + $0x2c8] sm:$0xf0]  ;;  %v5389_v36 = vor.u32 %v4777_v49, %v4526_v61  ;;  %v4310_v37 = vld [vmem:[#allocation8 + $0x100] sm:$0xf] }
 0x166   :  { %6741 = vst [vmem:[#allocation76_spill] sm:$0xff] %v5364_v12  ;;  %v4723_v48 = vld [vmem:[#allocation8 + $0x114] sm:$0xf0]  ;;  %v4502_v42 = vld [vmem:[#allocation8 + $0x280] sm:$0xf]  ;;  %v5395_v55 = vor.u32 %v4774_v33, %v4528_v18 }
 0x167   :  { %1557 = vmatpush.bf16.msra.mxu2 %v5349_v58  ;;  %1570 = vmatpush.bf16.msra.mxu3 %v5352_v30  ;;  %6742 = vst [vmem:[#allocation77_spill] sm:$0xff] %v5366_v13  ;;  %v4334_v58 = vld [vmem:[#allocation8 + $0x130] sm:$0xf]  ;;  %v4729_v30 = vld [vmem:[#allocation8 + $0x144] sm:$0xf0] }
 0x168   :  { %1583 = vmatpush.bf16.msrb.mxu0 %v5355_v38  ;;  %6743 = vst [vmem:[#allocation78_spill] sm:$0xff] %v5369_v43  ;;  %1596 = vmatpush.bf16.msrb.mxu1 %v5358_v54  ;;  %v4336_v38 = vld [vmem:[#allocation8 + $0x148] sm:$0xf0]  ;;  %v5385_v15 = vor.u32 %v4729_v30, %v4334_v58  ;;  %v4720_v58 = vld [vmem:[#allocation8 + $0x104] sm:$0xf] }
 0x169   :  { %6744 = vst [vmem:[#allocation79_spill] sm:$0xff] %v5371_v19  ;;  %v5391_v26 = vor.u32 %v4726_v31, %v4336_v38  ;;  %v4312_v30 = vld [vmem:[#allocation8 + $0x118] sm:$0xf0]  ;;  %v4768_v61 = vld [vmem:[#allocation8 + $0x284] sm:$0xf]  ;;  %v5401_v38 = vor.u32 %v4723_v48, %v4310_v37  ;;  %v5405_v31 = vor.u32 %v4771_v3, %v4502_v42 }
 0x16a   :  { %6745 = vst [vmem:[#allocation80_spill] sm:$0xff] %v5374_v10  ;;  %v4504_v49 = vld [vmem:[#allocation8 + $0x298] sm:$0xf0]  ;;  %v5407_v33 = vor.u32 %v4720_v58, %v4312_v30  ;;  %v4286_v18 = vld [vmem:[#allocation8 + $0xd0] sm:$0xf] }
 0x16b   :  { %6746 = vst [vmem:[#allocation81_spill] sm:$0xff] %v5376_v25  ;;  %1558 = vmatpush.bf16.msra.mxu2 %v5361_v62  ;;  %1571 = vmatpush.bf16.msra.mxu3 %v5364_v12  ;;  %v4762_v37 = vld [vmem:[#allocation8 + $0x254] sm:$0xf]  ;;  %v4480_v48 = vld [vmem:[#allocation8 + $0x268] sm:$0xf0] }
 0x16c   :  { %6747 = vst [vmem:[#allocation82_spill] sm:$0xff] %v5379_v39  ;;  %1584 = vmatpush.bf16.msrb.mxu0 %v5369_v43  ;;  %1597 = vmatpush.bf16.msrb.mxu1 %v5376_v25  ;;  %v4714_v43 = vld [vmem:[#allocation8 + $0xd4] sm:$0xf]  ;;  %v4262_v58 = vld [vmem:[#allocation8 + $0xa0] sm:$0xf] }
 0x16d   :  { %6748 = vst [vmem:[#allocation83_spill] sm:$0xff] %v5385_v15  ;;  %v4711_v30 = vld [vmem:[#allocation8 + $0xb4] sm:$0xf0] }
 0x16e   :  { %6749 = vst [vmem:[#allocation84_spill] sm:$0xff] %v5389_v36  ;;  %1559 = vmatmul.bf16.vlgmr.msra.gmra.mxu2 %v5272_v2  ;;  %1572 = vmatmul.bf16.vlgmr.msra.gmra.mxu3 %v5282_v14 }
 0x16f   :  { %1603 = vmatpush.bf16.msrb.mxu2 %v5366_v13  ;;  %1616 = vmatpush.bf16.msrb.mxu3 %v5371_v19  ;;  %6750 = vst [vmem:[#allocation85_spill] sm:$0xff] %v5391_v26  ;;  %v4478_v13 = vld [vmem:[#allocation8 + $0x250] sm:$0xf]  ;;  %v4765_v19 = vld [vmem:[#allocation8 + $0x264] sm:$0xf0] }
 0x170   :  { %1629 = vmatpush.bf16.msra.mxu0 %v5374_v10  ;;  %1642 = vmatpush.bf16.msra.mxu1 %v5379_v39  ;;  %6751 = vst [vmem:[#allocation86_spill] sm:$0xff] %v5395_v55  ;;  %v4717_v10 = vld [vmem:[#allocation8 + $0xe4] sm:$0xf0]  ;;  %v5410_v39 = vor.u32 %v4768_v61, %v4504_v49  ;;  %v5417_v42 = vor.u32 %v4765_v19, %v4478_v13  ;;  %v4454_v61 = vld [vmem:[#allocation8 + $0x220] sm:$0xf] }
 0x171   :  { %1585 = vmatmul.bf16.vlgmr.msrb.gmra.mxu0 %v5272_v2  ;;  %1598 = vmatmul.bf16.vlgmr.msrb.gmra.mxu1 %v5282_v14  ;;  %6752 = vst [vmem:[#allocation87_spill] sm:$0xff] %v5401_v38  ;;  %v5422_v49 = vor.u32 %v4762_v37, %v4480_v48  ;;  %v4238_v19 = vld [vmem:[#allocation8 + $0x70] sm:$0xf] }
 0x172   :  { %6753 = vst [vmem:[#allocation88_spill] sm:$0xff] %v5405_v31  ;;  %v4430_v37 = vld [vmem:[#allocation8 + $0x1f0] sm:$0xf] }
 0x173   :  { %1604 = vmatpush.bf16.msrb.mxu2 %v5385_v15  ;;  %1617 = vmatpush.bf16.msrb.mxu3 %v5389_v36  ;;  %6754 = vst [vmem:[#allocation89_spill] sm:$0xff] %v5407_v33  ;;  %v4288_v15 = vld [vmem:[#allocation8 + $0xe8] sm:$0xf0]  ;;  %v5413_v36 = vor.u32 %v4717_v10, %v4286_v18  ;;  %v4756_v10 = vld [vmem:[#allocation8 + $0x224] sm:$0xf] }
 0x174   :  { %1630 = vmatpush.bf16.msra.mxu0 %v5391_v26  ;;  %1643 = vmatpush.bf16.msra.mxu1 %v5395_v55  ;;  %6755 = vst [vmem:[#allocation90_spill] sm:$0xff] %v5410_v39  ;;  %v5419_v3 = vor.u32 %v4714_v43, %v4288_v15  ;;  %v4759_v26 = vld [vmem:[#allocation8 + $0x234] sm:$0xf0]  ;;  %v4708_v55 = vld [vmem:[#allocation8 + $0xa4] sm:$0xf] }
 0x175   :  { %6756 = vst [vmem:[#allocation91_spill] sm:$0xff] %v5413_v36  ;;  %v4456_v18 = vld [vmem:[#allocation8 + $0x238] sm:$0xf0]  ;;  %v5429_v13 = vor.u32 %v4759_v26, %v4454_v61  ;;  %v4705_v15 = vld [vmem:[#allocation8 + $0x84] sm:$0xf0] }
 0x176   :  { %6757 = vst [vmem:[#allocation92_spill] sm:$0xff] %v5417_v42  ;;  %v5434_v48 = vor.u32 %v4756_v10, %v4456_v18  ;;  %v4699_v61 = vld [vmem:[#allocation8 + $0x54] sm:$0xf0]  ;;  %v4406_v10 = vld [vmem:[#allocation8 + $0x1c0] sm:$0xf] }
 0x177   :  { %1605 = vmatpush.bf16.msrb.mxu2 %v5401_v38  ;;  %1618 = vmatpush.bf16.msrb.mxu3 %v5405_v31  ;;  %6758 = vst [vmem:[#allocation93_spill] sm:$0xff] %v5419_v3  ;;  %v4264_v38 = vld [vmem:[#allocation8 + $0xb8] sm:$0xf0]  ;;  %v5425_v31 = vor.u32 %v4711_v30, %v4262_v58  ;;  %v4750_v58 = vld [vmem:[#allocation8 + $0x1f4] sm:$0xf] }
 0x178   :  { %1631 = vmatpush.bf16.msra.mxu0 %v5407_v33  ;;  %1644 = vmatpush.bf16.msra.mxu1 %v5410_v39  ;;  %6759 = vst [vmem:[#allocation94_spill] sm:$0xff] %v5422_v49  ;;  %v5431_v43 = vor.u32 %v4708_v55, %v4264_v38  ;;  %v4753_v33 = vld [vmem:[#allocation8 + $0x204] sm:$0xf0]  ;;  %v4702_v39 = vld [vmem:[#allocation8 + $0x74] sm:$0xf] }
 0x179   :  { %6760 = vst [vmem:[#allocation95_spill] sm:$0xff] %v5425_v31  ;;  %v4432_v30 = vld [vmem:[#allocation8 + $0x208] sm:$0xf0]  ;;  %v5441_v26 = vor.u32 %v4753_v33, %v4430_v37  ;;  %v4214_v38 = vld [vmem:[#allocation8 + $0x40] sm:$0xf] }
 0x17a   :  { %6761 = vst [vmem:[#allocation96_spill] sm:$0xff] %v5429_v13  ;;  %v5446_v18 = vor.u32 %v4750_v58, %v4432_v30  ;;  %v4190_v33 = vld [vmem:[#allocation8 + $0x10] sm:$0xf]  ;;  %v4693_v37 = vld [vmem:[#allocation8 + $0x24] sm:$0xf0] }
 0x17b   :  { %1606 = vmatpush.bf16.msrb.mxu2 %v5413_v36  ;;  %1619 = vmatpush.bf16.msrb.mxu3 %v5417_v42  ;;  %6762 = vst [vmem:[#allocation97_spill] sm:$0xff] %v5431_v43  ;;  %v4240_v36 = vld [vmem:[#allocation8 + $0x88] sm:$0xf0]  ;;  %v5437_v42 = vor.u32 %v4705_v15, %v4238_v19  ;;  %v4744_v19 = vld [vmem:[#allocation8 + $0x1c4] sm:$0xf] }
 0x17c   :  { %1632 = vmatpush.bf16.msra.mxu0 %v5419_v3  ;;  %1645 = vmatpush.bf16.msra.mxu1 %v5422_v49  ;;  %6763 = vst [vmem:[#allocation98_spill] sm:$0xff] %v5434_v48  ;;  %v5443_v55 = vor.u32 %v4702_v39, %v4240_v36  ;;  %v4747_v3 = vld [vmem:[#allocation8 + $0x1d4] sm:$0xf0]  ;;  %v4696_v49 = vld [vmem:[#allocation8 + $0x44] sm:$0xf] }
 0x17d   :  { %6764 = vst [vmem:[#allocation99_spill] sm:$0xff] %v5437_v42  ;;  %v4408_v15 = vld [vmem:[#allocation8 + $0x1d8] sm:$0xf0]  ;;  %v5453_v39 = vor.u32 %v4747_v3, %v4406_v10  ;;  %v4382_v58 = vld [vmem:[#allocation8 + $0x190] sm:$0xf] }
 0x17e   :  { %6765 = vst [vmem:[#allocation100_spill] sm:$0xff] %v5441_v26  ;;  %v5458_v30 = vor.u32 %v4744_v19, %v4408_v15  ;;  %v5478_v10 = vld [vmem:[%s6483_s5] sm:$0x3f] }
 0x17f   :  { %1607 = vmatpush.bf16.msrb.mxu2 %v5425_v31  ;;  %1620 = vmatpush.bf16.msrb.mxu3 %v5429_v13  ;;  %v4216_v31 = vld [vmem:[#allocation8 + $0x58] sm:$0xf0]  ;;  %v5449_v13 = vor.u32 %v4699_v61, %v4214_v38  ;;  %v4738_v38 = vld [vmem:[#allocation8 + $0x194] sm:$0xf]  ;;  %v4384_v61 = vld [vmem:[#allocation8 + $0x1a8] sm:$0xf0] }
 0x180   :  { %1633 = vmatpush.bf16.msra.mxu0 %v5431_v43  ;;  %1646 = vmatpush.bf16.msra.mxu1 %v5434_v48  ;;  %v5455_v36 = vor.u32 %v4696_v49, %v4216_v31  ;;  %v4741_v43 = vld [vmem:[#allocation8 + $0x1a4] sm:$0xf0]  ;;  %v4690_v48 = vld [vmem:[#allocation8 + $0x14] sm:$0xf]  ;;  %v5470_v49 = vor.u32 %v4738_v38, %v4384_v61  ;;  %v253_v15 = vperm.slane %v5478_v10, 0 }
 0x181   :  { %v5465_v31 = vor.u32 %v4741_v43, %v4382_v58 }
 0x182   :  { %6766 = vst [vmem:[#allocation101_spill] sm:$0xff] %v5455_v36 }
 0x183   :  { %1608 = vmatpush.bf16.msrb.mxu2 %v5437_v42  ;;  %1621 = vmatpush.bf16.msrb.mxu3 %v5441_v26  ;;  %v4192_v42 = vld [vmem:[#allocation8 + $0x28] sm:$0xf0]  ;;  %v5461_v26 = vor.u32 %v4693_v37, %v4190_v33 }
 0x184   :  { %1634 = vmatpush.bf16.msra.mxu0 %v5443_v55  ;;  %1647 = vmatpush.bf16.msra.mxu1 %v5446_v18  ;;  %v5467_v3 = vor.u32 %v4690_v48, %v4192_v42  ;;  %v254_v42 = vperm.slane %v5478_v10, 1 }
 0x185   :  { %6767 = vst [vmem:[#allocation102_spill] sm:$0xff] %v5461_v26 }
 0x186   :  { %6768 = vst [vmem:[#allocation103_spill] sm:$0xff] %v5467_v3 }
 0x187   :  { %1609 = vmatpush.bf16.msrb.mxu2 %v5449_v13  ;;  %1622 = vmatpush.bf16.msrb.mxu3 %v5453_v39 }
 0x188   :  { %1635 = vmatpush.bf16.msra.mxu0 %v5455_v36  ;;  %1648 = vmatpush.bf16.msra.mxu1 %v5458_v30 }
 0x18b   :  { %1610 = vmatpush.bf16.msrb.mxu2 %v5461_v26  ;;  %1623 = vmatpush.bf16.msrb.mxu3 %v5465_v31  ;;  %v780_v43 = vpop.f32.mrf.mxu0  ;;  %v793_v48 = vpop.f32.mrf.mxu1 }
 0x18c   :  { %1636 = vmatpush.bf16.msra.mxu0 %v5467_v3  ;;  %1649 = vmatpush.bf16.msra.mxu1 %v5470_v49  ;;  %v781_v19 = vadd.f32 %v780_v43, %v254_v42 }
 0x18e   :  { %1611 = vmatmul.bf16.vlgmr.msrb.gmra.mxu2 %v5272_v2  ;;  %1624 = vmatmul.bf16.vlgmr.msrb.gmra.mxu3 %v5282_v14 }
 0x18f   :  { %1764 = vmatpush.bf16.msra.mxu3 %v5166_v5  ;;  %1637 = vmatmul.bf16.vlgmr.msra.gmra.mxu0 %v5272_v2  ;;  %v5494_v2 = vadd.f32 %v793_v48, %v781_v19  ;;  %v256_v48 = vperm.slane %v5478_v10, 3 }
 0x190   :  { %1790 = vmatpush.bf16.msrb.mxu1 %v5170_v9  ;;  %1751 = vmatpush.bf16.msra.mxu2 %v5164_v4  ;;  %v767_v33 = vpop.f32.mrf.mxu3 }
 0x191   :  { %1650 = vmatmul.bf16.vlgmr.msra.gmra.mxu1 %v5282_v14  ;;  %1777 = vmatpush.bf16.msrb.mxu0 %v5168_v8  ;;  %6769 = vst [vmem:[#allocation104_spill] sm:$0xff] %v5494_v2  ;;  %v754_v14 = vpop.f32.mrf.mxu2 }
 0x192   :  { %v755_v37 = vadd.f32 %v754_v14, %v253_v15 }
 0x193   :  { %1765 = vmatpush.bf16.msra.mxu3 %v5176_v17  ;;  %v782_v38 = vpop.f32.mrf.mxu0  ;;  %v795_v61 = vpop.f32.mrf.mxu1 }
 0x194   :  { %1791 = vmatpush.bf16.msrb.mxu1 %v5182_v21  ;;  %1752 = vmatpush.bf16.msra.mxu2 %v5174_v16  ;;  %v5502_v58 = vadd.f32 %v767_v33, %v755_v37  ;;  %v255_v33 = vperm.slane %v5478_v10, 2 }
 0x195   :  { %1778 = vmatpush.bf16.msrb.mxu0 %v5180_v20 }
 0x196   :  { %6770 = vst [vmem:[#allocation105_spill] sm:$0xff] %v5502_v58 }
 0x197   :  { %1766 = vmatpush.bf16.msra.mxu3 %v5192_v29 }
 0x198   :  { %1792 = vmatpush.bf16.msrb.mxu1 %v5198_v35  ;;  %1753 = vmatpush.bf16.msra.mxu2 %v5190_v28  ;;  %v769_v43 = vpop.f32.mrf.mxu3 }
 0x199   :  { %1779 = vmatpush.bf16.msrb.mxu0 %v5196_v34  ;;  %v756_v42 = vpop.f32.mrf.mxu2 }
 0x19b   :  { %1767 = vmatpush.bf16.msra.mxu3 %v5204_v41  ;;  %v832_v19 = vpop.f32.mrf.mxu0  ;;  %v845_v15 = vpop.f32.mrf.mxu1 }
 0x19c   :  { %1793 = vmatpush.bf16.msrb.mxu1 %v5210_v45  ;;  %1754 = vmatpush.bf16.msra.mxu2 %v5202_v40  ;;  %v833_v14 = vadd.f32 %v832_v19, %v256_v48 }
 0x19d   :  { %1780 = vmatpush.bf16.msrb.mxu0 %v5208_v44 }
 0x19e   :  { %v5516_v37 = vadd.f32 %v845_v15, %v833_v14 }
 0x19f   :  { %1768 = vmatpush.bf16.msra.mxu3 %v5216_v53 }
 0x1a0   :  { %1794 = vmatpush.bf16.msrb.mxu1 %v5222_v57  ;;  %1755 = vmatpush.bf16.msra.mxu2 %v5214_v52  ;;  %6771 = vst [vmem:[#allocation106_spill] sm:$0xff] %v5516_v37  ;;  %v819_v61 = vpop.f32.mrf.mxu3 }
 0x1a1   :  { %1781 = vmatpush.bf16.msrb.mxu0 %v5220_v56  ;;  %v806_v38 = vpop.f32.mrf.mxu2 }
 0x1a2   :  { %v807_v42 = vadd.f32 %v806_v38, %v255_v33  ;;  %v6773_v33 = vld [vmem:[#allocation54_spill] sm:$0xff]  ;;  %v258_v38 = vperm.slane %v5478_v10, 5 }
 0x1a3   :  { %1769 = vmatpush.bf16.msra.mxu3 %v5228_v1  ;;  %v834_v48 = vpop.f32.mrf.mxu0  ;;  %v847_v19 = vpop.f32.mrf.mxu1 }
 0x1a4   :  { %1795 = vmatpush.bf16.msrb.mxu1 %v5234_v7  ;;  %1756 = vmatpush.bf16.msra.mxu2 %v5226_v0  ;;  %v5524_v43 = vadd.f32 %v819_v61, %v807_v42  ;;  %v6774_v61 = vld [vmem:[#allocation51_spill] sm:$0xff]  ;;  %v6775_v42 = vld [vmem:[#allocation56_spill] sm:$0xff]  ;;  %v6776_v48 = vld [vmem:[#allocation53_spill] sm:$0xff] }
 0x1a5   :  { %1782 = vmatpush.bf16.msrb.mxu0 %v5232_v6  ;;  %v6777_v19 = vld [vmem:[#allocation58_spill] sm:$0xff] }
 0x1a6   :  { %6772 = vst [vmem:[#allocation107_spill] sm:$0xff] %v5524_v43 }
 0x1a7   :  { %1770 = vmatpush.bf16.msra.mxu3 %v5240_v23 }
 0x1a8   :  { %1796 = vmatpush.bf16.msrb.mxu1 %v5246_v32  ;;  %1757 = vmatpush.bf16.msra.mxu2 %v5238_v22  ;;  %v821_v14 = vpop.f32.mrf.mxu3  ;;  %v6783_v22 = vld [vmem:[#allocation64_spill] sm:$0xff] }
 0x1a9   :  { %1783 = vmatpush.bf16.msrb.mxu0 %v5244_v27  ;;  %v808_v15 = vpop.f32.mrf.mxu2  ;;  %v6779_v14 = vld [vmem:[#allocation60_spill] sm:$0xff] }
 0x1aa   :  { %v257_v15 = vperm.slane %v5478_v10, 4 }
 0x1ab   :  { %1771 = vmatpush.bf16.msra.mxu3 %v5254_v47 }
 0x1ac   :  { %1797 = vmatpush.bf16.msrb.mxu1 %v5268_v63  ;;  %1758 = vmatpush.bf16.msra.mxu2 %v5252_v46 }
 0x1ad   :  { %1784 = vmatpush.bf16.msrb.mxu0 %v5258_v50 }
 0x1ae   :  { %v884_v50 = vpop.f32.mrf.mxu0 }
 0x1af   :  { %1816 = vmatpush.bf16.msrb.mxu3 %v5264_v59  ;;  %v885_v46 = vadd.f32 %v884_v50, %v258_v38  ;;  %v6784_v50 = vld [vmem:[#allocation61_spill] sm:$0xff]  ;;  %v6785_v38 = vld [vmem:[#allocation66_spill] sm:$0xff] }
 0x1b0   :  { %1842 = vmatpush.bf16.msra.mxu1 %v5276_v11  ;;  %1803 = vmatpush.bf16.msrb.mxu2 %v5260_v51  ;;  %v897_v51 = vpop.f32.mrf.mxu1 }
 0x1b1   :  { %1829 = vmatpush.bf16.msra.mxu0 %v5266_v60  ;;  %v6780_v60 = vld [vmem:[#allocation57_spill] sm:$0xff]  ;;  %v871_v27 = vpop.f32.mrf.mxu3 }
 0x1b3   :  { %1817 = vmatpush.bf16.msrb.mxu3 %v5288_v24  ;;  %v6778_v24 = vld [vmem:[#allocation55_spill] sm:$0xff] }
 0x1b4   :  { %1843 = vmatpush.bf16.msra.mxu1 %v6773_v33  ;;  %1804 = vmatpush.bf16.msrb.mxu2 %v6774_v61  ;;  %v5544_v33 = vadd.f32 %v897_v51, %v885_v46  ;;  %v6781_v61 = vld [vmem:[#allocation62_spill] sm:$0xff]  ;;  %v6787_v46 = vld [vmem:[#allocation68_spill] sm:$0xff]  ;;  %v6788_v51 = vld [vmem:[#allocation65_spill] sm:$0xff] }
 0x1b5   :  { %1830 = vmatpush.bf16.msra.mxu0 %v6776_v48  ;;  %v6782_v48 = vld [vmem:[#allocation59_spill] sm:$0xff] }
 0x1b7   :  { %1818 = vmatpush.bf16.msrb.mxu3 %v6775_v42  ;;  %v858_v42 = vpop.f32.mrf.mxu2 }
 0x1b8   :  { %1844 = vmatpush.bf16.msra.mxu1 %v6777_v19  ;;  %1805 = vmatpush.bf16.msrb.mxu2 %v6778_v24  ;;  %v859_v19 = vadd.f32 %v858_v42, %v257_v15  ;;  %v886_v24 = vpop.f32.mrf.mxu0  ;;  %v6790_v15 = vld [vmem:[#allocation67_spill] sm:$0xff] }
 0x1b9   :  { %1831 = vmatpush.bf16.msra.mxu0 %v6780_v60  ;;  %v6786_v60 = vld [vmem:[#allocation63_spill] sm:$0xff]  ;;  %v873_v42 = vpop.f32.mrf.mxu3  ;;  %v6794_v24 = vld [vmem:[#allocation73_spill] sm:$0xff] }
 0x1ba   :  { %v5551_v10 = vadd.f32 %v871_v27, %v859_v19  ;;  %v6793_v27 = vld [vmem:[#allocation71_spill] sm:$0xff]  ;;  %v5570_v19 = vld [vmem:[%s6484_s6] sm:$0x3f]  ;;  %s5094_s6 = smov [#allocation10]  }
 0x1bb   :  { %1819 = vmatpush.bf16.msrb.mxu3 %v6779_v14  ;;  %v899_v14 = vpop.f32.mrf.mxu1  ;;  %v5573_v42 = vperm.slane %v5570_v19, 1  ;;  %v5583_v59 = vperm.slane %v5570_v19, 3  ;;  %s3755_s25 = sshll.u32 %s5094_s6, 4  ;;  %s3756_s25 = int_to_ptr.vmem [resolvable:$true] %s3755_s25 }
 0x1bc   :  { %1845 = vmatpush.bf16.msra.mxu1 %v6781_v61  ;;  %1806 = vmatpush.bf16.msrb.mxu2 %v6782_v48  ;;  %v6789_v61 = vld [vmem:[#allocation70_spill] sm:$0xff] }
 0x1bd   :  { %1832 = vmatpush.bf16.msra.mxu0 %v6784_v50  ;;  %v6792_v50 = vld [vmem:[#allocation69_spill] sm:$0xff]  ;;  %6796 = vst [vmem:[#allocation108_spill] sm:$0xff] %v5573_v42 }
 0x1be   :  { %6798 = vst [vmem:[#allocation110_spill] sm:$0xff] %v5583_v59 }
 0x1bf   :  { %1820 = vmatpush.bf16.msrb.mxu3 %v6783_v22  ;;  %v860_v48 = vpop.f32.mrf.mxu2  ;;  %v6791_v22 = vld [vmem:[#allocation72_spill] sm:$0xff] }
 0x1c0   :  { %1846 = vmatpush.bf16.msra.mxu1 %v6785_v38  ;;  %1807 = vmatpush.bf16.msrb.mxu2 %v6786_v60  ;;  %v6795_v48 = vld [vmem:[#allocation78_spill] sm:$0xff] }
 0x1c1   :  { %1833 = vmatpush.bf16.msra.mxu0 %v6788_v51 }
 0x1c3   :  { %1821 = vmatpush.bf16.msrb.mxu3 %v6787_v46 }
 0x1c4   :  { %1847 = vmatpush.bf16.msra.mxu1 %v6789_v61  ;;  %1808 = vmatpush.bf16.msrb.mxu2 %v6790_v15 }
 0x1c5   :  { %1834 = vmatpush.bf16.msra.mxu0 %v6792_v50 }
 0x1c7   :  { %1822 = vmatpush.bf16.msrb.mxu3 %v6791_v22 }
 0x1c8   :  { %1848 = vmatpush.bf16.msra.mxu1 %v5358_v54  ;;  %1809 = vmatpush.bf16.msrb.mxu2 %v6793_v27 }
 0x1c9   :  { %1835 = vmatpush.bf16.msra.mxu0 %v6794_v24 }
 0x1cb   :  { %1823 = vmatpush.bf16.msrb.mxu3 %v5364_v12  ;;  %v5576_v12 = vperm.slane %v5570_v19, 0 }
 0x1cc   :  { %1849 = vmatpush.bf16.msra.mxu1 %v5376_v25  ;;  %1810 = vmatpush.bf16.msrb.mxu2 %v5361_v62 }
 0x1cd   :  { %1836 = vmatpush.bf16.msra.mxu0 %v6795_v48  ;;  %6797 = vst [vmem:[#allocation109_spill] sm:$0xff] %v5576_v12 }
 0x1ce   :  { %v1534_v14 = vpop.f32.mrf.mxu0  ;;  %v1547_v27 = vpop.f32.mrf.mxu1 }
 0x1cf   :  { %v1535_v25 = vadd.f32 %v1534_v14, %v5573_v42 }
 0x1d1   :  { %v1508_v24 = vpop.f32.mrf.mxu2  ;;  %v1521_v50 = vpop.f32.mrf.mxu3  ;;  %v1548_v15 = vadd.f32 %v1547_v27, %v1535_v25 }
 0x1d2   :  { %v1509_v48 = vadd.f32 %v1508_v24, %v5576_v12  ;;  %v5624_v12 = vperm.slane %v5570_v19, 4 }
 0x1d3   :  { %v1656_v60 = vadd.f32 %v1548_v15, %v5494_v2 }
 0x1d4   :  { %v1522_v22 = vadd.f32 %v1521_v50, %v1509_v48  ;;  %v5587_v50 = vperm.slane %v5570_v19, 2 }
 0x1d5   :  { %v4557_v38 = vmul.f32 -1.442695, %v1656_v60 }
 0x1d6   :  { %v1536_v62 = vpop.f32.mrf.mxu0  ;;  %v1549_v54 = vpop.f32.mrf.mxu1  ;;  %v1655_v46 = vadd.f32 %v1522_v22, %v5502_v58  ;;  %6799 = vst [vmem:[#allocation111_spill] sm:$0xff] %v5587_v50 }
 0x1d7   :  { %4796 = vpow2.f32 %v4557_v38 }
 0x1d8   :  { %v4556_v11 = vmul.f32 -1.442695, %v1655_v46 }
 0x1d9   :  { %v1510_v51 = vpop.f32.mrf.mxu2  ;;  %v1523_v61 = vpop.f32.mrf.mxu3 }
 0x1da   :  { %4798 = vpow2.f32 %v4556_v11 }
 0x1dd   :  { %v4797_v14 = vpop.eup %4796 }
 0x1de   :  { %v1672_v24 = vadd.f32 1.0, %v4797_v14 }
 0x1e0   :  { %v4799_v42 = vpop.eup %4798  ;;  %4800 = vrcp.f32 %v1672_v24  ;;  %vm1695_vm3 = vweird.f32 %v1672_v24 }
 0x1e1   :  { %v5589_v51 = vadd.f32 1.0, %v4799_v42 }
 0x1e3   :  { %4802 = vrcp.f32 %v5589_v51  ;;  %v1686_v2 = vand.u32 2147483648, %v5589_v51  ;;  %vm1680_vm7 = vweird.f32 %v5589_v51  ;;  %v1684_v6 = vand.u32 2147483647, %v5589_v51 }
 0x1e5   :  { %vm1685_vm12 = vcmp.eq.f32.partialorder %v1684_v6, 8.507059e+37 }
 0x1ee   :  { %v1586_v62 = vpop.f32.mrf.mxu0  ;;  %v1599_v25 = vpop.f32.mrf.mxu1 }
 0x1ef   :  { %v1587_v54 = vadd.f32 %v1586_v62, %v5583_v59  ;;  %v4801_v62 = vpop.eup %4800 }
 0x1f0   :  { %vm1696_vm2 = vweird.f32 %v4801_v62 }
 0x1f1   :  { %v1600_v61 = vadd.f32 %v1599_v25, %v1587_v54  ;;  %v1560_v60 = vpop.f32.mrf.mxu2  ;;  %v1573_v38 = vpop.f32.mrf.mxu3  ;;  %vm5612_vm4 = vmor %vm1695_vm3, %vm1696_vm2 }
 0x1f2   :  { %v1561_v11 = vadd.f32 %v1560_v60, %v5587_v50  ;;  %v5595_v25 = vpop.eup %4802 }
 0x1f3   :  { %v1658_v22 = vadd.f32 %v1600_v61, %v5516_v37  ;;  %v1691_v37 = vmul.f32 %v4801_v62, %v1672_v24  ;;  %vm1681_vm5 = vweird.f32 %v5595_v25 }
 0x1f4   :  { %v1574_v15 = vadd.f32 %v1573_v38, %v1561_v11  ;;  %v1676_v11 = vmul.f32 %v5595_v25, %v5589_v51  ;;  %vm5631_vm9 = vmor %vm1680_vm7, %vm1681_vm5 }
 0x1f5   :  { %v4559_v46 = vmul.f32 -1.442695, %v1658_v22  ;;  %v1692_v22 = vsub.f32 1.0, %v1691_v37 }
 0x1f6   :  { %v1588_v27 = vpop.f32.mrf.mxu0  ;;  %v1601_v48 = vpop.f32.mrf.mxu1  ;;  %v1657_v14 = vadd.f32 %v1574_v15, %v5524_v43  ;;  %v1701_v43 = vand.u32 2147483648, %v1672_v24 }
 0x1f7   :  { %4804 = vpow2.f32 %v4559_v46  ;;  %v1693_v15 = vmul.f32 %v4801_v62, %v1692_v22  ;;  %v1677_v27 = vsub.f32 1.0, %v1676_v11 }
 0x1f8   :  { %v4558_v54 = vmul.f32 -1.442695, %v1657_v14 }
 0x1f9   :  { %v1562_v42 = vpop.f32.mrf.mxu2  ;;  %v1575_v61 = vpop.f32.mrf.mxu3  ;;  %v1678_v37 = vmul.f32 %v5595_v25, %v1677_v27 }
 0x1fa   :  { %4806 = vpow2.f32 %v4558_v54  ;;  %v5607_v54 = vperm.slane %v5570_v19, 5  ;;  %v1699_v61 = vand.u32 2147483647, %v1672_v24 }
 0x1fb   :  { %v1679_v24 = vadd.f32 %v5595_v25, %v1678_v37 }
 0x1fc   :  { %6800 = vst [vmem:[#allocation112_spill] sm:$0xff] %v5607_v54  ;;  %vm1700_vm6 = vcmp.eq.f32.partialorder %v1699_v61, 8.507059e+37 }
 0x1fd   :  { %v4805_v59 = vpop.eup %4804 }
 0x1fe   :  { %v5597_v60 = vadd.f32 1.0, %v4805_v59  ;;  %v1694_v59 = vadd.f32 %v4801_v62, %v1693_v15 }
 0x200   :  { %4808 = vrcp.f32 %v5597_v60  ;;  %v4807_v38 = vpop.eup %4806  ;;  %vm1725_vm10 = vweird.f32 %v5597_v60  ;;  %v1729_v51 = vand.u32 2147483647, %v5597_v60 }
 0x201   :  { %v5602_v46 = vadd.f32 1.0, %v4807_v38 }
 0x202   :  { %vm1730_vm14 = vcmp.eq.f32.partialorder %v1729_v51, 8.507059e+37  ;;  %v6807_v51 = vld [vmem:[#allocation46_spill] sm:$0xff] }
 0x203   :  { %4810 = vrcp.f32 %v5602_v46  ;;  %vm1710_vm15 = vweird.f32 %v5602_v46  ;;  %v1714_v50 = vand.u32 2147483647, %v5602_v46 }
 0x205   :  { %vm1715_vm1 = vcmp.eq.f32.partialorder %v1714_v50, 8.507059e+37  ;;  %v6814_v50 = vld [vmem:[#allocation80_spill] sm:$0xff] }
 0x206   :  { %v4809_v48 = vpop.eup %4808 }
 0x207   :  { %v1721_v14 = vmul.f32 %v4809_v48, %v5597_v60  ;;  %vm1726_vm8 = vweird.f32 %v4809_v48 }
 0x208   :  { %vm5643_vm11 = vmor %vm1725_vm10, %vm1726_vm8 }
 0x209   :  { %v1722_v42 = vsub.f32 1.0, %v1721_v14  ;;  %v5610_v38 = vpop.eup %4810  ;;  %v1698_v14 = vsel %vm5612_vm4, %v4801_v62, %v1694_v59 }
 0x20a   :  { %v1706_v15 = vmul.f32 %v5610_v38, %v5602_v46  ;;  %vm1711_vm13 = vweird.f32 %v5610_v38 }
 0x20b   :  { %v1723_v22 = vmul.f32 %v4809_v48, %v1722_v42  ;;  %v1702_v42 = vor.u32 1.1754944e-38, %v1701_v43  ;;  %v1731_v43 = vand.u32 2147483648, %v5597_v60  ;;  %vm1712_vm0 = vmor %vm1710_vm15, %vm1711_vm13 }
 0x20c   :  { %v1638_v11 = vpop.f32.mrf.mxu0  ;;  %v1707_v63 = vsub.f32 1.0, %v1706_v15 }
 0x20d   :  { %v1639_v58 = vadd.f32 %v1638_v11, %v5607_v54  ;;  %v1703_v11 = vsel %vm1700_vm6, %v1702_v42, %v1698_v14  ;;  %v1724_v54 = vadd.f32 %v4809_v48, %v1723_v22  ;;  %v1687_v22 = vor.u32 1.1754944e-38, %v1686_v2 }
 0x20e   :  { %v1651_v27 = vpop.f32.mrf.mxu1  ;;  %v1708_v19 = vmul.f32 %v5610_v38, %v1707_v63  ;;  %v1716_v42 = vand.u32 2147483648, %v5602_v46 }
 0x20f   :  { %v1652_v47 = vadd.f32 %v1651_v27, %v1639_v58  ;;  %v1683_v58 = vsel %vm5631_vm9, %v5595_v25, %v1679_v24  ;;  %v1732_v24 = vor.u32 1.1754944e-38, %v1731_v43 }
 0x210   :  { %v1688_v25 = vsel %vm1685_vm12, %v1687_v22, %v1683_v58  ;;  %v1709_v60 = vadd.f32 %v5610_v38, %v1708_v19 }
 0x211   :  { %v1736_v62 = vmul.f32 %v1703_v11, %v1652_v47  ;;  %v1612_v59 = vpop.f32.mrf.mxu2  ;;  %v1625_v61 = vpop.f32.mrf.mxu3  ;;  %v1728_v47 = vsel %vm5643_vm11, %v4809_v48, %v1724_v54 }
 0x212   :  { %v1613_v37 = vadd.f32 %v1612_v59, %v5624_v12  ;;  %v1733_v6 = vsel %vm1730_vm14, %v1732_v24, %v1728_v47  ;;  %v1713_v54 = vsel %vm1712_vm0, %v5610_v38, %v1709_v60  ;;  %v6808_v38 = vld [vmem:[#allocation41_spill] sm:$0xff]  ;;  %v6809_v24 = vld [vmem:[#allocation79_spill] sm:$0xff]  ;;  %v6810_v60 = vld [vmem:[#allocation82_spill] sm:$0xff] }
 0x213   :  { %v1738_v63 = vadd.f32 %v1736_v62, %v5544_v33  ;;  %v1717_v62 = vor.u32 1.1754944e-38, %v1716_v42  ;;  %v1742_v59 = vsub.f32 1.0, %v1733_v6  ;;  %v6811_v42 = vld [vmem:[#allocation84_spill] sm:$0xff] }
 0x214   :  { %v1626_v27 = vadd.f32 %v1625_v61, %v1613_v37  ;;  %v1640_v14 = vpop.f32.mrf.mxu0  ;;  %v1746_v61 = vmul.f32 %v1733_v6, %v6807_v51  ;;  %v6813_v6 = vld [vmem:[#allocation77_spill] sm:$0xff]  ;;  %v6823_v51 = vld [vmem:[#allocation96_spill] sm:$0xff] }
 0x215   :  { %4812 = vtanh.f32 %v1738_v63  ;;  %v1718_v22 = vsel %vm1715_vm1, %v1717_v62, %v1713_v54  ;;  %v6816_v54 = vld [vmem:[#allocation90_spill] sm:$0xff]  ;;  %v6818_v62 = vld [vmem:[#allocation85_spill] sm:$0xff] }
 0x216   :  { %v1653_v2 = vpop.f32.mrf.mxu1  ;;  %v1735_v11 = vmul.f32 %v1688_v25, %v1626_v27  ;;  %v1741_v63 = vsub.f32 1.0, %v1718_v22  ;;  %v1745_v25 = vmul.f32 %v1718_v22, %v6808_v38  ;;  %v6825_v22 = vld [vmem:[#allocation91_spill] sm:$0xff]  ;;  %v6829_v38 = vld [vmem:[#allocation97_spill] sm:$0xff] }
 0x218   :  { %v1737_v48 = vadd.f32 %v1735_v11, %v5551_v10  ;;  %v6812_v11 = vld [vmem:[#allocation86_spill] sm:$0xff] }
 0x219   :  { %v1614_v43 = vpop.f32.mrf.mxu2  ;;  %v1627_v19 = vpop.f32.mrf.mxu3 }
 0x21a   :  { %4814 = vtanh.f32 %v1737_v48  ;;  %v6815_v48 = vld [vmem:[#allocation88_spill] sm:$0xff]  ;;  %v6817_v43 = vld [vmem:[#allocation83_spill] sm:$0xff]  ;;  %v6820_v19 = vld [vmem:[#allocation94_spill] sm:$0xff] }
 0x21b   :  { %v4813_v58 = vpop.eup %4812 }
 0x21c   :  { %v1744_v37 = vmul.f32 %v4813_v58, %v1742_v59  ;;  %v6819_v59 = vld [vmem:[#allocation92_spill] sm:$0xff]  ;;  %v6821_v58 = vld [vmem:[#allocation87_spill] sm:$0xff] }
 0x21e   :  { %v5658_v15 = vadd.f32 %v1746_v61, %v1744_v37  ;;  %v6822_v37 = vld [vmem:[#allocation89_spill] sm:$0xff]  ;;  %v6824_v61 = vld [vmem:[#allocation98_spill] sm:$0xff] }
 0x220   :  { %v4815_v46 = vpop.eup %4814  ;;  %v1750_v47 = vpack.c.bf16 %v5658_v15, %v5658_v15 }
 0x221   :  { %v1743_v27 = vmul.f32 %v4815_v46, %v1741_v63  ;;  %v6826_v63 = vld [vmem:[#allocation93_spill] sm:$0xff]  ;;  %v6827_v46 = vld [vmem:[#allocation100_spill] sm:$0xff] }
 0x222   :  { %1772 = vmatmul.bf16.vlgmr.msra.gmra.mxu3 %v1750_v47  ;;  %1798 = vmatmul.bf16.vlgmr.msrb.gmra.mxu1 %v1750_v47 }
 0x223   :  { %v5663_v14 = vadd.f32 %v1745_v25, %v1743_v27  ;;  %1868 = vmatpush.bf16.msra.mxu3 %v6809_v24  ;;  %1894 = vmatpush.bf16.msrb.mxu1 %v6810_v60  ;;  %v6828_v27 = vld [vmem:[#allocation95_spill] sm:$0xff] }
 0x224   :  { %v6830_v25 = vld [vmem:[#allocation99_spill] sm:$0xff] }
 0x225   :  { %v1749_v2 = vpack.c.bf16 %v5663_v14, %v5663_v14 }
 0x227   :  { %1869 = vmatpush.bf16.msra.mxu3 %v6811_v42  ;;  %1895 = vmatpush.bf16.msrb.mxu1 %v6812_v11 }
 0x228   :  { %1759 = vmatmul.bf16.vlgmr.msra.gmra.mxu2 %v1749_v2  ;;  %1785 = vmatmul.bf16.vlgmr.msrb.gmra.mxu0 %v1749_v2 }
 0x229   :  { %1855 = vmatpush.bf16.msra.mxu2 %v6813_v6  ;;  %1881 = vmatpush.bf16.msrb.mxu0 %v6814_v50 }
 0x22b   :  { %1870 = vmatpush.bf16.msra.mxu3 %v6815_v48  ;;  %1896 = vmatpush.bf16.msrb.mxu1 %v6816_v54 }
 0x22d   :  { %1856 = vmatpush.bf16.msra.mxu2 %v6817_v43  ;;  %1882 = vmatpush.bf16.msrb.mxu0 %v6818_v62 }
 0x22f   :  { %1871 = vmatpush.bf16.msra.mxu3 %v6819_v59  ;;  %1897 = vmatpush.bf16.msrb.mxu1 %v6820_v19 }
 0x231   :  { %1857 = vmatpush.bf16.msra.mxu2 %v6821_v58  ;;  %1883 = vmatpush.bf16.msrb.mxu0 %v6822_v37 }
 0x232   :  { %1824 = vmatmul.bf16.vlgmr.msrb.gmra.mxu3 %v1750_v47  ;;  %1850 = vmatmul.bf16.vlgmr.msra.gmra.mxu1 %v1750_v47 }
 0x233   :  { %1872 = vmatpush.bf16.msra.mxu3 %v6823_v51  ;;  %1898 = vmatpush.bf16.msrb.mxu1 %v6824_v61 }
 0x235   :  { %1858 = vmatpush.bf16.msra.mxu2 %v6825_v22  ;;  %1884 = vmatpush.bf16.msrb.mxu0 %v6826_v63 }
 0x237   :  { %1873 = vmatpush.bf16.msra.mxu3 %v6827_v46  ;;  %1899 = vmatpush.bf16.msrb.mxu1 %v5446_v18 }
 0x238   :  { %1811 = vmatmul.bf16.vlgmr.msrb.gmra.mxu2 %v1749_v2  ;;  %1837 = vmatmul.bf16.vlgmr.msra.gmra.mxu0 %v1749_v2 }
 0x239   :  { %1859 = vmatpush.bf16.msra.mxu2 %v6828_v27  ;;  %1885 = vmatpush.bf16.msrb.mxu0 %v6829_v38 }
 0x23b   :  { %1874 = vmatpush.bf16.msra.mxu3 %v5453_v39  ;;  %1900 = vmatpush.bf16.msrb.mxu1 %v5458_v30 }
 0x23d   :  { %1860 = vmatpush.bf16.msra.mxu2 %v6830_v25  ;;  %1886 = vmatpush.bf16.msrb.mxu0 %v5443_v55 }
 0x23f   :  { %1875 = vmatpush.bf16.msra.mxu3 %v5465_v31  ;;  %1901 = vmatpush.bf16.msrb.mxu1 %v5470_v49 }
 0x241   :  { %1861 = vmatpush.bf16.msra.mxu2 %v5449_v13  ;;  %1887 = vmatpush.bf16.msrb.mxu0 %v5455_v36 }
 0x242   :  { %1876 = vmatmul.bf16.vlgmr.msra.gmra.mxu3 %v1750_v47  ;;  %1902 = vmatmul.bf16.vlgmr.msrb.gmra.mxu1 %v1750_v47  ;;  %v6831_v47 = vld [vmem:[#allocation35_spill] sm:$0xff] }
 0x243   :  { %2048 = vmatpush.bf16.msrb.mxu3 %v5166_v5  ;;  %2074 = vmatpush.bf16.msra.mxu1 %v5170_v9 }
 0x245   :  { %1862 = vmatpush.bf16.msra.mxu2 %v5461_v26  ;;  %1888 = vmatpush.bf16.msrb.mxu0 %v5467_v3 }
 0x247   :  { %2049 = vmatpush.bf16.msrb.mxu3 %v5176_v17  ;;  %2075 = vmatpush.bf16.msra.mxu1 %v5182_v21 }
 0x248   :  { %1863 = vmatmul.bf16.vlgmr.msra.gmra.mxu2 %v1749_v2  ;;  %1889 = vmatmul.bf16.vlgmr.msrb.gmra.mxu0 %v1749_v2  ;;  %v6832_v2 = vld [vmem:[#allocation43_spill] sm:$0xff] }
 0x249   :  { %2035 = vmatpush.bf16.msrb.mxu2 %v5164_v4  ;;  %2061 = vmatpush.bf16.msra.mxu0 %v5168_v8 }
 0x24b   :  { %2050 = vmatpush.bf16.msrb.mxu3 %v5192_v29  ;;  %2076 = vmatpush.bf16.msra.mxu1 %v5198_v35  ;;  %v6873_v35 = vld [vmem:[#allocation105_spill] sm:$0xff] }
 0x24d   :  { %2036 = vmatpush.bf16.msrb.mxu2 %v5174_v16  ;;  %2062 = vmatpush.bf16.msra.mxu0 %v5180_v20 }
 0x24f   :  { %2051 = vmatpush.bf16.msrb.mxu3 %v5204_v41  ;;  %2077 = vmatpush.bf16.msra.mxu1 %v5210_v45 }
 0x251   :  { %2037 = vmatpush.bf16.msrb.mxu2 %v5190_v28  ;;  %2063 = vmatpush.bf16.msra.mxu0 %v5196_v34 }
 0x253   :  { %2052 = vmatpush.bf16.msrb.mxu3 %v5216_v53  ;;  %2078 = vmatpush.bf16.msra.mxu1 %v5222_v57 }
 0x255   :  { %2038 = vmatpush.bf16.msrb.mxu2 %v5202_v40  ;;  %2064 = vmatpush.bf16.msra.mxu0 %v5208_v44  ;;  %v6833_v40 = vld [vmem:[#allocation49_spill] sm:$0xff]  ;;  %v6834_v44 = vld [vmem:[#allocation47_spill] sm:$0xff] }
 0x257   :  { %2053 = vmatpush.bf16.msrb.mxu3 %v5228_v1  ;;  %2079 = vmatpush.bf16.msra.mxu1 %v5234_v7  ;;  %v6835_v1 = vld [vmem:[#allocation50_spill] sm:$0xff]  ;;  %v6836_v7 = vld [vmem:[#allocation37_spill] sm:$0xff] }
 0x259   :  { %2039 = vmatpush.bf16.msrb.mxu2 %v5214_v52  ;;  %2065 = vmatpush.bf16.msra.mxu0 %v5220_v56  ;;  %v6837_v52 = vld [vmem:[#allocation39_spill] sm:$0xff]  ;;  %v6838_v56 = vld [vmem:[#allocation52_spill] sm:$0xff] }
 0x25b   :  { %2054 = vmatpush.bf16.msrb.mxu3 %v5240_v23  ;;  %2080 = vmatpush.bf16.msra.mxu1 %v5246_v32  ;;  %v6839_v23 = vld [vmem:[#allocation54_spill] sm:$0xff] }
 0x25c   :  { %v6840_v32 = vld [vmem:[#allocation42_spill] sm:$0xff] }
 0x25d   :  { %2040 = vmatpush.bf16.msrb.mxu2 %v5226_v0  ;;  %2066 = vmatpush.bf16.msra.mxu0 %v6831_v47  ;;  %v6841_v0 = vld [vmem:[#allocation44_spill] sm:$0xff]  ;;  %v6842_v47 = vld [vmem:[#allocation45_spill] sm:$0xff] }
 0x25f   :  { %2055 = vmatpush.bf16.msrb.mxu3 %v6832_v2  ;;  %2081 = vmatpush.bf16.msra.mxu1 %v6833_v40  ;;  %v6843_v2 = vld [vmem:[#allocation48_spill] sm:$0xff] }
 0x260   :  { %v6844_v40 = vld [vmem:[#allocation56_spill] sm:$0xff] }
 0x261   :  { %2041 = vmatpush.bf16.msrb.mxu2 %v6836_v7  ;;  %2067 = vmatpush.bf16.msra.mxu0 %v6837_v52  ;;  %v6847_v7 = vld [vmem:[#allocation53_spill] sm:$0xff]  ;;  %v6848_v52 = vld [vmem:[#allocation60_spill] sm:$0xff] }
 0x263   :  { %2100 = vmatpush.bf16.msra.mxu3 %v6834_v44  ;;  %2126 = vmatpush.bf16.msrb.mxu1 %v6835_v1  ;;  %v6845_v44 = vld [vmem:[#allocation58_spill] sm:$0xff]  ;;  %v6846_v1 = vld [vmem:[#allocation51_spill] sm:$0xff] }
 0x265   :  { %2042 = vmatpush.bf16.msrb.mxu2 %v6840_v32  ;;  %2068 = vmatpush.bf16.msra.mxu0 %v6841_v0  ;;  %v6851_v32 = vld [vmem:[#allocation57_spill] sm:$0xff]  ;;  %v6852_v0 = vld [vmem:[#allocation64_spill] sm:$0xff] }
 0x267   :  { %2101 = vmatpush.bf16.msra.mxu3 %v6838_v56  ;;  %2127 = vmatpush.bf16.msrb.mxu1 %v6839_v23  ;;  %v6849_v56 = vld [vmem:[#allocation62_spill] sm:$0xff]  ;;  %v6850_v23 = vld [vmem:[#allocation55_spill] sm:$0xff] }
 0x269   :  { %2087 = vmatpush.bf16.msra.mxu2 %v6842_v47  ;;  %2113 = vmatpush.bf16.msrb.mxu0 %v6843_v2  ;;  %v6853_v47 = vld [vmem:[#allocation66_spill] sm:$0xff]  ;;  %v6854_v2 = vld [vmem:[#allocation59_spill] sm:$0xff] }
 0x26b   :  { %2102 = vmatpush.bf16.msra.mxu3 %v6844_v40  ;;  %2128 = vmatpush.bf16.msrb.mxu1 %v6845_v44  ;;  %v6855_v40 = vld [vmem:[#allocation61_spill] sm:$0xff]  ;;  %v6856_v44 = vld [vmem:[#allocation68_spill] sm:$0xff] }
 0x26d   :  { %2088 = vmatpush.bf16.msra.mxu2 %v6846_v1  ;;  %2114 = vmatpush.bf16.msrb.mxu0 %v6847_v7  ;;  %v6857_v1 = vld [vmem:[#allocation70_spill] sm:$0xff]  ;;  %v6858_v7 = vld [vmem:[#allocation63_spill] sm:$0xff] }
 0x26f   :  { %2103 = vmatpush.bf16.msra.mxu3 %v6848_v52  ;;  %2129 = vmatpush.bf16.msrb.mxu1 %v6849_v56  ;;  %v6859_v52 = vld [vmem:[#allocation65_spill] sm:$0xff]  ;;  %v6860_v56 = vld [vmem:[#allocation72_spill] sm:$0xff] }
 0x271   :  { %2089 = vmatpush.bf16.msra.mxu2 %v6850_v23  ;;  %2115 = vmatpush.bf16.msrb.mxu0 %v6851_v32  ;;  %v6861_v23 = vld [vmem:[#allocation74_spill] sm:$0xff]  ;;  %v6862_v32 = vld [vmem:[#allocation67_spill] sm:$0xff] }
 0x273   :  { %2104 = vmatpush.bf16.msra.mxu3 %v6852_v0  ;;  %2130 = vmatpush.bf16.msrb.mxu1 %v6853_v47  ;;  %v6863_v0 = vld [vmem:[#allocation69_spill] sm:$0xff]  ;;  %v6864_v47 = vld [vmem:[#allocation76_spill] sm:$0xff] }
 0x275   :  { %2090 = vmatpush.bf16.msra.mxu2 %v6854_v2  ;;  %2116 = vmatpush.bf16.msrb.mxu0 %v6855_v40  ;;  %v6865_v2 = vld [vmem:[#allocation81_spill] sm:$0xff]  ;;  %v6866_v40 = vld [vmem:[#allocation71_spill] sm:$0xff] }
 0x277   :  { %2105 = vmatpush.bf16.msra.mxu3 %v6856_v44  ;;  %2131 = vmatpush.bf16.msrb.mxu1 %v6857_v1  ;;  %v6867_v44 = vld [vmem:[#allocation73_spill] sm:$0xff]  ;;  %v6868_v1 = vld [vmem:[#allocation75_spill] sm:$0xff] }
 0x279   :  { %2091 = vmatpush.bf16.msra.mxu2 %v6858_v7  ;;  %2117 = vmatpush.bf16.msrb.mxu0 %v6859_v52  ;;  %v6869_v7 = vld [vmem:[#allocation78_spill] sm:$0xff] }
 0x27b   :  { %2106 = vmatpush.bf16.msra.mxu3 %v6860_v56  ;;  %2132 = vmatpush.bf16.msrb.mxu1 %v6861_v23  ;;  %v6870_v23 = vld [vmem:[#allocation108_spill] sm:$0xff] }
 0x27d   :  { %2092 = vmatpush.bf16.msra.mxu2 %v6862_v32  ;;  %2118 = vmatpush.bf16.msrb.mxu0 %v6863_v0 }
 0x27f   :  { %2107 = vmatpush.bf16.msra.mxu3 %v6864_v47  ;;  %2133 = vmatpush.bf16.msrb.mxu1 %v6865_v2  ;;  %v6871_v47 = vld [vmem:[#allocation104_spill] sm:$0xff]  ;;  %v6872_v2 = vld [vmem:[#allocation109_spill] sm:$0xff] }
 0x281   :  { %2093 = vmatpush.bf16.msra.mxu2 %v6866_v40  ;;  %2119 = vmatpush.bf16.msrb.mxu0 %v6867_v44 }
 0x285   :  { %2094 = vmatpush.bf16.msra.mxu2 %v6868_v1  ;;  %2120 = vmatpush.bf16.msrb.mxu0 %v6869_v7 }
 0x29f   :  { %v1799_v52 = vpop.f32.mrf.mxu1 }
 0x2a5   :  { %v1773_v56 = vpop.f32.mrf.mxu3  ;;  %v1786_v57 = vpop.f32.mrf.mxu0 }
 0x2a6   :  { %v1787_v53 = vadd.f32 %v1786_v57, %v6870_v23 }
 0x2a7   :  { %v1801_v32 = vpop.f32.mrf.mxu1 }
 0x2a8   :  { %v1800_v34 = vadd.f32 %v1799_v52, %v1787_v53 }
 0x2aa   :  { %v1912_v0 = vrot.slane %v1800_v34, 7  ;;  %v6874_v34 = vld [vmem:[#allocation110_spill] sm:$0xff] }
 0x2ab   :  { %v1760_v28 = vpop.f32.mrf.mxu2 }
 0x2ac   :  { %v1920_v45 = vadd.f32 %v1912_v0, %v6871_v47  ;;  %v1761_v41 = vadd.f32 %v1760_v28, %v6872_v2 }
 0x2ad   :  { %v1775_v40 = vpop.f32.mrf.mxu3  ;;  %v1788_v20 = vpop.f32.mrf.mxu0 }
 0x2ae   :  { %v4561_v44 = vmul.f32 -1.442695, %v1920_v45  ;;  %v1774_v16 = vadd.f32 %v1773_v56, %v1761_v41  ;;  %v6875_v45 = vld [vmem:[#allocation106_spill] sm:$0xff] }
 0x2af   :  { %v1851_v1 = vpop.f32.mrf.mxu1 }
 0x2b0   :  { %4816 = vpow2.f32 %v4561_v44  ;;  %v1911_v7 = vrot.slane %v1774_v16, 7  ;;  %v6876_v16 = vld [vmem:[#allocation111_spill] sm:$0xff] }
 0x2b2   :  { %v1919_v29 = vadd.f32 %v1911_v7, %v6873_v35 }
 0x2b3   :  { %v1762_v8 = vpop.f32.mrf.mxu2 }
 0x2b4   :  { %v4560_v4 = vmul.f32 -1.442695, %v1919_v29 }
 0x2b5   :  { %v1825_v57 = vpop.f32.mrf.mxu3  ;;  %v1838_v32 = vpop.f32.mrf.mxu0 }
 0x2b6   :  { %v4817_v52 = vpop.eup %4816  ;;  %4818 = vpow2.f32 %v4560_v4  ;;  %v1839_v53 = vadd.f32 %v1838_v32, %v6874_v34 }
 0x2b7   :  { %v1936_v0 = vadd.f32 1.0, %v4817_v52  ;;  %v1853_v47 = vpop.f32.mrf.mxu1 }
 0x2b8   :  { %v1852_v28 = vadd.f32 %v1851_v1, %v1839_v53  ;;  %v6877_v1 = vld [vmem:[#allocation107_spill] sm:$0xff] }
 0x2b9   :  { %4820 = vrcp.f32 %v1936_v0  ;;  %vm1959_vm3 = vweird.f32 %v1936_v0 }
 0x2ba   :  { %v1914_v20 = vrot.slane %v1852_v28, 7 }
 0x2bb   :  { %v1812_v40 = vpop.f32.mrf.mxu2 }
 0x2bc   :  { %v4819_v41 = vpop.eup %4818  ;;  %v1922_v44 = vadd.f32 %v1914_v20, %v6875_v45  ;;  %v1813_v56 = vadd.f32 %v1812_v40, %v6876_v16 }
 0x2bd   :  { %v1935_v7 = vadd.f32 1.0, %v4819_v41  ;;  %v1827_v8 = vpop.f32.mrf.mxu3  ;;  %v1840_v29 = vpop.f32.mrf.mxu0  ;;  %v1965_v41 = vand.u32 2147483648, %v1936_v0 }
 0x2be   :  { %v4563_v35 = vmul.f32 -1.442695, %v1922_v44  ;;  %v1826_v2 = vadd.f32 %v1825_v57, %v1813_v56  ;;  %v6878_v57 = vld [vmem:[#allocation112_spill] sm:$0xff] }
 0x2bf   :  { %v4821_v23 = vpop.eup %4820  ;;  %4822 = vrcp.f32 %v1935_v7  ;;  %v1903_v4 = vpop.f32.mrf.mxu1  ;;  %vm1944_vm7 = vweird.f32 %v1935_v7 }
 0x2c0   :  { %4824 = vpow2.f32 %v4563_v35  ;;  %v1913_v32 = vrot.slane %v1826_v2, 7  ;;  %v1955_v47 = vmul.f32 %v4821_v23, %v1936_v0  ;;  %vm1960_vm2 = vweird.f32 %v4821_v23 }
 0x2c1   :  { %v1963_v2 = vand.u32 2147483647, %v1936_v0  ;;  %vm1961_vm4 = vmor %vm1959_vm3, %vm1960_vm2 }
 0x2c2   :  { %v1921_v52 = vadd.f32 %v1913_v32, %v6877_v1  ;;  %v1956_v53 = vsub.f32 1.0, %v1955_v47 }
 0x2c3   :  { %v1814_v28 = vpop.f32.mrf.mxu2  ;;  %vm1964_vm5 = vcmp.eq.f32.partialorder %v1963_v2, 8.507059e+37 }
 0x2c4   :  { %v4562_v34 = vmul.f32 -1.442695, %v1921_v52  ;;  %v1957_v3 = vmul.f32 %v4821_v23, %v1956_v53  ;;  %v1966_v53 = vor.u32 1.1754944e-38, %v1965_v41 }
 0x2c5   :  { %v4823_v20 = vpop.eup %4822  ;;  %v1877_v45 = vpop.f32.mrf.mxu3 }
 0x2c6   :  { %v1890_v40 = vpop.f32.mrf.mxu0  ;;  %v4825_v8 = vpop.eup %4824  ;;  %4826 = vpow2.f32 %v4562_v34  ;;  %v1958_v56 = vadd.f32 %v4821_v23, %v1957_v3  ;;  %v1940_v29 = vmul.f32 %v4823_v20, %v1935_v7  ;;  %vm1945_vm6 = vweird.f32 %v4823_v20 }
 0x2c7   :  { %v1891_v44 = vadd.f32 %v1890_v40, %v6878_v57  ;;  %v1938_v35 = vadd.f32 1.0, %v4825_v8  ;;  %v1905_v16 = vpop.f32.mrf.mxu1  ;;  %v1950_v8 = vand.u32 2147483648, %v1935_v7  ;;  %vm1946_vm8 = vmor %vm1944_vm7, %vm1945_vm6 }
 0x2c8   :  { %v1941_v47 = vsub.f32 1.0, %v1940_v29  ;;  %v1962_v52 = vsel %vm1961_vm4, %v4821_v23, %v1958_v56  ;;  %v1948_v16 = vand.u32 2147483647, %v1935_v7 }
 0x2c9   :  { %v1904_v32 = vadd.f32 %v1903_v4, %v1891_v44  ;;  %4828 = vrcp.f32 %v1938_v35  ;;  %v1967_v21 = vsel %vm1964_vm5, %v1966_v53, %v1962_v52  ;;  %v1951_v2 = vor.u32 1.1754944e-38, %v1950_v8 }
 0x2ca   :  { %v1942_v1 = vmul.f32 %v4823_v20, %v1941_v47  ;;  %vm1949_vm9 = vcmp.eq.f32.partialorder %v1948_v16, 8.507059e+37  ;;  %v1995_v52 = vand.u32 2147483648, %v1938_v35  ;;  %v1993_v7 = vand.u32 2147483647, %v1938_v35 }
 0x2cb   :  { %v2002_v28 = vrot.slane %v1904_v32, 7  ;;  %v1864_v26 = vpop.f32.mrf.mxu2  ;;  %vm1989_vm11 = vweird.f32 %v1938_v35  ;;  %v2018_v16 = vrot.slane %v5658_v15, 7 }
 0x2cc   :  { %v4827_v34 = vpop.eup %4826  ;;  %v1865_v3 = vadd.f32 %v1864_v26, %v5624_v12  ;;  %v1943_v40 = vadd.f32 %v4823_v20, %v1942_v1  ;;  %vm1994_vm13 = vcmp.eq.f32.partialorder %v1993_v7, 8.507059e+37 }
 0x2cd   :  { %v1937_v57 = vadd.f32 1.0, %v4827_v34  ;;  %v2006_v0 = vmul.f32 %v2002_v28, %v1967_v21  ;;  %v1879_v4 = vpop.f32.mrf.mxu3 }
 0x2ce   :  { %v1892_v44 = vpop.f32.mrf.mxu0  ;;  %v1878_v29 = vadd.f32 %v1877_v45, %v1865_v3  ;;  %v1947_v41 = vsel %vm1946_vm8, %v4823_v20, %v1943_v40  ;;  %v1996_v20 = vor.u32 1.1754944e-38, %v1995_v52 }
 0x2cf   :  { %v4829_v23 = vpop.eup %4828  ;;  %4830 = vrcp.f32 %v1937_v57  ;;  %v2008_v32 = vadd.f32 %v2006_v0, %v5544_v33  ;;  %v1952_v1 = vsel %vm1949_vm9, %v1951_v2, %v1947_v41  ;;  %v1980_v4 = vand.u32 2147483648, %v1937_v57 }
 0x2d0   :  { %v1985_v56 = vmul.f32 %v4829_v23, %v1938_v35  ;;  %v2001_v47 = vrot.slane %v1878_v29, 7  ;;  %vm1990_vm10 = vweird.f32 %v4829_v23  ;;  %vm1974_vm15 = vweird.f32 %v1937_v57 }
 0x2d1   :  { %4832 = vtanh.f32 %v2008_v32  ;;  %vm1991_vm12 = vmor %vm1989_vm11, %vm1990_vm10 }
 0x2d2   :  { %v1986_v26 = vsub.f32 1.0, %v1985_v56  ;;  %v2005_v53 = vmul.f32 %v2001_v47, %v1952_v1  ;;  %v1978_v56 = vand.u32 2147483647, %v1937_v57 }
 0x2d3   :  { %v1866_v21 = vpop.f32.mrf.mxu2 }
 0x2d4   :  { %v1987_v28 = vmul.f32 %v4829_v23, %v1986_v26  ;;  %v2007_v40 = vadd.f32 %v2005_v53, %v5551_v10  ;;  %v1981_v26 = vor.u32 1.1754944e-38, %v1980_v4  ;;  %vm1979_vm1 = vcmp.eq.f32.partialorder %v1978_v56, 8.507059e+37  ;;  %v6882_v4 = vld [vmem:[#allocation15_spill] sm:$0xff]  ;;  %v6886_v56 = vld [vmem:[#allocation17_spill] sm:$0xff] }
 0x2d5   :  { %v4831_v34 = vpop.eup %4830  ;;  %v2017_v53 = vrot.slane %v5663_v14, 7 }
 0x2d6   :  { %v1970_v45 = vmul.f32 %v4831_v34, %v1937_v57  ;;  %v1988_v3 = vadd.f32 %v4829_v23, %v1987_v28  ;;  %vm1975_vm14 = vweird.f32 %v4831_v34  ;;  %4834 = vtanh.f32 %v2007_v40 }
 0x2d7   :  { %v4833_v2 = vpop.eup %4832  ;;  %vm1976_vm0 = vmor %vm1974_vm15, %vm1975_vm14 }
 0x2d8   :  { %v1971_v8 = vsub.f32 1.0, %v1970_v45  ;;  %v1992_v0 = vsel %vm1991_vm12, %v4829_v23, %v1988_v3 }
 0x2d9   :  { %v1997_v44 = vsel %vm1994_vm13, %v1996_v20, %v1992_v0  ;;  %v6880_v0 = vld [vmem:[#allocation102_spill] sm:$0xff] }
 0x2da   :  { %v1972_v29 = vmul.f32 %v4831_v34, %v1971_v8  ;;  %v2012_v41 = vsub.f32 1.0, %v1997_v44  ;;  %v2022_v32 = vmul.f32 %v2018_v16, %v1997_v44  ;;  %v6879_v8 = vld [vmem:[#allocation20_spill] sm:$0xff]  ;;  %v6881_v16 = vld [vmem:[#allocation103_spill] sm:$0xff] }
 0x2db   :  { %v6883_v44 = vld [vmem:[#allocation16_spill] sm:$0xff] }
 0x2dc   :  { %v2014_v35 = vmul.f32 %v4833_v2, %v2012_v41  ;;  %v1973_v47 = vadd.f32 %v4831_v34, %v1972_v29  ;;  %v4835_v7 = vpop.eup %4834  ;;  %v6884_v29 = vld [vmem:[#allocation22_spill] sm:$0xff]  ;;  %v6885_v41 = vld [vmem:[#allocation24_spill] sm:$0xff]  ;;  %v6887_v2 = vld [vmem:[#allocation19_spill] sm:$0xff] }
 0x2de   :  { %v5776_v1 = vadd.f32 %v2022_v32, %v2014_v35  ;;  %v1977_v23 = vsel %vm1976_vm0, %v4831_v34, %v1973_v47  ;;  %v6888_v35 = vld [vmem:[#allocation26_spill] sm:$0xff]  ;;  %v6889_v32 = vld [vmem:[#allocation28_spill] sm:$0xff]  ;;  %v6890_v47 = vld [vmem:[#allocation21_spill] sm:$0xff] }
 0x2df   :  { %v1982_v52 = vsel %vm1979_vm1, %v1981_v26, %v1977_v23  ;;  %v6891_v26 = vld [vmem:[#allocation23_spill] sm:$0xff]  ;;  %v6892_v23 = vld [vmem:[#allocation30_spill] sm:$0xff]  ;;  %vm3727_vm1 = vcmask 1040384  }
 0x2e0   :  { %v2011_v21 = vsub.f32 1.0, %v1982_v52  ;;  %v2026_v28 = vpack.c.bf16 %v5776_v1, %v5776_v1  ;;  %v2021_v3 = vmul.f32 %v2017_v53, %v1982_v52  ;;  %v6893_v52 = vld [vmem:[#allocation32_spill] sm:$0xff]  ;;  %v6894_v53 = vld [vmem:[#allocation25_spill] sm:$0xff] }
 0x2e2   :  { %v2013_v45 = vmul.f32 %v4835_v7, %v2011_v21  ;;  %v2031_v57 = vshrl.u32 %v2026_v28, 16  ;;  %v6895_v21 = vld [vmem:[#allocation27_spill] sm:$0xff]  ;;  %v6896_v28 = vld [vmem:[#allocation34_spill] sm:$0xff]  ;;  %v6897_v7 = vld [vmem:[#allocation36_spill] sm:$0xff] }
 0x2e4   :  { %v5781_v20 = vadd.f32 %v2021_v3, %v2013_v45  ;;  %2056 = vmatmul.bf16.vlgmr.msrb.gmra.mxu3 %v2031_v57  ;;  %2082 = vmatmul.bf16.vlgmr.msra.gmra.mxu1 %v2031_v57  ;;  %v6898_v45 = vld [vmem:[#allocation29_spill] sm:$0xff]  ;;  %v6899_v3 = vld [vmem:[#allocation31_spill] sm:$0xff] }
 0x2e5   :  { %2152 = vmatpush.bf16.msrb.mxu3 %v6809_v24  ;;  %2178 = vmatpush.bf16.msra.mxu1 %v6810_v60 }
 0x2e6   :  { %v2025_v34 = vpack.c.bf16 %v5781_v20, %v5781_v20 }
 0x2e8   :  { %v2028_v40 = vshrl.u32 %v2025_v34, 16  ;;  %v6901_v34 = vld [vmem:[#allocation40_spill] sm:$0xff] }
 0x2e9   :  { %2153 = vmatpush.bf16.msrb.mxu3 %v6811_v42  ;;  %2179 = vmatpush.bf16.msra.mxu1 %v6812_v11 }
 0x2ea   :  { %2043 = vmatmul.bf16.vlgmr.msrb.gmra.mxu2 %v2028_v40  ;;  %2069 = vmatmul.bf16.vlgmr.msra.gmra.mxu0 %v2028_v40 }
 0x2eb   :  { %2139 = vmatpush.bf16.msrb.mxu2 %v6813_v6  ;;  %2165 = vmatpush.bf16.msra.mxu0 %v6814_v50 }
 0x2ed   :  { %2154 = vmatpush.bf16.msrb.mxu3 %v6815_v48  ;;  %2180 = vmatpush.bf16.msra.mxu1 %v6816_v54 }
 0x2ef   :  { %2140 = vmatpush.bf16.msrb.mxu2 %v6817_v43  ;;  %2166 = vmatpush.bf16.msra.mxu0 %v6818_v62 }
 0x2f1   :  { %2155 = vmatpush.bf16.msrb.mxu3 %v6819_v59  ;;  %2181 = vmatpush.bf16.msra.mxu1 %v6820_v19 }
 0x2f3   :  { %2141 = vmatpush.bf16.msrb.mxu2 %v6821_v58  ;;  %2167 = vmatpush.bf16.msra.mxu0 %v6822_v37 }
 0x2f4   :  { %2108 = vmatmul.bf16.vlgmr.msra.gmra.mxu3 %v2031_v57  ;;  %2134 = vmatmul.bf16.vlgmr.msrb.gmra.mxu1 %v2031_v57 }
 0x2f5   :  { %2156 = vmatpush.bf16.msrb.mxu3 %v6823_v51  ;;  %2182 = vmatpush.bf16.msra.mxu1 %v6824_v61 }
 0x2f7   :  { %2142 = vmatpush.bf16.msrb.mxu2 %v6825_v22  ;;  %2168 = vmatpush.bf16.msra.mxu0 %v6826_v63 }
 0x2f9   :  { %2157 = vmatpush.bf16.msrb.mxu3 %v6827_v46  ;;  %2183 = vmatpush.bf16.msra.mxu1 %v5446_v18 }
 0x2fa   :  { %2095 = vmatmul.bf16.vlgmr.msra.gmra.mxu2 %v2028_v40  ;;  %2121 = vmatmul.bf16.vlgmr.msrb.gmra.mxu0 %v2028_v40 }
 0x2fb   :  { %2143 = vmatpush.bf16.msrb.mxu2 %v6828_v27  ;;  %2169 = vmatpush.bf16.msra.mxu0 %v6829_v38 }
 0x2fd   :  { %2158 = vmatpush.bf16.msrb.mxu3 %v5453_v39  ;;  %2184 = vmatpush.bf16.msra.mxu1 %v5458_v30 }
 0x2ff   :  { %2144 = vmatpush.bf16.msrb.mxu2 %v6830_v25  ;;  %2170 = vmatpush.bf16.msra.mxu0 %v5443_v55 }
 0x301   :  { %2159 = vmatpush.bf16.msrb.mxu3 %v5465_v31  ;;  %2185 = vmatpush.bf16.msra.mxu1 %v5470_v49 }
 0x303   :  { %2145 = vmatpush.bf16.msrb.mxu2 %v5449_v13  ;;  %2171 = vmatpush.bf16.msra.mxu0 %v5455_v36 }
 0x304   :  { %2160 = vmatmul.bf16.vlgmr.msrb.gmra.mxu3 %v2031_v57  ;;  %2186 = vmatmul.bf16.vlgmr.msra.gmra.mxu1 %v2031_v57  ;;  %v6900_v57 = vld [vmem:[#allocation38_spill] sm:$0xff] }
 0x305   :  { %2330 = vmatpush.bf16.msra.mxu3 %v5166_v5  ;;  %2356 = vmatpush.bf16.msrb.mxu1 %v5170_v9 }
 0x307   :  { %2146 = vmatpush.bf16.msrb.mxu2 %v6880_v0  ;;  %2172 = vmatpush.bf16.msra.mxu0 %v6881_v16 }
 0x309   :  { %2331 = vmatpush.bf16.msra.mxu3 %v5176_v17  ;;  %2357 = vmatpush.bf16.msrb.mxu1 %v6879_v8 }
 0x30a   :  { %2147 = vmatmul.bf16.vlgmr.msrb.gmra.mxu2 %v2028_v40  ;;  %2173 = vmatmul.bf16.vlgmr.msra.gmra.mxu0 %v2028_v40  ;;  %v6902_v40 = vld [vmem:[#allocation33_spill] sm:$0xff] }
 0x30b   :  { %2317 = vmatpush.bf16.msra.mxu2 %v6882_v4  ;;  %2343 = vmatpush.bf16.msrb.mxu0 %v6883_v44  ;;  %v6945_v44 = vld [vmem:[#allocation105_spill] sm:$0xff] }
 0x30d   :  { %2332 = vmatpush.bf16.msra.mxu3 %v6884_v29  ;;  %2358 = vmatpush.bf16.msrb.mxu1 %v6885_v41 }
 0x30f   :  { %2318 = vmatpush.bf16.msra.mxu2 %v6886_v56  ;;  %2344 = vmatpush.bf16.msrb.mxu0 %v6887_v2 }
 0x311   :  { %2333 = vmatpush.bf16.msra.mxu3 %v6888_v35  ;;  %2359 = vmatpush.bf16.msrb.mxu1 %v6889_v32 }
 0x313   :  { %2319 = vmatpush.bf16.msra.mxu2 %v6890_v47  ;;  %2345 = vmatpush.bf16.msrb.mxu0 %v6891_v26 }
 0x315   :  { %2334 = vmatpush.bf16.msra.mxu3 %v6892_v23  ;;  %2360 = vmatpush.bf16.msrb.mxu1 %v6893_v52  ;;  %v6903_v23 = vld [vmem:[#allocation35_spill] sm:$0xff] }
 0x316   :  { %v6904_v52 = vld [vmem:[#allocation43_spill] sm:$0xff] }
 0x317   :  { %2320 = vmatpush.bf16.msra.mxu2 %v6894_v53  ;;  %2346 = vmatpush.bf16.msrb.mxu0 %v6895_v21  ;;  %v6905_v53 = vld [vmem:[#allocation49_spill] sm:$0xff]  ;;  %v6906_v21 = vld [vmem:[#allocation47_spill] sm:$0xff] }
 0x319   :  { %2335 = vmatpush.bf16.msra.mxu3 %v6896_v28  ;;  %2361 = vmatpush.bf16.msrb.mxu1 %v6897_v7  ;;  %v6907_v28 = vld [vmem:[#allocation50_spill] sm:$0xff]  ;;  %v6908_v7 = vld [vmem:[#allocation37_spill] sm:$0xff] }
 0x31b   :  { %2321 = vmatpush.bf16.msra.mxu2 %v6898_v45  ;;  %2347 = vmatpush.bf16.msrb.mxu0 %v6899_v3  ;;  %v6909_v45 = vld [vmem:[#allocation39_spill] sm:$0xff]  ;;  %v6910_v3 = vld [vmem:[#allocation52_spill] sm:$0xff] }
 0x31d   :  { %2336 = vmatpush.bf16.msra.mxu3 %v6900_v57  ;;  %2362 = vmatpush.bf16.msrb.mxu1 %v6901_v34  ;;  %v6911_v57 = vld [vmem:[#allocation54_spill] sm:$0xff] }
 0x31e   :  { %v6912_v34 = vld [vmem:[#allocation42_spill] sm:$0xff] }
 0x31f   :  { %2322 = vmatpush.bf16.msra.mxu2 %v6902_v40  ;;  %2348 = vmatpush.bf16.msrb.mxu0 %v6903_v23  ;;  %v6913_v40 = vld [vmem:[#allocation44_spill] sm:$0xff]  ;;  %v6914_v23 = vld [vmem:[#allocation45_spill] sm:$0xff] }
 0x321   :  { %2337 = vmatpush.bf16.msra.mxu3 %v6904_v52  ;;  %2363 = vmatpush.bf16.msrb.mxu1 %v6905_v53  ;;  %v6915_v52 = vld [vmem:[#allocation48_spill] sm:$0xff] }
 0x322   :  { %v6916_v53 = vld [vmem:[#allocation56_spill] sm:$0xff] }
 0x323   :  { %2323 = vmatpush.bf16.msra.mxu2 %v6908_v7  ;;  %2349 = vmatpush.bf16.msrb.mxu0 %v6909_v45  ;;  %v6919_v7 = vld [vmem:[#allocation53_spill] sm:$0xff]  ;;  %v6920_v45 = vld [vmem:[#allocation60_spill] sm:$0xff] }
 0x325   :  { %2382 = vmatpush.bf16.msrb.mxu3 %v6906_v21  ;;  %2408 = vmatpush.bf16.msra.mxu1 %v6907_v28  ;;  %v6917_v21 = vld [vmem:[#allocation58_spill] sm:$0xff]  ;;  %v6918_v28 = vld [vmem:[#allocation51_spill] sm:$0xff] }
 0x327   :  { %2324 = vmatpush.bf16.msra.mxu2 %v6912_v34  ;;  %2350 = vmatpush.bf16.msrb.mxu0 %v6913_v40  ;;  %v6923_v34 = vld [vmem:[#allocation57_spill] sm:$0xff]  ;;  %v6924_v40 = vld [vmem:[#allocation64_spill] sm:$0xff] }
 0x329   :  { %2383 = vmatpush.bf16.msrb.mxu3 %v6910_v3  ;;  %2409 = vmatpush.bf16.msra.mxu1 %v6911_v57  ;;  %v6921_v3 = vld [vmem:[#allocation62_spill] sm:$0xff]  ;;  %v6922_v57 = vld [vmem:[#allocation55_spill] sm:$0xff] }
 0x32b   :  { %2369 = vmatpush.bf16.msrb.mxu2 %v6914_v23  ;;  %2395 = vmatpush.bf16.msra.mxu0 %v6915_v52  ;;  %v6925_v23 = vld [vmem:[#allocation66_spill] sm:$0xff]  ;;  %v6926_v52 = vld [vmem:[#allocation59_spill] sm:$0xff] }
 0x32d   :  { %2384 = vmatpush.bf16.msrb.mxu3 %v6916_v53  ;;  %2410 = vmatpush.bf16.msra.mxu1 %v6917_v21  ;;  %v6927_v53 = vld [vmem:[#allocation61_spill] sm:$0xff]  ;;  %v6928_v21 = vld [vmem:[#allocation68_spill] sm:$0xff] }
 0x32f   :  { %2370 = vmatpush.bf16.msrb.mxu2 %v6918_v28  ;;  %2396 = vmatpush.bf16.msra.mxu0 %v6919_v7  ;;  %v6929_v28 = vld [vmem:[#allocation70_spill] sm:$0xff]  ;;  %v6930_v7 = vld [vmem:[#allocation63_spill] sm:$0xff] }
 0x331   :  { %2385 = vmatpush.bf16.msrb.mxu3 %v6920_v45  ;;  %2411 = vmatpush.bf16.msra.mxu1 %v6921_v3  ;;  %v6931_v45 = vld [vmem:[#allocation65_spill] sm:$0xff]  ;;  %v6932_v3 = vld [vmem:[#allocation72_spill] sm:$0xff] }
 0x333   :  { %2371 = vmatpush.bf16.msrb.mxu2 %v6922_v57  ;;  %2397 = vmatpush.bf16.msra.mxu0 %v6923_v34  ;;  %v6933_v57 = vld [vmem:[#allocation74_spill] sm:$0xff]  ;;  %v6934_v34 = vld [vmem:[#allocation67_spill] sm:$0xff] }
 0x335   :  { %2386 = vmatpush.bf16.msrb.mxu3 %v6924_v40  ;;  %2412 = vmatpush.bf16.msra.mxu1 %v6925_v23  ;;  %v6935_v40 = vld [vmem:[#allocation69_spill] sm:$0xff]  ;;  %v6936_v23 = vld [vmem:[#allocation76_spill] sm:$0xff] }
 0x337   :  { %2372 = vmatpush.bf16.msrb.mxu2 %v6926_v52  ;;  %2398 = vmatpush.bf16.msra.mxu0 %v6927_v53  ;;  %v6937_v52 = vld [vmem:[#allocation81_spill] sm:$0xff]  ;;  %v6938_v53 = vld [vmem:[#allocation71_spill] sm:$0xff] }
 0x339   :  { %2387 = vmatpush.bf16.msrb.mxu3 %v6928_v21  ;;  %2413 = vmatpush.bf16.msra.mxu1 %v6929_v28  ;;  %v6939_v21 = vld [vmem:[#allocation73_spill] sm:$0xff]  ;;  %v6940_v28 = vld [vmem:[#allocation75_spill] sm:$0xff] }
 0x33b   :  { %2373 = vmatpush.bf16.msrb.mxu2 %v6930_v7  ;;  %2399 = vmatpush.bf16.msra.mxu0 %v6931_v45  ;;  %v6941_v7 = vld [vmem:[#allocation78_spill] sm:$0xff] }
 0x33d   :  { %2388 = vmatpush.bf16.msrb.mxu3 %v6932_v3  ;;  %2414 = vmatpush.bf16.msra.mxu1 %v6933_v57  ;;  %v6942_v57 = vld [vmem:[#allocation108_spill] sm:$0xff] }
 0x33f   :  { %2374 = vmatpush.bf16.msrb.mxu2 %v6934_v34  ;;  %2400 = vmatpush.bf16.msra.mxu0 %v6935_v40 }
 0x341   :  { %2389 = vmatpush.bf16.msrb.mxu3 %v6936_v23  ;;  %2415 = vmatpush.bf16.msra.mxu1 %v6937_v52  ;;  %v6943_v23 = vld [vmem:[#allocation104_spill] sm:$0xff]  ;;  %v6944_v52 = vld [vmem:[#allocation109_spill] sm:$0xff] }
 0x343   :  { %2375 = vmatpush.bf16.msrb.mxu2 %v6938_v53  ;;  %2401 = vmatpush.bf16.msra.mxu0 %v6939_v21 }
 0x347   :  { %2376 = vmatpush.bf16.msrb.mxu2 %v6940_v28  ;;  %2402 = vmatpush.bf16.msra.mxu0 %v6941_v7 }
 0x361   :  { %v2083_v45 = vpop.f32.mrf.mxu1 }
 0x367   :  { %v2057_v3 = vpop.f32.mrf.mxu3  ;;  %v2070_v26 = vpop.f32.mrf.mxu0 }
 0x368   :  { %v2071_v47 = vadd.f32 %v2070_v26, %v6942_v57 }
 0x369   :  { %v2085_v34 = vpop.f32.mrf.mxu1 }
 0x36a   :  { %v2084_v32 = vadd.f32 %v2083_v45, %v2071_v47 }
 0x36c   :  { %v2196_v40 = vrot.slane %v2084_v32, 6  ;;  %v6946_v32 = vld [vmem:[#allocation110_spill] sm:$0xff] }
 0x36d   :  { %v2044_v35 = vpop.f32.mrf.mxu2 }
 0x36e   :  { %v2204_v2 = vadd.f32 %v2196_v40, %v6943_v23  ;;  %v2045_v56 = vadd.f32 %v2044_v35, %v6944_v52 }
 0x36f   :  { %v2059_v53 = vpop.f32.mrf.mxu3  ;;  %v2072_v41 = vpop.f32.mrf.mxu0 }
 0x370   :  { %v4565_v21 = vmul.f32 -1.442695, %v2204_v2  ;;  %v2058_v29 = vadd.f32 %v2057_v3, %v2045_v56  ;;  %v6947_v53 = vld [vmem:[#allocation106_spill] sm:$0xff] }
 0x371   :  { %v2135_v28 = vpop.f32.mrf.mxu1 }
 0x372   :  { %4836 = vpow2.f32 %v4565_v21  ;;  %v2195_v7 = vrot.slane %v2058_v29, 6  ;;  %v6948_v29 = vld [vmem:[#allocation111_spill] sm:$0xff] }
 0x374   :  { %v2203_v4 = vadd.f32 %v2195_v7, %v6945_v44 }
 0x375   :  { %v2046_v16 = vpop.f32.mrf.mxu2 }
 0x376   :  { %v4564_v0 = vmul.f32 -1.442695, %v2203_v4 }
 0x377   :  { %v2109_v26 = vpop.f32.mrf.mxu3  ;;  %v2122_v34 = vpop.f32.mrf.mxu0 }
 0x378   :  { %v4837_v47 = vpop.eup %4836  ;;  %4838 = vpow2.f32 %v4564_v0  ;;  %v2123_v45 = vadd.f32 %v2122_v34, %v6946_v32 }
 0x379   :  { %v2220_v40 = vadd.f32 1.0, %v4837_v47  ;;  %v2137_v23 = vpop.f32.mrf.mxu1 }
 0x37a   :  { %v2136_v35 = vadd.f32 %v2135_v28, %v2123_v45  ;;  %v6949_v28 = vld [vmem:[#allocation107_spill] sm:$0xff] }
 0x37b   :  { %4840 = vrcp.f32 %v2220_v40  ;;  %vm2243_vm3 = vweird.f32 %v2220_v40 }
 0x37c   :  { %v2198_v41 = vrot.slane %v2136_v35, 6 }
 0x37d   :  { %v2096_v2 = vpop.f32.mrf.mxu2 }
 0x37e   :  { %v4839_v56 = vpop.eup %4838  ;;  %v2206_v21 = vadd.f32 %v2198_v41, %v6947_v53  ;;  %v2097_v3 = vadd.f32 %v2096_v2, %v6948_v29 }
 0x37f   :  { %v2219_v7 = vadd.f32 1.0, %v4839_v56  ;;  %v2111_v16 = vpop.f32.mrf.mxu3  ;;  %v2124_v4 = vpop.f32.mrf.mxu0  ;;  %v2249_v56 = vand.u32 2147483648, %v2220_v40 }
 0x380   :  { %v4567_v44 = vmul.f32 -1.442695, %v2206_v21  ;;  %v2110_v52 = vadd.f32 %v2109_v26, %v2097_v3  ;;  %v6950_v26 = vld [vmem:[#allocation112_spill] sm:$0xff] }
 0x381   :  { %v4841_v57 = vpop.eup %4840  ;;  %4842 = vrcp.f32 %v2219_v7  ;;  %v2187_v0 = vpop.f32.mrf.mxu1  ;;  %vm2228_vm7 = vweird.f32 %v2219_v7 }
 0x382   :  { %4844 = vpow2.f32 %v4567_v44  ;;  %v2197_v34 = vrot.slane %v2110_v52, 6  ;;  %v2239_v23 = vmul.f32 %v4841_v57, %v2220_v40  ;;  %vm2244_vm2 = vweird.f32 %v4841_v57 }
 0x383   :  { %v2247_v52 = vand.u32 2147483647, %v2220_v40  ;;  %vm2245_vm4 = vmor %vm2243_vm3, %vm2244_vm2  ;;  %vm3730_vm3 = vcmask 1041408  }
 0x384   :  { %v2205_v47 = vadd.f32 %v2197_v34, %v6949_v28  ;;  %v2240_v45 = vsub.f32 1.0, %v2239_v23 }
 0x385   :  { %v2098_v35 = vpop.f32.mrf.mxu2  ;;  %vm2248_vm5 = vcmp.eq.f32.partialorder %v2247_v52, 8.507059e+37 }
 0x386   :  { %v4566_v32 = vmul.f32 -1.442695, %v2205_v47  ;;  %v2241_v8 = vmul.f32 %v4841_v57, %v2240_v45  ;;  %v2250_v45 = vor.u32 1.1754944e-38, %v2249_v56 }
 0x387   :  { %v4843_v41 = vpop.eup %4842  ;;  %v2161_v53 = vpop.f32.mrf.mxu3 }
 0x388   :  { %v2174_v2 = vpop.f32.mrf.mxu0  ;;  %v4845_v16 = vpop.eup %4844  ;;  %4846 = vpow2.f32 %v4566_v32  ;;  %v2242_v3 = vadd.f32 %v4841_v57, %v2241_v8  ;;  %v2224_v4 = vmul.f32 %v4843_v41, %v2219_v7  ;;  %vm2229_vm6 = vweird.f32 %v4843_v41 }
 0x389   :  { %v2175_v21 = vadd.f32 %v2174_v2, %v6950_v26  ;;  %v2222_v44 = vadd.f32 1.0, %v4845_v16  ;;  %v2189_v29 = vpop.f32.mrf.mxu1  ;;  %v2234_v16 = vand.u32 2147483648, %v2219_v7  ;;  %vm2230_vm8 = vmor %vm2228_vm7, %vm2229_vm6 }
 0x38a   :  { %v2225_v23 = vsub.f32 1.0, %v2224_v4  ;;  %v2246_v47 = vsel %vm2245_vm4, %v4841_v57, %v2242_v3  ;;  %v2232_v29 = vand.u32 2147483647, %v2219_v7 }
 0x38b   :  { %v2188_v34 = vadd.f32 %v2187_v0, %v2175_v21  ;;  %4848 = vrcp.f32 %v2222_v44  ;;  %v2251_v36 = vsel %vm2248_vm5, %v2250_v45, %v2246_v47  ;;  %v2235_v52 = vor.u32 1.1754944e-38, %v2234_v16 }
 0x38c   :  { %v2226_v28 = vmul.f32 %v4843_v41, %v2225_v23  ;;  %vm2233_vm9 = vcmp.eq.f32.partialorder %v2232_v29, 8.507059e+37  ;;  %v2279_v47 = vand.u32 2147483648, %v2222_v44  ;;  %v2277_v7 = vand.u32 2147483647, %v2222_v44 }
 0x38d   :  { %v2286_v35 = vrot.slane %v2188_v34, 6  ;;  %v2148_v17 = vpop.f32.mrf.mxu2  ;;  %vm2273_vm11 = vweird.f32 %v2222_v44 }
 0x38e   :  { %v4847_v32 = vpop.eup %4846  ;;  %v2149_v8 = vadd.f32 %v2148_v17, %v5624_v12  ;;  %v2227_v2 = vadd.f32 %v4843_v41, %v2226_v28  ;;  %vm2278_vm13 = vcmp.eq.f32.partialorder %v2277_v7, 8.507059e+37 }
 0x38f   :  { %v2221_v26 = vadd.f32 1.0, %v4847_v32  ;;  %v2290_v40 = vmul.f32 %v2286_v35, %v2251_v36  ;;  %v2163_v0 = vpop.f32.mrf.mxu3 }
 0x390   :  { %v2176_v21 = vpop.f32.mrf.mxu0  ;;  %v2162_v4 = vadd.f32 %v2161_v53, %v2149_v8  ;;  %v2231_v56 = vsel %vm2230_vm8, %v4843_v41, %v2227_v2  ;;  %v2280_v41 = vor.u32 1.1754944e-38, %v2279_v47 }
 0x391   :  { %v4849_v57 = vpop.eup %4848  ;;  %4850 = vrcp.f32 %v2221_v26  ;;  %v2292_v34 = vadd.f32 %v2290_v40, %v5544_v33  ;;  %v2236_v28 = vsel %vm2233_vm9, %v2235_v52, %v2231_v56  ;;  %v2264_v29 = vand.u32 2147483648, %v2221_v26 }
 0x392   :  { %v2269_v3 = vmul.f32 %v4849_v57, %v2222_v44  ;;  %v2285_v23 = vrot.slane %v2162_v4, 6  ;;  %vm2274_vm10 = vweird.f32 %v4849_v57  ;;  %v2302_v21 = vrot.slane %v5776_v1, 7 }
 0x393   :  { %4852 = vtanh.f32 %v2292_v34  ;;  %vm2275_vm12 = vmor %vm2273_vm11, %vm2274_vm10  ;;  %vm2258_vm15 = vweird.f32 %v2221_v26 }
 0x394   :  { %v2270_v17 = vsub.f32 1.0, %v2269_v3  ;;  %v2289_v45 = vmul.f32 %v2285_v23, %v2236_v28  ;;  %v2262_v3 = vand.u32 2147483647, %v2221_v26 }
 0x395   :  { %v2150_v36 = vpop.f32.mrf.mxu2 }
 0x396   :  { %v2271_v35 = vmul.f32 %v4849_v57, %v2270_v17  ;;  %v2291_v2 = vadd.f32 %v2289_v45, %v5551_v10  ;;  %v2265_v17 = vor.u32 1.1754944e-38, %v2264_v29  ;;  %vm2263_vm2 = vcmp.eq.f32.partialorder %v2262_v3, 8.507059e+37  ;;  %v6953_v29 = vld [vmem:[#allocation20_spill] sm:$0xff]  ;;  %v6958_v3 = vld [vmem:[#allocation22_spill] sm:$0xff] }
 0x397   :  { %v4851_v32 = vpop.eup %4850  ;;  %v2301_v36 = vrot.slane %v5781_v20, 7 }
 0x398   :  { %v2254_v53 = vmul.f32 %v4851_v32, %v2221_v26  ;;  %v2272_v8 = vadd.f32 %v4849_v57, %v2271_v35  ;;  %vm2259_vm14 = vweird.f32 %v4851_v32  ;;  %4854 = vtanh.f32 %v2291_v2 }
 0x399   :  { %v4853_v52 = vpop.eup %4852  ;;  %vm2260_vm0 = vmor %vm2258_vm15, %vm2259_vm14  ;;  %v3729_v26 = vsel %vm3727_vm1, %v5658_v15, %v5776_v1  ;;  %v3728_v15 = vsel %vm3727_vm1, %v5663_v14, %v5781_v20  ;;  %v6951_v14 = vld [vmem:[#allocation101_spill] sm:$0xff]  ;;  %v6952_v20 = vld [vmem:[#allocation18_spill] sm:$0xff] }
 0x39a   :  { %v2255_v16 = vsub.f32 1.0, %v2254_v53  ;;  %v2276_v40 = vsel %vm2275_vm12, %v4849_v57, %v2272_v8 }
 0x39b   :  { %v2281_v0 = vsel %vm2278_vm13, %v2280_v41, %v2276_v40 }
 0x39c   :  { %v2256_v4 = vmul.f32 %v4851_v32, %v2255_v16  ;;  %v2296_v56 = vsub.f32 1.0, %v2281_v0  ;;  %v2306_v34 = vmul.f32 %v2302_v21, %v2281_v0  ;;  %v6954_v0 = vld [vmem:[#allocation102_spill] sm:$0xff]  ;;  %v6955_v21 = vld [vmem:[#allocation103_spill] sm:$0xff] }
 0x39e   :  { %v2298_v44 = vmul.f32 %v4853_v52, %v2296_v56  ;;  %v2257_v23 = vadd.f32 %v4851_v32, %v2256_v4  ;;  %v4855_v7 = vpop.eup %4854  ;;  %v6956_v4 = vld [vmem:[#allocation15_spill] sm:$0xff]  ;;  %v6957_v56 = vld [vmem:[#allocation16_spill] sm:$0xff] }
 0x39f   :  { %v6959_v52 = vld [vmem:[#allocation24_spill] sm:$0xff] }
 0x3a0   :  { %v5894_v28 = vadd.f32 %v2306_v34, %v2298_v44  ;;  %v2261_v57 = vsel %vm2260_vm0, %v4851_v32, %v2257_v23  ;;  %v6960_v44 = vld [vmem:[#allocation17_spill] sm:$0xff]  ;;  %v6961_v34 = vld [vmem:[#allocation19_spill] sm:$0xff]  ;;  %v6962_v23 = vld [vmem:[#allocation26_spill] sm:$0xff] }
 0x3a1   :  { %v2266_v47 = vsel %vm2263_vm2, %v2265_v17, %v2261_v57  ;;  %v6963_v17 = vld [vmem:[#allocation28_spill] sm:$0xff]  ;;  %v6964_v57 = vld [vmem:[#allocation21_spill] sm:$0xff] }
 0x3a2   :  { %v2295_v45 = vsub.f32 1.0, %v2266_v47  ;;  %v2310_v35 = vpack.c.bf16 %v5894_v28, %v5894_v28  ;;  %v5904_v53 = vsel %vm3730_vm3, %v3729_v26, %v5894_v28  ;;  %v2305_v32 = vmul.f32 %v2301_v36, %v2266_v47  ;;  %v6965_v47 = vld [vmem:[#allocation23_spill] sm:$0xff]  ;;  %v6967_v36 = vld [vmem:[#allocation32_spill] sm:$0xff] }
 0x3a3   :  { %v6969_v26 = vld [vmem:[#allocation27_spill] sm:$0xff] }
 0x3a4   :  { %v2297_v8 = vmul.f32 %v4855_v7, %v2295_v45  ;;  %v2314_v41 = vrot.slane %v2310_v35, 1  ;;  %v6966_v45 = vld [vmem:[#allocation30_spill] sm:$0xff]  ;;  %v6968_v35 = vld [vmem:[#allocation25_spill] sm:$0xff] }
 0x3a5   :  { %v6970_v7 = vld [vmem:[#allocation34_spill] sm:$0xff] }
 0x3a6   :  { %v5906_v2 = vadd.f32 %v2305_v32, %v2297_v8  ;;  %2338 = vmatmul.bf16.vlgmr.msra.gmra.mxu3 %v2314_v41  ;;  %2364 = vmatmul.bf16.vlgmr.msrb.gmra.mxu1 %v2314_v41  ;;  %v6971_v8 = vld [vmem:[#allocation36_spill] sm:$0xff]  ;;  %v6972_v32 = vld [vmem:[#allocation29_spill] sm:$0xff] }
 0x3a7   :  { %2434 = vmatpush.bf16.msra.mxu3 %v6809_v24  ;;  %2460 = vmatpush.bf16.msrb.mxu1 %v6810_v60 }
 0x3a8   :  { %v2309_v1 = vpack.c.bf16 %v5906_v2, %v5906_v2  ;;  %v5917_v16 = vsel %vm3730_vm3, %v3728_v15, %v5906_v2  ;;  %v6974_v15 = vld [vmem:[#allocation38_spill] sm:$0xff] }
 0x3aa   :  { %v2313_v40 = vrot.slane %v2309_v1, 1  ;;  %v6975_v1 = vld [vmem:[#allocation40_spill] sm:$0xff] }
 0x3ab   :  { %2435 = vmatpush.bf16.msra.mxu3 %v6811_v42  ;;  %2461 = vmatpush.bf16.msrb.mxu1 %v6812_v11 }
 0x3ac   :  { %2325 = vmatmul.bf16.vlgmr.msra.gmra.mxu2 %v2313_v40  ;;  %2351 = vmatmul.bf16.vlgmr.msrb.gmra.mxu0 %v2313_v40 }
 0x3ad   :  { %2421 = vmatpush.bf16.msra.mxu2 %v6813_v6  ;;  %2447 = vmatpush.bf16.msrb.mxu0 %v6814_v50 }
 0x3af   :  { %2436 = vmatpush.bf16.msra.mxu3 %v6815_v48  ;;  %2462 = vmatpush.bf16.msrb.mxu1 %v6816_v54 }
 0x3b1   :  { %2422 = vmatpush.bf16.msra.mxu2 %v6817_v43  ;;  %2448 = vmatpush.bf16.msrb.mxu0 %v6818_v62 }
 0x3b3   :  { %2437 = vmatpush.bf16.msra.mxu3 %v6819_v59  ;;  %2463 = vmatpush.bf16.msrb.mxu1 %v6820_v19 }
 0x3b5   :  { %2423 = vmatpush.bf16.msra.mxu2 %v6821_v58  ;;  %2449 = vmatpush.bf16.msrb.mxu0 %v6822_v37 }
 0x3b6   :  { %2390 = vmatmul.bf16.vlgmr.msrb.gmra.mxu3 %v2314_v41  ;;  %2416 = vmatmul.bf16.vlgmr.msra.gmra.mxu1 %v2314_v41 }
 0x3b7   :  { %2438 = vmatpush.bf16.msra.mxu3 %v6823_v51  ;;  %2464 = vmatpush.bf16.msrb.mxu1 %v6824_v61 }
 0x3b9   :  { %2424 = vmatpush.bf16.msra.mxu2 %v6825_v22  ;;  %2450 = vmatpush.bf16.msrb.mxu0 %v6826_v63 }
 0x3bb   :  { %2439 = vmatpush.bf16.msra.mxu3 %v6827_v46  ;;  %2465 = vmatpush.bf16.msrb.mxu1 %v5446_v18 }
 0x3bc   :  { %2377 = vmatmul.bf16.vlgmr.msrb.gmra.mxu2 %v2313_v40  ;;  %2403 = vmatmul.bf16.vlgmr.msra.gmra.mxu0 %v2313_v40 }
 0x3bd   :  { %2425 = vmatpush.bf16.msra.mxu2 %v6828_v27  ;;  %2451 = vmatpush.bf16.msrb.mxu0 %v6829_v38 }
 0x3bf   :  { %2440 = vmatpush.bf16.msra.mxu3 %v5453_v39  ;;  %2466 = vmatpush.bf16.msrb.mxu1 %v5458_v30 }
 0x3c1   :  { %2426 = vmatpush.bf16.msra.mxu2 %v6830_v25  ;;  %2452 = vmatpush.bf16.msrb.mxu0 %v5443_v55 }
 0x3c3   :  { %2441 = vmatpush.bf16.msra.mxu3 %v5465_v31  ;;  %2467 = vmatpush.bf16.msrb.mxu1 %v5470_v49 }
 0x3c5   :  { %2427 = vmatpush.bf16.msra.mxu2 %v5449_v13  ;;  %2453 = vmatpush.bf16.msrb.mxu0 %v6951_v14 }
 0x3c6   :  { %2442 = vmatmul.bf16.vlgmr.msra.gmra.mxu3 %v2314_v41  ;;  %2468 = vmatmul.bf16.vlgmr.msrb.gmra.mxu1 %v2314_v41  ;;  %v6973_v41 = vld [vmem:[#allocation31_spill] sm:$0xff] }
 0x3c7   :  { %2616 = vmatpush.bf16.msrb.mxu3 %v5166_v5  ;;  %2642 = vmatpush.bf16.msra.mxu1 %v5170_v9 }
 0x3c9   :  { %2428 = vmatpush.bf16.msra.mxu2 %v6954_v0  ;;  %2454 = vmatpush.bf16.msrb.mxu0 %v6955_v21 }
 0x3cb   :  { %2617 = vmatpush.bf16.msrb.mxu3 %v6952_v20  ;;  %2643 = vmatpush.bf16.msra.mxu1 %v6953_v29 }
 0x3cc   :  { %2429 = vmatmul.bf16.vlgmr.msra.gmra.mxu2 %v2313_v40  ;;  %2455 = vmatmul.bf16.vlgmr.msrb.gmra.mxu0 %v2313_v40  ;;  %v6976_v40 = vld [vmem:[#allocation33_spill] sm:$0xff] }
 0x3cd   :  { %2603 = vmatpush.bf16.msrb.mxu2 %v6956_v4  ;;  %2629 = vmatpush.bf16.msra.mxu0 %v6957_v56  ;;  %v7019_v56 = vld [vmem:[#allocation105_spill] sm:$0xff] }
 0x3cf   :  { %2618 = vmatpush.bf16.msrb.mxu3 %v6958_v3  ;;  %2644 = vmatpush.bf16.msra.mxu1 %v6959_v52 }
 0x3d1   :  { %2604 = vmatpush.bf16.msrb.mxu2 %v6960_v44  ;;  %2630 = vmatpush.bf16.msra.mxu0 %v6961_v34 }
 0x3d3   :  { %2619 = vmatpush.bf16.msrb.mxu3 %v6962_v23  ;;  %2645 = vmatpush.bf16.msra.mxu1 %v6963_v17 }
 0x3d5   :  { %2605 = vmatpush.bf16.msrb.mxu2 %v6964_v57  ;;  %2631 = vmatpush.bf16.msra.mxu0 %v6965_v47 }
 0x3d7   :  { %2620 = vmatpush.bf16.msrb.mxu3 %v6966_v45  ;;  %2646 = vmatpush.bf16.msra.mxu1 %v6967_v36  ;;  %v6977_v45 = vld [vmem:[#allocation35_spill] sm:$0xff] }
 0x3d8   :  { %v6978_v36 = vld [vmem:[#allocation43_spill] sm:$0xff] }
 0x3d9   :  { %2606 = vmatpush.bf16.msrb.mxu2 %v6968_v35  ;;  %2632 = vmatpush.bf16.msra.mxu0 %v6969_v26  ;;  %v6979_v35 = vld [vmem:[#allocation49_spill] sm:$0xff]  ;;  %v6980_v26 = vld [vmem:[#allocation47_spill] sm:$0xff] }
 0x3db   :  { %2621 = vmatpush.bf16.msrb.mxu3 %v6970_v7  ;;  %2647 = vmatpush.bf16.msra.mxu1 %v6971_v8  ;;  %v6981_v7 = vld [vmem:[#allocation50_spill] sm:$0xff]  ;;  %v6982_v8 = vld [vmem:[#allocation37_spill] sm:$0xff] }
 0x3dd   :  { %2607 = vmatpush.bf16.msrb.mxu2 %v6972_v32  ;;  %2633 = vmatpush.bf16.msra.mxu0 %v6973_v41  ;;  %v6983_v32 = vld [vmem:[#allocation39_spill] sm:$0xff]  ;;  %v6984_v41 = vld [vmem:[#allocation52_spill] sm:$0xff] }
 0x3df   :  { %2622 = vmatpush.bf16.msrb.mxu3 %v6974_v15  ;;  %2648 = vmatpush.bf16.msra.mxu1 %v6975_v1  ;;  %v6985_v15 = vld [vmem:[#allocation54_spill] sm:$0xff] }
 0x3e0   :  { %v6986_v1 = vld [vmem:[#allocation42_spill] sm:$0xff] }
 0x3e1   :  { %2608 = vmatpush.bf16.msrb.mxu2 %v6976_v40  ;;  %2634 = vmatpush.bf16.msra.mxu0 %v6977_v45  ;;  %v6987_v40 = vld [vmem:[#allocation44_spill] sm:$0xff]  ;;  %v6988_v45 = vld [vmem:[#allocation45_spill] sm:$0xff] }
 0x3e3   :  { %2623 = vmatpush.bf16.msrb.mxu3 %v6978_v36  ;;  %2649 = vmatpush.bf16.msra.mxu1 %v6979_v35  ;;  %v6989_v36 = vld [vmem:[#allocation48_spill] sm:$0xff] }
 0x3e4   :  { %v6990_v35 = vld [vmem:[#allocation56_spill] sm:$0xff] }
 0x3e5   :  { %2609 = vmatpush.bf16.msrb.mxu2 %v6982_v8  ;;  %2635 = vmatpush.bf16.msra.mxu0 %v6983_v32  ;;  %v6993_v8 = vld [vmem:[#allocation53_spill] sm:$0xff]  ;;  %v6994_v32 = vld [vmem:[#allocation60_spill] sm:$0xff] }
 0x3e7   :  { %2668 = vmatpush.bf16.msra.mxu3 %v6980_v26  ;;  %2694 = vmatpush.bf16.msrb.mxu1 %v6981_v7  ;;  %v6991_v26 = vld [vmem:[#allocation58_spill] sm:$0xff]  ;;  %v6992_v7 = vld [vmem:[#allocation51_spill] sm:$0xff] }
 0x3e9   :  { %2610 = vmatpush.bf16.msrb.mxu2 %v6986_v1  ;;  %2636 = vmatpush.bf16.msra.mxu0 %v6987_v40  ;;  %v6997_v1 = vld [vmem:[#allocation57_spill] sm:$0xff]  ;;  %v6998_v40 = vld [vmem:[#allocation64_spill] sm:$0xff] }
 0x3eb   :  { %2669 = vmatpush.bf16.msra.mxu3 %v6984_v41  ;;  %2695 = vmatpush.bf16.msrb.mxu1 %v6985_v15  ;;  %v6995_v41 = vld [vmem:[#allocation62_spill] sm:$0xff]  ;;  %v6996_v15 = vld [vmem:[#allocation55_spill] sm:$0xff] }
 0x3ed   :  { %2655 = vmatpush.bf16.msra.mxu2 %v6988_v45  ;;  %2681 = vmatpush.bf16.msrb.mxu0 %v6989_v36  ;;  %v6999_v45 = vld [vmem:[#allocation66_spill] sm:$0xff]  ;;  %v7000_v36 = vld [vmem:[#allocation59_spill] sm:$0xff] }
 0x3ef   :  { %2670 = vmatpush.bf16.msra.mxu3 %v6990_v35  ;;  %2696 = vmatpush.bf16.msrb.mxu1 %v6991_v26  ;;  %v7001_v35 = vld [vmem:[#allocation61_spill] sm:$0xff]  ;;  %v7002_v26 = vld [vmem:[#allocation68_spill] sm:$0xff] }
 0x3f1   :  { %2656 = vmatpush.bf16.msra.mxu2 %v6992_v7  ;;  %2682 = vmatpush.bf16.msrb.mxu0 %v6993_v8  ;;  %v7003_v7 = vld [vmem:[#allocation70_spill] sm:$0xff]  ;;  %v7004_v8 = vld [vmem:[#allocation63_spill] sm:$0xff] }
 0x3f3   :  { %2671 = vmatpush.bf16.msra.mxu3 %v6994_v32  ;;  %2697 = vmatpush.bf16.msrb.mxu1 %v6995_v41  ;;  %v7005_v32 = vld [vmem:[#allocation65_spill] sm:$0xff]  ;;  %v7006_v41 = vld [vmem:[#allocation72_spill] sm:$0xff] }
 0x3f5   :  { %2657 = vmatpush.bf16.msra.mxu2 %v6996_v15  ;;  %2683 = vmatpush.bf16.msrb.mxu0 %v6997_v1  ;;  %v7007_v15 = vld [vmem:[#allocation74_spill] sm:$0xff]  ;;  %v7008_v1 = vld [vmem:[#allocation67_spill] sm:$0xff] }
 0x3f7   :  { %2672 = vmatpush.bf16.msra.mxu3 %v6998_v40  ;;  %2698 = vmatpush.bf16.msrb.mxu1 %v6999_v45  ;;  %v7009_v40 = vld [vmem:[#allocation69_spill] sm:$0xff]  ;;  %v7010_v45 = vld [vmem:[#allocation76_spill] sm:$0xff] }
 0x3f9   :  { %2658 = vmatpush.bf16.msra.mxu2 %v7000_v36  ;;  %2684 = vmatpush.bf16.msrb.mxu0 %v7001_v35  ;;  %v7011_v36 = vld [vmem:[#allocation81_spill] sm:$0xff]  ;;  %v7012_v35 = vld [vmem:[#allocation71_spill] sm:$0xff] }
 0x3fb   :  { %2673 = vmatpush.bf16.msra.mxu3 %v7002_v26  ;;  %2699 = vmatpush.bf16.msrb.mxu1 %v7003_v7  ;;  %v7013_v26 = vld [vmem:[#allocation73_spill] sm:$0xff]  ;;  %v7014_v7 = vld [vmem:[#allocation75_spill] sm:$0xff] }
 0x3fd   :  { %2659 = vmatpush.bf16.msra.mxu2 %v7004_v8  ;;  %2685 = vmatpush.bf16.msrb.mxu0 %v7005_v32  ;;  %v7015_v8 = vld [vmem:[#allocation78_spill] sm:$0xff] }
 0x3ff   :  { %2674 = vmatpush.bf16.msra.mxu3 %v7006_v41  ;;  %2700 = vmatpush.bf16.msrb.mxu1 %v7007_v15  ;;  %v7016_v15 = vld [vmem:[#allocation108_spill] sm:$0xff] }
 0x401   :  { %2660 = vmatpush.bf16.msra.mxu2 %v7008_v1  ;;  %2686 = vmatpush.bf16.msrb.mxu0 %v7009_v40 }
 0x403   :  { %2675 = vmatpush.bf16.msra.mxu3 %v7010_v45  ;;  %2701 = vmatpush.bf16.msrb.mxu1 %v7011_v36  ;;  %v7017_v45 = vld [vmem:[#allocation104_spill] sm:$0xff]  ;;  %v7018_v36 = vld [vmem:[#allocation109_spill] sm:$0xff] }
 0x405   :  { %2661 = vmatpush.bf16.msra.mxu2 %v7012_v35  ;;  %2687 = vmatpush.bf16.msrb.mxu0 %v7013_v26 }
 0x409   :  { %2662 = vmatpush.bf16.msra.mxu2 %v7014_v7  ;;  %2688 = vmatpush.bf16.msrb.mxu0 %v7015_v8 }
 0x423   :  { %v2365_v32 = vpop.f32.mrf.mxu1 }
 0x429   :  { %v2339_v41 = vpop.f32.mrf.mxu3  ;;  %v2352_v47 = vpop.f32.mrf.mxu0 }
 0x42a   :  { %v2353_v57 = vadd.f32 %v2352_v47, %v7016_v15 }
 0x42b   :  { %v2367_v1 = vpop.f32.mrf.mxu1 }
 0x42c   :  { %v2366_v17 = vadd.f32 %v2365_v32, %v2353_v57 }
 0x42e   :  { %v2478_v40 = vrot.slane %v2366_v17, 5  ;;  %v7020_v17 = vld [vmem:[#allocation110_spill] sm:$0xff] }
 0x42f   :  { %v2326_v23 = vpop.f32.mrf.mxu2 }
 0x430   :  { %v2486_v34 = vadd.f32 %v2478_v40, %v7017_v45  ;;  %v2327_v44 = vadd.f32 %v2326_v23, %v7018_v36 }
 0x431   :  { %v2341_v35 = vpop.f32.mrf.mxu3  ;;  %v2354_v52 = vpop.f32.mrf.mxu0 }
 0x432   :  { %v4569_v26 = vmul.f32 -1.442695, %v2486_v34  ;;  %v2340_v3 = vadd.f32 %v2339_v41, %v2327_v44  ;;  %v7021_v35 = vld [vmem:[#allocation106_spill] sm:$0xff] }
 0x433   :  { %v2417_v7 = vpop.f32.mrf.mxu1 }
 0x434   :  { %4856 = vpow2.f32 %v4569_v26  ;;  %v2477_v8 = vrot.slane %v2340_v3, 5  ;;  %v7022_v3 = vld [vmem:[#allocation111_spill] sm:$0xff] }
 0x436   :  { %v2485_v4 = vadd.f32 %v2477_v8, %v7019_v56 }
 0x437   :  { %v2328_v21 = vpop.f32.mrf.mxu2 }
 0x438   :  { %v4568_v0 = vmul.f32 -1.442695, %v2485_v4 }
 0x439   :  { %v2391_v47 = vpop.f32.mrf.mxu3  ;;  %v2404_v1 = vpop.f32.mrf.mxu0 }
 0x43a   :  { %v4857_v57 = vpop.eup %4856  ;;  %4858 = vpow2.f32 %v4568_v0  ;;  %v2405_v32 = vadd.f32 %v2404_v1, %v7020_v17 }
 0x43b   :  { %v2502_v40 = vadd.f32 1.0, %v4857_v57  ;;  %v2419_v45 = vpop.f32.mrf.mxu1 }
 0x43c   :  { %v2418_v23 = vadd.f32 %v2417_v7, %v2405_v32  ;;  %v7023_v7 = vld [vmem:[#allocation107_spill] sm:$0xff] }
 0x43d   :  { %4860 = vrcp.f32 %v2502_v40  ;;  %vm2525_vm5 = vweird.f32 %v2502_v40 }
 0x43e   :  { %v2480_v52 = vrot.slane %v2418_v23, 5 }
 0x43f   :  { %v2378_v34 = vpop.f32.mrf.mxu2 }
 0x440   :  { %v4859_v44 = vpop.eup %4858  ;;  %v2488_v26 = vadd.f32 %v2480_v52, %v7021_v35  ;;  %v2379_v41 = vadd.f32 %v2378_v34, %v7022_v3 }
 0x441   :  { %v2501_v8 = vadd.f32 1.0, %v4859_v44  ;;  %v2393_v21 = vpop.f32.mrf.mxu3  ;;  %v2406_v4 = vpop.f32.mrf.mxu0  ;;  %v2531_v44 = vand.u32 2147483648, %v2502_v40 }
 0x442   :  { %v4571_v56 = vmul.f32 -1.442695, %v2488_v26  ;;  %v2392_v36 = vadd.f32 %v2391_v47, %v2379_v41  ;;  %v7024_v47 = vld [vmem:[#allocation112_spill] sm:$0xff] }
 0x443   :  { %v4861_v15 = vpop.eup %4860  ;;  %4862 = vrcp.f32 %v2501_v8  ;;  %v2469_v0 = vpop.f32.mrf.mxu1  ;;  %vm2510_vm9 = vweird.f32 %v2501_v8 }
 0x444   :  { %4864 = vpow2.f32 %v4571_v56  ;;  %v2479_v1 = vrot.slane %v2392_v36, 5  ;;  %v2521_v45 = vmul.f32 %v4861_v15, %v2502_v40  ;;  %vm2526_vm4 = vweird.f32 %v4861_v15 }
 0x445   :  { %v2529_v36 = vand.u32 2147483647, %v2502_v40  ;;  %vm2527_vm6 = vmor %vm2525_vm5, %vm2526_vm4  ;;  %vm3733_vm4 = vcmask 1042432  }
 0x446   :  { %v2487_v57 = vadd.f32 %v2479_v1, %v7023_v7  ;;  %v2522_v32 = vsub.f32 1.0, %v2521_v45 }
 0x447   :  { %v2380_v23 = vpop.f32.mrf.mxu2  ;;  %vm2530_vm7 = vcmp.eq.f32.partialorder %v2529_v36, 8.507059e+37 }
 0x448   :  { %v4570_v17 = vmul.f32 -1.442695, %v2487_v57  ;;  %v2523_v29 = vmul.f32 %v4861_v15, %v2522_v32  ;;  %v2532_v32 = vor.u32 1.1754944e-38, %v2531_v44 }
 0x449   :  { %v4863_v52 = vpop.eup %4862  ;;  %v2443_v35 = vpop.f32.mrf.mxu3 }
 0x44a   :  { %v2456_v34 = vpop.f32.mrf.mxu0  ;;  %v4865_v21 = vpop.eup %4864  ;;  %4866 = vpow2.f32 %v4570_v17  ;;  %v2524_v41 = vadd.f32 %v4861_v15, %v2523_v29  ;;  %v2506_v4 = vmul.f32 %v4863_v52, %v2501_v8  ;;  %vm2511_vm8 = vweird.f32 %v4863_v52 }
 0x44b   :  { %v2457_v26 = vadd.f32 %v2456_v34, %v7024_v47  ;;  %v2504_v56 = vadd.f32 1.0, %v4865_v21  ;;  %v2471_v3 = vpop.f32.mrf.mxu1  ;;  %v2516_v21 = vand.u32 2147483648, %v2501_v8  ;;  %vm2512_vm10 = vmor %vm2510_vm9, %vm2511_vm8 }
 0x44c   :  { %v2507_v45 = vsub.f32 1.0, %v2506_v4  ;;  %v2528_v57 = vsel %vm2527_vm6, %v4861_v15, %v2524_v41  ;;  %v2514_v3 = vand.u32 2147483647, %v2501_v8 }
 0x44d   :  { %v2470_v1 = vadd.f32 %v2469_v0, %v2457_v26  ;;  %4868 = vrcp.f32 %v2504_v56  ;;  %v2533_v14 = vsel %vm2530_vm7, %v2532_v32, %v2528_v57  ;;  %v2517_v36 = vor.u32 1.1754944e-38, %v2516_v21 }
 0x44e   :  { %v2508_v7 = vmul.f32 %v4863_v52, %v2507_v45  ;;  %vm2515_vm11 = vcmp.eq.f32.partialorder %v2514_v3, 8.507059e+37  ;;  %v2561_v57 = vand.u32 2147483648, %v2504_v56  ;;  %v2559_v8 = vand.u32 2147483647, %v2504_v56 }
 0x44f   :  { %v2568_v23 = vrot.slane %v2470_v1, 5  ;;  %v2430_v20 = vpop.f32.mrf.mxu2  ;;  %vm2555_vm13 = vweird.f32 %v2504_v56 }
 0x450   :  { %v4867_v17 = vpop.eup %4866  ;;  %v2431_v29 = vadd.f32 %v2430_v20, %v5624_v12  ;;  %v2509_v34 = vadd.f32 %v4863_v52, %v2508_v7  ;;  %vm2560_vm15 = vcmp.eq.f32.partialorder %v2559_v8, 8.507059e+37 }
 0x451   :  { %v2503_v47 = vadd.f32 1.0, %v4867_v17  ;;  %v2572_v40 = vmul.f32 %v2568_v23, %v2533_v14  ;;  %v2445_v0 = vpop.f32.mrf.mxu3 }
 0x452   :  { %v2458_v26 = vpop.f32.mrf.mxu0  ;;  %v2444_v4 = vadd.f32 %v2443_v35, %v2431_v29  ;;  %v2513_v44 = vsel %vm2512_vm10, %v4863_v52, %v2509_v34  ;;  %v2562_v52 = vor.u32 1.1754944e-38, %v2561_v57 }
 0x453   :  { %v4869_v15 = vpop.eup %4868  ;;  %4870 = vrcp.f32 %v2503_v47  ;;  %v2574_v1 = vadd.f32 %v2572_v40, %v5544_v33  ;;  %v2518_v7 = vsel %vm2515_vm11, %v2517_v36, %v2513_v44  ;;  %v2546_v3 = vand.u32 2147483648, %v2503_v47 }
 0x454   :  { %v2551_v41 = vmul.f32 %v4869_v15, %v2504_v56  ;;  %v2567_v45 = vrot.slane %v2444_v4, 5  ;;  %vm2556_vm12 = vweird.f32 %v4869_v15  ;;  %v2584_v26 = vrot.slane %v5894_v28, 7 }
 0x455   :  { %4872 = vtanh.f32 %v2574_v1  ;;  %vm2557_vm14 = vmor %vm2555_vm13, %vm2556_vm12  ;;  %vm2540_vm1 = vweird.f32 %v2503_v47  ;;  %v2583_v28 = vrot.slane %v5906_v2, 7 }
 0x456   :  { %v2552_v20 = vsub.f32 1.0, %v2551_v41  ;;  %v2571_v32 = vmul.f32 %v2567_v45, %v2518_v7  ;;  %v2544_v41 = vand.u32 2147483647, %v2503_v47 }
 0x457   :  { %v2432_v14 = vpop.f32.mrf.mxu2 }
 0x458   :  { %v2553_v23 = vmul.f32 %v4869_v15, %v2552_v20  ;;  %v2573_v34 = vadd.f32 %v2571_v32, %v5551_v10  ;;  %v2547_v20 = vor.u32 1.1754944e-38, %v2546_v3  ;;  %vm2545_vm3 = vcmp.eq.f32.partialorder %v2544_v41, 8.507059e+37  ;;  %v7027_v3 = vld [vmem:[#allocation20_spill] sm:$0xff]  ;;  %v7032_v41 = vld [vmem:[#allocation22_spill] sm:$0xff] }
 0x459   :  { %v4871_v17 = vpop.eup %4870 }
 0x45a   :  { %v2536_v35 = vmul.f32 %v4871_v17, %v2503_v47  ;;  %v2554_v29 = vadd.f32 %v4869_v15, %v2553_v23  ;;  %vm2541_vm0 = vweird.f32 %v4871_v17  ;;  %4874 = vtanh.f32 %v2573_v34 }
 0x45b   :  { %v4873_v36 = vpop.eup %4872  ;;  %vm2542_vm2 = vmor %vm2540_vm1, %vm2541_vm0 }
 0x45c   :  { %v2537_v21 = vsub.f32 1.0, %v2536_v35  ;;  %v2558_v40 = vsel %vm2557_vm14, %v4869_v15, %v2554_v29 }
 0x45d   :  { %v2563_v0 = vsel %vm2560_vm15, %v2562_v52, %v2558_v40  ;;  %v7026_v40 = vld [vmem:[#allocation18_spill] sm:$0xff] }
 0x45e   :  { %v2538_v4 = vmul.f32 %v4871_v17, %v2537_v21  ;;  %v2578_v44 = vsub.f32 1.0, %v2563_v0  ;;  %v2588_v1 = vmul.f32 %v2584_v26, %v2563_v0  ;;  %v7028_v0 = vld [vmem:[#allocation102_spill] sm:$0xff]  ;;  %v7029_v26 = vld [vmem:[#allocation103_spill] sm:$0xff] }
 0x460   :  { %v2580_v56 = vmul.f32 %v4873_v36, %v2578_v44  ;;  %v2539_v45 = vadd.f32 %v4871_v17, %v2538_v4  ;;  %v4875_v23 = vpop.eup %4874  ;;  %v7030_v4 = vld [vmem:[#allocation15_spill] sm:$0xff]  ;;  %v7031_v44 = vld [vmem:[#allocation16_spill] sm:$0xff] }
 0x461   :  { %v7033_v36 = vld [vmem:[#allocation24_spill] sm:$0xff] }
 0x462   :  { %v6026_v7 = vadd.f32 %v2588_v1, %v2580_v56  ;;  %v2543_v15 = vsel %vm2542_vm2, %v4871_v17, %v2539_v45  ;;  %v7034_v56 = vld [vmem:[#allocation17_spill] sm:$0xff]  ;;  %v7035_v1 = vld [vmem:[#allocation19_spill] sm:$0xff]  ;;  %v7036_v45 = vld [vmem:[#allocation26_spill] sm:$0xff] }
 0x463   :  { %v2548_v57 = vsel %vm2545_vm3, %v2547_v20, %v2543_v15  ;;  %v7037_v20 = vld [vmem:[#allocation28_spill] sm:$0xff]  ;;  %v7038_v15 = vld [vmem:[#allocation21_spill] sm:$0xff] }
 0x464   :  { %v2577_v32 = vsub.f32 1.0, %v2548_v57  ;;  %v2592_v14 = vpack.c.bf16 %v6026_v7, %v6026_v7  ;;  %v6033_v47 = vsel %vm3733_vm4, %v5904_v53, %v6026_v7  ;;  %v2587_v35 = vmul.f32 %v2583_v28, %v2548_v57  ;;  %v7039_v57 = vld [vmem:[#allocation23_spill] sm:$0xff]  ;;  %v7041_v28 = vld [vmem:[#allocation32_spill] sm:$0xff] }
 0x466   :  { %v2579_v8 = vmul.f32 %v4875_v23, %v2577_v32  ;;  %v2598_v29 = vshrl.u32 %v2592_v14, 16  ;;  %v7040_v32 = vld [vmem:[#allocation30_spill] sm:$0xff]  ;;  %v7042_v14 = vld [vmem:[#allocation25_spill] sm:$0xff]  ;;  %v7043_v23 = vld [vmem:[#allocation27_spill] sm:$0xff] }
 0x468   :  { %v6035_v52 = vadd.f32 %v2587_v35, %v2579_v8  ;;  %v2600_v17 = vrot.slane %v2598_v29, 1  ;;  %v7044_v8 = vld [vmem:[#allocation34_spill] sm:$0xff]  ;;  %v7045_v35 = vld [vmem:[#allocation36_spill] sm:$0xff]  ;;  %v7046_v29 = vld [vmem:[#allocation29_spill] sm:$0xff] }
 0x46a   :  { %2624 = vmatmul.bf16.vlgmr.msrb.gmra.mxu3 %v2600_v17  ;;  %2650 = vmatmul.bf16.vlgmr.msra.gmra.mxu1 %v2600_v17  ;;  %v2591_v34 = vpack.c.bf16 %v6035_v52, %v6035_v52  ;;  %v6041_v2 = vsel %vm3733_vm4, %v5917_v16, %v6035_v52  ;;  %v7025_v16 = vld [vmem:[#allocation101_spill] sm:$0xff] }
 0x46b   :  { %2720 = vmatpush.bf16.msrb.mxu3 %v6809_v24  ;;  %2746 = vmatpush.bf16.msra.mxu1 %v6810_v60 }
 0x46c   :  { %v2594_v53 = vshrl.u32 %v2591_v34, 16  ;;  %v7048_v34 = vld [vmem:[#allocation38_spill] sm:$0xff] }
 0x46e   :  { %v2596_v21 = vrot.slane %v2594_v53, 1  ;;  %v7049_v53 = vld [vmem:[#allocation40_spill] sm:$0xff] }
 0x46f   :  { %2721 = vmatpush.bf16.msrb.mxu3 %v6811_v42  ;;  %2747 = vmatpush.bf16.msra.mxu1 %v6812_v11 }
 0x470   :  { %2611 = vmatmul.bf16.vlgmr.msrb.gmra.mxu2 %v2596_v21  ;;  %2637 = vmatmul.bf16.vlgmr.msra.gmra.mxu0 %v2596_v21 }
 0x471   :  { %2707 = vmatpush.bf16.msrb.mxu2 %v6813_v6  ;;  %2733 = vmatpush.bf16.msra.mxu0 %v6814_v50 }
 0x473   :  { %2722 = vmatpush.bf16.msrb.mxu3 %v6815_v48  ;;  %2748 = vmatpush.bf16.msra.mxu1 %v6816_v54 }
 0x475   :  { %2708 = vmatpush.bf16.msrb.mxu2 %v6817_v43  ;;  %2734 = vmatpush.bf16.msra.mxu0 %v6818_v62 }
 0x477   :  { %2723 = vmatpush.bf16.msrb.mxu3 %v6819_v59  ;;  %2749 = vmatpush.bf16.msra.mxu1 %v6820_v19 }
 0x479   :  { %2709 = vmatpush.bf16.msrb.mxu2 %v6821_v58  ;;  %2735 = vmatpush.bf16.msra.mxu0 %v6822_v37 }
 0x47a   :  { %2676 = vmatmul.bf16.vlgmr.msra.gmra.mxu3 %v2600_v17  ;;  %2702 = vmatmul.bf16.vlgmr.msrb.gmra.mxu1 %v2600_v17 }
 0x47b   :  { %2724 = vmatpush.bf16.msrb.mxu3 %v6823_v51  ;;  %2750 = vmatpush.bf16.msra.mxu1 %v6824_v61 }
 0x47d   :  { %2710 = vmatpush.bf16.msrb.mxu2 %v6825_v22  ;;  %2736 = vmatpush.bf16.msra.mxu0 %v6826_v63 }
 0x47f   :  { %2725 = vmatpush.bf16.msrb.mxu3 %v6827_v46  ;;  %2751 = vmatpush.bf16.msra.mxu1 %v5446_v18 }
 0x480   :  { %2663 = vmatmul.bf16.vlgmr.msra.gmra.mxu2 %v2596_v21  ;;  %2689 = vmatmul.bf16.vlgmr.msrb.gmra.mxu0 %v2596_v21 }
 0x481   :  { %2711 = vmatpush.bf16.msrb.mxu2 %v6828_v27  ;;  %2737 = vmatpush.bf16.msra.mxu0 %v6829_v38 }
 0x483   :  { %2726 = vmatpush.bf16.msrb.mxu3 %v5453_v39  ;;  %2752 = vmatpush.bf16.msra.mxu1 %v5458_v30 }
 0x485   :  { %2712 = vmatpush.bf16.msrb.mxu2 %v6830_v25  ;;  %2738 = vmatpush.bf16.msra.mxu0 %v5443_v55 }
 0x487   :  { %2727 = vmatpush.bf16.msrb.mxu3 %v5465_v31  ;;  %2753 = vmatpush.bf16.msra.mxu1 %v5470_v49 }
 0x489   :  { %2713 = vmatpush.bf16.msrb.mxu2 %v5449_v13  ;;  %2739 = vmatpush.bf16.msra.mxu0 %v7025_v16 }
 0x48a   :  { %2728 = vmatmul.bf16.vlgmr.msrb.gmra.mxu3 %v2600_v17  ;;  %2754 = vmatmul.bf16.vlgmr.msra.gmra.mxu1 %v2600_v17  ;;  %v7047_v17 = vld [vmem:[#allocation31_spill] sm:$0xff] }
 0x48b   :  { %2898 = vmatpush.bf16.msra.mxu3 %v5166_v5  ;;  %2924 = vmatpush.bf16.msrb.mxu1 %v5170_v9 }
 0x48d   :  { %2714 = vmatpush.bf16.msrb.mxu2 %v7028_v0  ;;  %2740 = vmatpush.bf16.msra.mxu0 %v7029_v26 }
 0x48f   :  { %2899 = vmatpush.bf16.msra.mxu3 %v7026_v40  ;;  %2925 = vmatpush.bf16.msrb.mxu1 %v7027_v3 }
 0x490   :  { %2715 = vmatmul.bf16.vlgmr.msrb.gmra.mxu2 %v2596_v21  ;;  %2741 = vmatmul.bf16.vlgmr.msra.gmra.mxu0 %v2596_v21  ;;  %v7050_v21 = vld [vmem:[#allocation33_spill] sm:$0xff] }
 0x491   :  { %2885 = vmatpush.bf16.msra.mxu2 %v7030_v4  ;;  %2911 = vmatpush.bf16.msrb.mxu0 %v7031_v44  ;;  %v7093_v44 = vld [vmem:[#allocation105_spill] sm:$0xff] }
 0x493   :  { %2900 = vmatpush.bf16.msra.mxu3 %v7032_v41  ;;  %2926 = vmatpush.bf16.msrb.mxu1 %v7033_v36 }
 0x495   :  { %2886 = vmatpush.bf16.msra.mxu2 %v7034_v56  ;;  %2912 = vmatpush.bf16.msrb.mxu0 %v7035_v1 }
 0x497   :  { %2901 = vmatpush.bf16.msra.mxu3 %v7036_v45  ;;  %2927 = vmatpush.bf16.msrb.mxu1 %v7037_v20 }
 0x499   :  { %2887 = vmatpush.bf16.msra.mxu2 %v7038_v15  ;;  %2913 = vmatpush.bf16.msrb.mxu0 %v7039_v57 }
 0x49b   :  { %2902 = vmatpush.bf16.msra.mxu3 %v7040_v32  ;;  %2928 = vmatpush.bf16.msrb.mxu1 %v7041_v28  ;;  %v7051_v32 = vld [vmem:[#allocation35_spill] sm:$0xff] }
 0x49c   :  { %v7052_v28 = vld [vmem:[#allocation43_spill] sm:$0xff] }
 0x49d   :  { %2888 = vmatpush.bf16.msra.mxu2 %v7042_v14  ;;  %2914 = vmatpush.bf16.msrb.mxu0 %v7043_v23  ;;  %v7053_v14 = vld [vmem:[#allocation49_spill] sm:$0xff]  ;;  %v7054_v23 = vld [vmem:[#allocation47_spill] sm:$0xff] }
 0x49f   :  { %2903 = vmatpush.bf16.msra.mxu3 %v7044_v8  ;;  %2929 = vmatpush.bf16.msrb.mxu1 %v7045_v35  ;;  %v7055_v8 = vld [vmem:[#allocation50_spill] sm:$0xff]  ;;  %v7056_v35 = vld [vmem:[#allocation37_spill] sm:$0xff] }
 0x4a1   :  { %2889 = vmatpush.bf16.msra.mxu2 %v7046_v29  ;;  %2915 = vmatpush.bf16.msrb.mxu0 %v7047_v17  ;;  %v7057_v29 = vld [vmem:[#allocation39_spill] sm:$0xff]  ;;  %v7058_v17 = vld [vmem:[#allocation52_spill] sm:$0xff] }
 0x4a3   :  { %2904 = vmatpush.bf16.msra.mxu3 %v7048_v34  ;;  %2930 = vmatpush.bf16.msrb.mxu1 %v7049_v53  ;;  %v7059_v34 = vld [vmem:[#allocation54_spill] sm:$0xff] }
 0x4a4   :  { %v7060_v53 = vld [vmem:[#allocation42_spill] sm:$0xff] }
 0x4a5   :  { %2890 = vmatpush.bf16.msra.mxu2 %v7050_v21  ;;  %2916 = vmatpush.bf16.msrb.mxu0 %v7051_v32  ;;  %v7061_v21 = vld [vmem:[#allocation44_spill] sm:$0xff]  ;;  %v7062_v32 = vld [vmem:[#allocation45_spill] sm:$0xff] }
 0x4a7   :  { %2905 = vmatpush.bf16.msra.mxu3 %v7052_v28  ;;  %2931 = vmatpush.bf16.msrb.mxu1 %v7053_v14  ;;  %v7063_v28 = vld [vmem:[#allocation48_spill] sm:$0xff] }
 0x4a8   :  { %v7064_v14 = vld [vmem:[#allocation56_spill] sm:$0xff] }
 0x4a9   :  { %2891 = vmatpush.bf16.msra.mxu2 %v7056_v35  ;;  %2917 = vmatpush.bf16.msrb.mxu0 %v7057_v29  ;;  %v7067_v35 = vld [vmem:[#allocation53_spill] sm:$0xff]  ;;  %v7068_v29 = vld [vmem:[#allocation60_spill] sm:$0xff] }
 0x4ab   :  { %2950 = vmatpush.bf16.msrb.mxu3 %v7054_v23  ;;  %2976 = vmatpush.bf16.msra.mxu1 %v7055_v8  ;;  %v7065_v23 = vld [vmem:[#allocation58_spill] sm:$0xff]  ;;  %v7066_v8 = vld [vmem:[#allocation51_spill] sm:$0xff] }
 0x4ad   :  { %2892 = vmatpush.bf16.msra.mxu2 %v7060_v53  ;;  %2918 = vmatpush.bf16.msrb.mxu0 %v7061_v21  ;;  %v7071_v53 = vld [vmem:[#allocation57_spill] sm:$0xff]  ;;  %v7072_v21 = vld [vmem:[#allocation64_spill] sm:$0xff] }
 0x4af   :  { %2951 = vmatpush.bf16.msrb.mxu3 %v7058_v17  ;;  %2977 = vmatpush.bf16.msra.mxu1 %v7059_v34  ;;  %v7069_v17 = vld [vmem:[#allocation62_spill] sm:$0xff]  ;;  %v7070_v34 = vld [vmem:[#allocation55_spill] sm:$0xff] }
 0x4b1   :  { %2937 = vmatpush.bf16.msrb.mxu2 %v7062_v32  ;;  %2963 = vmatpush.bf16.msra.mxu0 %v7063_v28  ;;  %v7073_v32 = vld [vmem:[#allocation66_spill] sm:$0xff]  ;;  %v7074_v28 = vld [vmem:[#allocation59_spill] sm:$0xff] }
 0x4b3   :  { %2952 = vmatpush.bf16.msrb.mxu3 %v7064_v14  ;;  %2978 = vmatpush.bf16.msra.mxu1 %v7065_v23  ;;  %v7075_v14 = vld [vmem:[#allocation61_spill] sm:$0xff]  ;;  %v7076_v23 = vld [vmem:[#allocation68_spill] sm:$0xff] }
 0x4b5   :  { %2938 = vmatpush.bf16.msrb.mxu2 %v7066_v8  ;;  %2964 = vmatpush.bf16.msra.mxu0 %v7067_v35  ;;  %v7077_v8 = vld [vmem:[#allocation70_spill] sm:$0xff]  ;;  %v7078_v35 = vld [vmem:[#allocation63_spill] sm:$0xff] }
 0x4b7   :  { %2953 = vmatpush.bf16.msrb.mxu3 %v7068_v29  ;;  %2979 = vmatpush.bf16.msra.mxu1 %v7069_v17  ;;  %v7079_v29 = vld [vmem:[#allocation65_spill] sm:$0xff]  ;;  %v7080_v17 = vld [vmem:[#allocation72_spill] sm:$0xff] }
 0x4b9   :  { %2939 = vmatpush.bf16.msrb.mxu2 %v7070_v34  ;;  %2965 = vmatpush.bf16.msra.mxu0 %v7071_v53  ;;  %v7081_v34 = vld [vmem:[#allocation74_spill] sm:$0xff]  ;;  %v7082_v53 = vld [vmem:[#allocation67_spill] sm:$0xff] }
 0x4bb   :  { %2954 = vmatpush.bf16.msrb.mxu3 %v7072_v21  ;;  %2980 = vmatpush.bf16.msra.mxu1 %v7073_v32  ;;  %v7083_v21 = vld [vmem:[#allocation69_spill] sm:$0xff]  ;;  %v7084_v32 = vld [vmem:[#allocation76_spill] sm:$0xff] }
 0x4bd   :  { %2940 = vmatpush.bf16.msrb.mxu2 %v7074_v28  ;;  %2966 = vmatpush.bf16.msra.mxu0 %v7075_v14  ;;  %v7085_v28 = vld [vmem:[#allocation81_spill] sm:$0xff]  ;;  %v7086_v14 = vld [vmem:[#allocation71_spill] sm:$0xff] }
 0x4bf   :  { %2955 = vmatpush.bf16.msrb.mxu3 %v7076_v23  ;;  %2981 = vmatpush.bf16.msra.mxu1 %v7077_v8  ;;  %v7087_v23 = vld [vmem:[#allocation73_spill] sm:$0xff]  ;;  %v7088_v8 = vld [vmem:[#allocation75_spill] sm:$0xff] }
 0x4c1   :  { %2941 = vmatpush.bf16.msrb.mxu2 %v7078_v35  ;;  %2967 = vmatpush.bf16.msra.mxu0 %v7079_v29  ;;  %v7089_v35 = vld [vmem:[#allocation78_spill] sm:$0xff] }
 0x4c3   :  { %2956 = vmatpush.bf16.msrb.mxu3 %v7080_v17  ;;  %2982 = vmatpush.bf16.msra.mxu1 %v7081_v34  ;;  %v7090_v34 = vld [vmem:[#allocation108_spill] sm:$0xff] }
 0x4c5   :  { %2942 = vmatpush.bf16.msrb.mxu2 %v7082_v53  ;;  %2968 = vmatpush.bf16.msra.mxu0 %v7083_v21 }
 0x4c7   :  { %2957 = vmatpush.bf16.msrb.mxu3 %v7084_v32  ;;  %2983 = vmatpush.bf16.msra.mxu1 %v7085_v28  ;;  %v7091_v32 = vld [vmem:[#allocation104_spill] sm:$0xff]  ;;  %v7092_v28 = vld [vmem:[#allocation109_spill] sm:$0xff] }
 0x4c9   :  { %2943 = vmatpush.bf16.msrb.mxu2 %v7086_v14  ;;  %2969 = vmatpush.bf16.msra.mxu0 %v7087_v23 }
 0x4cd   :  { %2944 = vmatpush.bf16.msrb.mxu2 %v7088_v8  ;;  %2970 = vmatpush.bf16.msra.mxu0 %v7089_v35 }
 0x4e7   :  { %v2651_v29 = vpop.f32.mrf.mxu1 }
 0x4ed   :  { %v2625_v17 = vpop.f32.mrf.mxu3  ;;  %v2638_v57 = vpop.f32.mrf.mxu0 }
 0x4ee   :  { %v2639_v15 = vadd.f32 %v2638_v57, %v7090_v34 }
 0x4ef   :  { %v2653_v53 = vpop.f32.mrf.mxu1 }
 0x4f0   :  { %v2652_v20 = vadd.f32 %v2651_v29, %v2639_v15 }
 0x4f2   :  { %v2764_v21 = vrot.slane %v2652_v20, 4  ;;  %v7094_v20 = vld [vmem:[#allocation110_spill] sm:$0xff] }
 0x4f3   :  { %v2612_v45 = vpop.f32.mrf.mxu2 }
 0x4f4   :  { %v2772_v1 = vadd.f32 %v2764_v21, %v7091_v32  ;;  %v2613_v56 = vadd.f32 %v2612_v45, %v7092_v28 }
 0x4f5   :  { %v2627_v14 = vpop.f32.mrf.mxu3  ;;  %v2640_v36 = vpop.f32.mrf.mxu0 }
 0x4f6   :  { %v4573_v23 = vmul.f32 -1.442695, %v2772_v1  ;;  %v2626_v41 = vadd.f32 %v2625_v17, %v2613_v56  ;;  %v7095_v14 = vld [vmem:[#allocation106_spill] sm:$0xff] }
 0x4f7   :  { %v2703_v8 = vpop.f32.mrf.mxu1 }
 0x4f8   :  { %4876 = vpow2.f32 %v4573_v23  ;;  %v2763_v35 = vrot.slane %v2626_v41, 4  ;;  %v7096_v41 = vld [vmem:[#allocation111_spill] sm:$0xff] }
 0x4fa   :  { %v2771_v4 = vadd.f32 %v2763_v35, %v7093_v44 }
 0x4fb   :  { %v2614_v26 = vpop.f32.mrf.mxu2 }
 0x4fc   :  { %v4572_v0 = vmul.f32 -1.442695, %v2771_v4 }
 0x4fd   :  { %v2677_v57 = vpop.f32.mrf.mxu3  ;;  %v2690_v53 = vpop.f32.mrf.mxu0 }
 0x4fe   :  { %v4877_v15 = vpop.eup %4876  ;;  %4878 = vpow2.f32 %v4572_v0  ;;  %v2691_v29 = vadd.f32 %v2690_v53, %v7094_v20 }
 0x4ff   :  { %v2788_v21 = vadd.f32 1.0, %v4877_v15  ;;  %v2705_v32 = vpop.f32.mrf.mxu1 }
 0x500   :  { %v2704_v45 = vadd.f32 %v2703_v8, %v2691_v29  ;;  %v7097_v8 = vld [vmem:[#allocation107_spill] sm:$0xff] }
 0x501   :  { %4880 = vrcp.f32 %v2788_v21  ;;  %vm2811_vm6 = vweird.f32 %v2788_v21 }
 0x502   :  { %v2766_v36 = vrot.slane %v2704_v45, 4 }
 0x503   :  { %v2664_v1 = vpop.f32.mrf.mxu2 }
 0x504   :  { %v4879_v56 = vpop.eup %4878  ;;  %v2774_v23 = vadd.f32 %v2766_v36, %v7095_v14  ;;  %v2665_v17 = vadd.f32 %v2664_v1, %v7096_v41 }
 0x505   :  { %v2787_v35 = vadd.f32 1.0, %v4879_v56  ;;  %v2679_v26 = vpop.f32.mrf.mxu3  ;;  %v2692_v4 = vpop.f32.mrf.mxu0  ;;  %v2817_v56 = vand.u32 2147483648, %v2788_v21 }
 0x506   :  { %v4575_v44 = vmul.f32 -1.442695, %v2774_v23  ;;  %v2678_v28 = vadd.f32 %v2677_v57, %v2665_v17  ;;  %v7098_v57 = vld [vmem:[#allocation112_spill] sm:$0xff] }
 0x507   :  { %v4881_v34 = vpop.eup %4880  ;;  %4882 = vrcp.f32 %v2787_v35  ;;  %v2755_v0 = vpop.f32.mrf.mxu1  ;;  %vm2796_vm10 = vweird.f32 %v2787_v35 }
 0x508   :  { %4884 = vpow2.f32 %v4575_v44  ;;  %v2765_v53 = vrot.slane %v2678_v28, 4  ;;  %v2807_v32 = vmul.f32 %v4881_v34, %v2788_v21  ;;  %vm2812_vm5 = vweird.f32 %v4881_v34 }
 0x509   :  { %v2815_v28 = vand.u32 2147483647, %v2788_v21  ;;  %vm2813_vm7 = vmor %vm2811_vm6, %vm2812_vm5  ;;  %vm3736_vm5 = vcmask 1043456  }
 0x50a   :  { %v2773_v15 = vadd.f32 %v2765_v53, %v7097_v8  ;;  %v2808_v29 = vsub.f32 1.0, %v2807_v32 }
 0x50b   :  { %v2666_v45 = vpop.f32.mrf.mxu2  ;;  %vm2816_vm8 = vcmp.eq.f32.partialorder %v2815_v28, 8.507059e+37 }
 0x50c   :  { %v4574_v20 = vmul.f32 -1.442695, %v2773_v15  ;;  %v2809_v3 = vmul.f32 %v4881_v34, %v2808_v29  ;;  %v2818_v29 = vor.u32 1.1754944e-38, %v2817_v56 }
 0x50d   :  { %v4883_v36 = vpop.eup %4882  ;;  %v2729_v14 = vpop.f32.mrf.mxu3 }
 0x50e   :  { %v2742_v1 = vpop.f32.mrf.mxu0  ;;  %v4885_v26 = vpop.eup %4884  ;;  %4886 = vpow2.f32 %v4574_v20  ;;  %v2810_v17 = vadd.f32 %v4881_v34, %v2809_v3  ;;  %v2792_v4 = vmul.f32 %v4883_v36, %v2787_v35  ;;  %vm2797_vm9 = vweird.f32 %v4883_v36 }
 0x50f   :  { %v2743_v23 = vadd.f32 %v2742_v1, %v7098_v57  ;;  %v2790_v44 = vadd.f32 1.0, %v4885_v26  ;;  %v2757_v41 = vpop.f32.mrf.mxu1  ;;  %v2802_v26 = vand.u32 2147483648, %v2787_v35  ;;  %vm2798_vm11 = vmor %vm2796_vm10, %vm2797_vm9 }
 0x510   :  { %v2793_v32 = vsub.f32 1.0, %v2792_v4  ;;  %v2814_v15 = vsel %vm2813_vm7, %v4881_v34, %v2810_v17  ;;  %v2800_v41 = vand.u32 2147483647, %v2787_v35 }
 0x511   :  { %v2756_v53 = vadd.f32 %v2755_v0, %v2743_v23  ;;  %4888 = vrcp.f32 %v2790_v44  ;;  %v2819_v16 = vsel %vm2816_vm8, %v2818_v29, %v2814_v15  ;;  %v2803_v28 = vor.u32 1.1754944e-38, %v2802_v26 }
 0x512   :  { %v2794_v8 = vmul.f32 %v4883_v36, %v2793_v32  ;;  %vm2801_vm12 = vcmp.eq.f32.partialorder %v2800_v41, 8.507059e+37  ;;  %v2847_v15 = vand.u32 2147483648, %v2790_v44  ;;  %v2845_v35 = vand.u32 2147483647, %v2790_v44 }
 0x513   :  { %v2854_v45 = vrot.slane %v2756_v53, 4  ;;  %v2716_v40 = vpop.f32.mrf.mxu2  ;;  %vm2841_vm14 = vweird.f32 %v2790_v44 }
 0x514   :  { %v4887_v20 = vpop.eup %4886  ;;  %v2717_v3 = vadd.f32 %v2716_v40, %v5624_v12  ;;  %v2795_v1 = vadd.f32 %v4883_v36, %v2794_v8  ;;  %vm2846_vm0 = vcmp.eq.f32.partialorder %v2845_v35, 8.507059e+37 }
 0x515   :  { %v2789_v57 = vadd.f32 1.0, %v4887_v20  ;;  %v2858_v21 = vmul.f32 %v2854_v45, %v2819_v16  ;;  %v2731_v0 = vpop.f32.mrf.mxu3 }
 0x516   :  { %v2744_v23 = vpop.f32.mrf.mxu0  ;;  %v2730_v4 = vadd.f32 %v2729_v14, %v2717_v3  ;;  %v2799_v56 = vsel %vm2798_vm11, %v4883_v36, %v2795_v1  ;;  %v2848_v36 = vor.u32 1.1754944e-38, %v2847_v15 }
 0x517   :  { %v4889_v34 = vpop.eup %4888  ;;  %4890 = vrcp.f32 %v2789_v57  ;;  %v2860_v53 = vadd.f32 %v2858_v21, %v5544_v33  ;;  %v2804_v8 = vsel %vm2801_vm12, %v2803_v28, %v2799_v56  ;;  %v2832_v41 = vand.u32 2147483648, %v2789_v57 }
 0x518   :  { %v2837_v17 = vmul.f32 %v4889_v34, %v2790_v44  ;;  %v2853_v32 = vrot.slane %v2730_v4, 4  ;;  %vm2842_vm13 = vweird.f32 %v4889_v34  ;;  %v2870_v23 = vrot.slane %v6026_v7, 7 }
 0x519   :  { %4892 = vtanh.f32 %v2860_v53  ;;  %vm2843_vm15 = vmor %vm2841_vm14, %vm2842_vm13  ;;  %vm2826_vm2 = vweird.f32 %v2789_v57  ;;  %v2869_v7 = vrot.slane %v6035_v52, 7 }
 0x51a   :  { %v2838_v40 = vsub.f32 1.0, %v2837_v17  ;;  %v2857_v29 = vmul.f32 %v2853_v32, %v2804_v8  ;;  %v2830_v17 = vand.u32 2147483647, %v2789_v57 }
 0x51b   :  { %v2718_v16 = vpop.f32.mrf.mxu2 }
 0x51c   :  { %v2839_v45 = vmul.f32 %v4889_v34, %v2838_v40  ;;  %v2859_v1 = vadd.f32 %v2857_v29, %v5551_v10  ;;  %v2833_v40 = vor.u32 1.1754944e-38, %v2832_v41  ;;  %vm2831_vm4 = vcmp.eq.f32.partialorder %v2830_v17, 8.507059e+37  ;;  %v7103_v41 = vld [vmem:[#allocation103_spill] sm:$0xff]  ;;  %v7108_v17 = vld [vmem:[#allocation17_spill] sm:$0xff] }
 0x51d   :  { %v4891_v20 = vpop.eup %4890 }
 0x51e   :  { %v2822_v14 = vmul.f32 %v4891_v20, %v2789_v57  ;;  %v2840_v3 = vadd.f32 %v4889_v34, %v2839_v45  ;;  %vm2827_vm1 = vweird.f32 %v4891_v20  ;;  %4894 = vtanh.f32 %v2859_v1  ;;  %v7100_v1 = vld [vmem:[#allocation18_spill] sm:$0xff] }
 0x51f   :  { %v4893_v28 = vpop.eup %4892  ;;  %vm2828_vm3 = vmor %vm2826_vm2, %vm2827_vm1 }
 0x520   :  { %v2823_v26 = vsub.f32 1.0, %v2822_v14  ;;  %v2844_v21 = vsel %vm2843_vm15, %v4889_v34, %v2840_v3 }
 0x521   :  { %v2849_v0 = vsel %vm2846_vm0, %v2848_v36, %v2844_v21  ;;  %v7102_v21 = vld [vmem:[#allocation102_spill] sm:$0xff] }
 0x522   :  { %v2824_v4 = vmul.f32 %v4891_v20, %v2823_v26  ;;  %v2864_v56 = vsub.f32 1.0, %v2849_v0  ;;  %v2874_v53 = vmul.f32 %v2870_v23, %v2849_v0  ;;  %v7101_v26 = vld [vmem:[#allocation20_spill] sm:$0xff]  ;;  %v7104_v0 = vld [vmem:[#allocation15_spill] sm:$0xff] }
 0x523   :  { %v7105_v23 = vld [vmem:[#allocation16_spill] sm:$0xff] }
 0x524   :  { %v2866_v44 = vmul.f32 %v4893_v28, %v2864_v56  ;;  %v2825_v32 = vadd.f32 %v4891_v20, %v2824_v4  ;;  %v4895_v45 = vpop.eup %4894  ;;  %v7106_v4 = vld [vmem:[#allocation22_spill] sm:$0xff]  ;;  %v7107_v56 = vld [vmem:[#allocation24_spill] sm:$0xff]  ;;  %v7109_v28 = vld [vmem:[#allocation19_spill] sm:$0xff] }
 0x526   :  { %v6152_v8 = vadd.f32 %v2874_v53, %v2866_v44  ;;  %v2829_v34 = vsel %vm2828_vm3, %v4891_v20, %v2825_v32  ;;  %v7110_v44 = vld [vmem:[#allocation26_spill] sm:$0xff]  ;;  %v7111_v53 = vld [vmem:[#allocation28_spill] sm:$0xff]  ;;  %v7112_v32 = vld [vmem:[#allocation21_spill] sm:$0xff] }
 0x527   :  { %v2834_v15 = vsel %vm2831_vm4, %v2833_v40, %v2829_v34  ;;  %v7113_v40 = vld [vmem:[#allocation23_spill] sm:$0xff]  ;;  %v7114_v34 = vld [vmem:[#allocation30_spill] sm:$0xff] }
 0x528   :  { %v2863_v29 = vsub.f32 1.0, %v2834_v15  ;;  %v2878_v16 = vpack.c.bf16 %v6152_v8, %v6152_v8  ;;  %v6160_v57 = vsel %vm3736_vm5, %v6033_v47, %v6152_v8  ;;  %v2873_v14 = vmul.f32 %v2869_v7, %v2834_v15  ;;  %v7115_v15 = vld [vmem:[#allocation32_spill] sm:$0xff]  ;;  %v7117_v7 = vld [vmem:[#allocation27_spill] sm:$0xff] }
 0x52a   :  { %v2865_v35 = vmul.f32 %v4895_v45, %v2863_v29  ;;  %v2882_v3 = vrot.slane %v2878_v16, 2  ;;  %v7116_v29 = vld [vmem:[#allocation25_spill] sm:$0xff]  ;;  %v7118_v16 = vld [vmem:[#allocation34_spill] sm:$0xff]  ;;  %v7119_v45 = vld [vmem:[#allocation36_spill] sm:$0xff] }
 0x52c   :  { %v6162_v36 = vadd.f32 %v2873_v14, %v2865_v35  ;;  %2906 = vmatmul.bf16.vlgmr.msra.gmra.mxu3 %v2882_v3  ;;  %2932 = vmatmul.bf16.vlgmr.msrb.gmra.mxu1 %v2882_v3  ;;  %v7120_v35 = vld [vmem:[#allocation29_spill] sm:$0xff]  ;;  %v7121_v14 = vld [vmem:[#allocation31_spill] sm:$0xff] }
 0x52d   :  { %3002 = vmatpush.bf16.msra.mxu3 %v6809_v24  ;;  %3028 = vmatpush.bf16.msrb.mxu1 %v6810_v60 }
 0x52e   :  { %v2877_v52 = vpack.c.bf16 %v6162_v36, %v6162_v36  ;;  %v6171_v20 = vsel %vm3736_vm5, %v6041_v2, %v6162_v36  ;;  %v7099_v2 = vld [vmem:[#allocation101_spill] sm:$0xff] }
 0x530   :  { %v2881_v47 = vrot.slane %v2877_v52, 2  ;;  %v7123_v52 = vld [vmem:[#allocation40_spill] sm:$0xff] }
 0x531   :  { %3003 = vmatpush.bf16.msra.mxu3 %v6811_v42  ;;  %3029 = vmatpush.bf16.msrb.mxu1 %v6812_v11 }
 0x532   :  { %2893 = vmatmul.bf16.vlgmr.msra.gmra.mxu2 %v2881_v47  ;;  %2919 = vmatmul.bf16.vlgmr.msrb.gmra.mxu0 %v2881_v47 }
 0x533   :  { %2989 = vmatpush.bf16.msra.mxu2 %v6813_v6  ;;  %3015 = vmatpush.bf16.msrb.mxu0 %v6814_v50 }
 0x535   :  { %3004 = vmatpush.bf16.msra.mxu3 %v6815_v48  ;;  %3030 = vmatpush.bf16.msrb.mxu1 %v6816_v54 }
 0x537   :  { %2990 = vmatpush.bf16.msra.mxu2 %v6817_v43  ;;  %3016 = vmatpush.bf16.msrb.mxu0 %v6818_v62 }
 0x539   :  { %3005 = vmatpush.bf16.msra.mxu3 %v6819_v59  ;;  %3031 = vmatpush.bf16.msrb.mxu1 %v6820_v19 }
 0x53b   :  { %2991 = vmatpush.bf16.msra.mxu2 %v6821_v58  ;;  %3017 = vmatpush.bf16.msrb.mxu0 %v6822_v37 }
 0x53c   :  { %2958 = vmatmul.bf16.vlgmr.msrb.gmra.mxu3 %v2882_v3  ;;  %2984 = vmatmul.bf16.vlgmr.msra.gmra.mxu1 %v2882_v3 }
 0x53d   :  { %3006 = vmatpush.bf16.msra.mxu3 %v6823_v51  ;;  %3032 = vmatpush.bf16.msrb.mxu1 %v6824_v61 }
 0x53f   :  { %2992 = vmatpush.bf16.msra.mxu2 %v6825_v22  ;;  %3018 = vmatpush.bf16.msrb.mxu0 %v6826_v63 }
 0x541   :  { %3007 = vmatpush.bf16.msra.mxu3 %v6827_v46  ;;  %3033 = vmatpush.bf16.msrb.mxu1 %v5446_v18 }
 0x542   :  { %2945 = vmatmul.bf16.vlgmr.msrb.gmra.mxu2 %v2881_v47  ;;  %2971 = vmatmul.bf16.vlgmr.msra.gmra.mxu0 %v2881_v47 }
 0x543   :  { %2993 = vmatpush.bf16.msra.mxu2 %v6828_v27  ;;  %3019 = vmatpush.bf16.msrb.mxu0 %v6829_v38 }
 0x545   :  { %3008 = vmatpush.bf16.msra.mxu3 %v5453_v39  ;;  %3034 = vmatpush.bf16.msrb.mxu1 %v5458_v30 }
 0x547   :  { %2994 = vmatpush.bf16.msra.mxu2 %v6830_v25  ;;  %3020 = vmatpush.bf16.msrb.mxu0 %v5443_v55 }
 0x549   :  { %3009 = vmatpush.bf16.msra.mxu3 %v5465_v31  ;;  %3035 = vmatpush.bf16.msrb.mxu1 %v5470_v49 }
 0x54b   :  { %2995 = vmatpush.bf16.msra.mxu2 %v5449_v13  ;;  %3021 = vmatpush.bf16.msrb.mxu0 %v7099_v2 }
 0x54c   :  { %3010 = vmatmul.bf16.vlgmr.msra.gmra.mxu3 %v2882_v3  ;;  %3036 = vmatmul.bf16.vlgmr.msrb.gmra.mxu1 %v2882_v3  ;;  %v7122_v3 = vld [vmem:[#allocation38_spill] sm:$0xff] }
 0x54d   :  { %3184 = vmatpush.bf16.msrb.mxu3 %v5166_v5  ;;  %3210 = vmatpush.bf16.msra.mxu1 %v5170_v9 }
 0x54f   :  { %2996 = vmatpush.bf16.msra.mxu2 %v7102_v21  ;;  %3022 = vmatpush.bf16.msrb.mxu0 %v7103_v41 }
 0x551   :  { %3185 = vmatpush.bf16.msrb.mxu3 %v7100_v1  ;;  %3211 = vmatpush.bf16.msra.mxu1 %v7101_v26 }
 0x552   :  { %2997 = vmatmul.bf16.vlgmr.msra.gmra.mxu2 %v2881_v47  ;;  %3023 = vmatmul.bf16.vlgmr.msrb.gmra.mxu0 %v2881_v47  ;;  %v7124_v47 = vld [vmem:[#allocation33_spill] sm:$0xff] }
 0x553   :  { %3171 = vmatpush.bf16.msrb.mxu2 %v7104_v0  ;;  %3197 = vmatpush.bf16.msra.mxu0 %v7105_v23  ;;  %v7167_v23 = vld [vmem:[#allocation105_spill] sm:$0xff] }
 0x555   :  { %3186 = vmatpush.bf16.msrb.mxu3 %v7106_v4  ;;  %3212 = vmatpush.bf16.msra.mxu1 %v7107_v56 }
 0x557   :  { %3172 = vmatpush.bf16.msrb.mxu2 %v7108_v17  ;;  %3198 = vmatpush.bf16.msra.mxu0 %v7109_v28 }
 0x559   :  { %3187 = vmatpush.bf16.msrb.mxu3 %v7110_v44  ;;  %3213 = vmatpush.bf16.msra.mxu1 %v7111_v53 }
 0x55b   :  { %3173 = vmatpush.bf16.msrb.mxu2 %v7112_v32  ;;  %3199 = vmatpush.bf16.msra.mxu0 %v7113_v40 }
 0x55d   :  { %3188 = vmatpush.bf16.msrb.mxu3 %v7114_v34  ;;  %3214 = vmatpush.bf16.msra.mxu1 %v7115_v15  ;;  %v7125_v34 = vld [vmem:[#allocation35_spill] sm:$0xff] }
 0x55e   :  { %v7126_v15 = vld [vmem:[#allocation43_spill] sm:$0xff] }
 0x55f   :  { %3174 = vmatpush.bf16.msrb.mxu2 %v7116_v29  ;;  %3200 = vmatpush.bf16.msra.mxu0 %v7117_v7  ;;  %v7127_v29 = vld [vmem:[#allocation49_spill] sm:$0xff]  ;;  %v7128_v7 = vld [vmem:[#allocation47_spill] sm:$0xff] }
 0x561   :  { %3189 = vmatpush.bf16.msrb.mxu3 %v7118_v16  ;;  %3215 = vmatpush.bf16.msra.mxu1 %v7119_v45  ;;  %v7129_v16 = vld [vmem:[#allocation50_spill] sm:$0xff]  ;;  %v7130_v45 = vld [vmem:[#allocation37_spill] sm:$0xff] }
 0x563   :  { %3175 = vmatpush.bf16.msrb.mxu2 %v7120_v35  ;;  %3201 = vmatpush.bf16.msra.mxu0 %v7121_v14  ;;  %v7131_v35 = vld [vmem:[#allocation39_spill] sm:$0xff]  ;;  %v7132_v14 = vld [vmem:[#allocation52_spill] sm:$0xff] }
 0x565   :  { %3190 = vmatpush.bf16.msrb.mxu3 %v7122_v3  ;;  %3216 = vmatpush.bf16.msra.mxu1 %v7123_v52  ;;  %v7133_v3 = vld [vmem:[#allocation54_spill] sm:$0xff] }
 0x566   :  { %v7134_v52 = vld [vmem:[#allocation42_spill] sm:$0xff] }
 0x567   :  { %3176 = vmatpush.bf16.msrb.mxu2 %v7124_v47  ;;  %3202 = vmatpush.bf16.msra.mxu0 %v7125_v34  ;;  %v7135_v47 = vld [vmem:[#allocation44_spill] sm:$0xff]  ;;  %v7136_v34 = vld [vmem:[#allocation45_spill] sm:$0xff] }
 0x569   :  { %3191 = vmatpush.bf16.msrb.mxu3 %v7126_v15  ;;  %3217 = vmatpush.bf16.msra.mxu1 %v7127_v29  ;;  %v7137_v15 = vld [vmem:[#allocation48_spill] sm:$0xff] }
 0x56a   :  { %v7138_v29 = vld [vmem:[#allocation56_spill] sm:$0xff] }
 0x56b   :  { %3177 = vmatpush.bf16.msrb.mxu2 %v7130_v45  ;;  %3203 = vmatpush.bf16.msra.mxu0 %v7131_v35  ;;  %v7141_v45 = vld [vmem:[#allocation53_spill] sm:$0xff]  ;;  %v7142_v35 = vld [vmem:[#allocation60_spill] sm:$0xff] }
 0x56d   :  { %3236 = vmatpush.bf16.msra.mxu3 %v7128_v7  ;;  %3262 = vmatpush.bf16.msrb.mxu1 %v7129_v16  ;;  %v7139_v7 = vld [vmem:[#allocation58_spill] sm:$0xff]  ;;  %v7140_v16 = vld [vmem:[#allocation51_spill] sm:$0xff] }
 0x56f   :  { %3178 = vmatpush.bf16.msrb.mxu2 %v7134_v52  ;;  %3204 = vmatpush.bf16.msra.mxu0 %v7135_v47  ;;  %v7145_v52 = vld [vmem:[#allocation57_spill] sm:$0xff]  ;;  %v7146_v47 = vld [vmem:[#allocation64_spill] sm:$0xff] }
 0x571   :  { %3237 = vmatpush.bf16.msra.mxu3 %v7132_v14  ;;  %3263 = vmatpush.bf16.msrb.mxu1 %v7133_v3  ;;  %v7143_v14 = vld [vmem:[#allocation62_spill] sm:$0xff]  ;;  %v7144_v3 = vld [vmem:[#allocation55_spill] sm:$0xff] }
 0x573   :  { %3223 = vmatpush.bf16.msra.mxu2 %v7136_v34  ;;  %3249 = vmatpush.bf16.msrb.mxu0 %v7137_v15  ;;  %v7147_v34 = vld [vmem:[#allocation66_spill] sm:$0xff]  ;;  %v7148_v15 = vld [vmem:[#allocation59_spill] sm:$0xff] }
 0x575   :  { %3238 = vmatpush.bf16.msra.mxu3 %v7138_v29  ;;  %3264 = vmatpush.bf16.msrb.mxu1 %v7139_v7  ;;  %v7149_v29 = vld [vmem:[#allocation61_spill] sm:$0xff]  ;;  %v7150_v7 = vld [vmem:[#allocation68_spill] sm:$0xff] }
 0x577   :  { %3224 = vmatpush.bf16.msra.mxu2 %v7140_v16  ;;  %3250 = vmatpush.bf16.msrb.mxu0 %v7141_v45  ;;  %v7151_v16 = vld [vmem:[#allocation70_spill] sm:$0xff]  ;;  %v7152_v45 = vld [vmem:[#allocation63_spill] sm:$0xff] }
 0x579   :  { %3239 = vmatpush.bf16.msra.mxu3 %v7142_v35  ;;  %3265 = vmatpush.bf16.msrb.mxu1 %v7143_v14  ;;  %v7153_v35 = vld [vmem:[#allocation65_spill] sm:$0xff]  ;;  %v7154_v14 = vld [vmem:[#allocation72_spill] sm:$0xff] }
 0x57b   :  { %3225 = vmatpush.bf16.msra.mxu2 %v7144_v3  ;;  %3251 = vmatpush.bf16.msrb.mxu0 %v7145_v52  ;;  %v7155_v3 = vld [vmem:[#allocation74_spill] sm:$0xff]  ;;  %v7156_v52 = vld [vmem:[#allocation67_spill] sm:$0xff] }
 0x57d   :  { %3240 = vmatpush.bf16.msra.mxu3 %v7146_v47  ;;  %3266 = vmatpush.bf16.msrb.mxu1 %v7147_v34  ;;  %v7157_v47 = vld [vmem:[#allocation69_spill] sm:$0xff]  ;;  %v7158_v34 = vld [vmem:[#allocation76_spill] sm:$0xff] }
 0x57f   :  { %3226 = vmatpush.bf16.msra.mxu2 %v7148_v15  ;;  %3252 = vmatpush.bf16.msrb.mxu0 %v7149_v29  ;;  %v7159_v15 = vld [vmem:[#allocation81_spill] sm:$0xff]  ;;  %v7160_v29 = vld [vmem:[#allocation71_spill] sm:$0xff] }
 0x581   :  { %3241 = vmatpush.bf16.msra.mxu3 %v7150_v7  ;;  %3267 = vmatpush.bf16.msrb.mxu1 %v7151_v16  ;;  %v7161_v7 = vld [vmem:[#allocation73_spill] sm:$0xff]  ;;  %v7162_v16 = vld [vmem:[#allocation75_spill] sm:$0xff] }
 0x583   :  { %3227 = vmatpush.bf16.msra.mxu2 %v7152_v45  ;;  %3253 = vmatpush.bf16.msrb.mxu0 %v7153_v35  ;;  %v7163_v45 = vld [vmem:[#allocation78_spill] sm:$0xff] }
 0x585   :  { %3242 = vmatpush.bf16.msra.mxu3 %v7154_v14  ;;  %3268 = vmatpush.bf16.msrb.mxu1 %v7155_v3  ;;  %v7164_v3 = vld [vmem:[#allocation108_spill] sm:$0xff] }
 0x587   :  { %3228 = vmatpush.bf16.msra.mxu2 %v7156_v52  ;;  %3254 = vmatpush.bf16.msrb.mxu0 %v7157_v47 }
 0x589   :  { %3243 = vmatpush.bf16.msra.mxu3 %v7158_v34  ;;  %3269 = vmatpush.bf16.msrb.mxu1 %v7159_v15  ;;  %v7165_v34 = vld [vmem:[#allocation104_spill] sm:$0xff]  ;;  %v7166_v15 = vld [vmem:[#allocation109_spill] sm:$0xff] }
 0x58b   :  { %3229 = vmatpush.bf16.msra.mxu2 %v7160_v29  ;;  %3255 = vmatpush.bf16.msrb.mxu0 %v7161_v7 }
 0x58f   :  { %3230 = vmatpush.bf16.msra.mxu2 %v7162_v16  ;;  %3256 = vmatpush.bf16.msrb.mxu0 %v7163_v45 }
 0x5a9   :  { %v2933_v35 = vpop.f32.mrf.mxu1 }
 0x5af   :  { %v2907_v14 = vpop.f32.mrf.mxu3  ;;  %v2920_v40 = vpop.f32.mrf.mxu0 }
 0x5b0   :  { %v2921_v32 = vadd.f32 %v2920_v40, %v7164_v3 }
 0x5b1   :  { %v2935_v52 = vpop.f32.mrf.mxu1 }
 0x5b2   :  { %v2934_v53 = vadd.f32 %v2933_v35, %v2921_v32 }
 0x5b4   :  { %v3046_v47 = vrot.slane %v2934_v53, 3  ;;  %v7168_v53 = vld [vmem:[#allocation110_spill] sm:$0xff] }
 0x5b5   :  { %v2894_v44 = vpop.f32.mrf.mxu2 }
 0x5b6   :  { %v3054_v28 = vadd.f32 %v3046_v47, %v7165_v34  ;;  %v2895_v17 = vadd.f32 %v2894_v44, %v7166_v15 }
 0x5b7   :  { %v2909_v29 = vpop.f32.mrf.mxu3  ;;  %v2922_v56 = vpop.f32.mrf.mxu0 }
 0x5b8   :  { %v4577_v7 = vmul.f32 -1.442695, %v3054_v28  ;;  %v2908_v4 = vadd.f32 %v2907_v14, %v2895_v17  ;;  %v7169_v29 = vld [vmem:[#allocation106_spill] sm:$0xff] }
 0x5b9   :  { %v2985_v16 = vpop.f32.mrf.mxu1 }
 0x5ba   :  { %4896 = vpow2.f32 %v4577_v7  ;;  %v3045_v45 = vrot.slane %v2908_v4, 3  ;;  %v7170_v4 = vld [vmem:[#allocation111_spill] sm:$0xff] }
 0x5bc   :  { %v3053_v0 = vadd.f32 %v3045_v45, %v7167_v23 }
 0x5bd   :  { %v2896_v41 = vpop.f32.mrf.mxu2 }
 0x5be   :  { %v4576_v21 = vmul.f32 -1.442695, %v3053_v0 }
 0x5bf   :  { %v2959_v40 = vpop.f32.mrf.mxu3  ;;  %v2972_v52 = vpop.f32.mrf.mxu0 }
 0x5c0   :  { %v4897_v32 = vpop.eup %4896  ;;  %4898 = vpow2.f32 %v4576_v21  ;;  %v2973_v35 = vadd.f32 %v2972_v52, %v7168_v53 }
 0x5c1   :  { %v3070_v47 = vadd.f32 1.0, %v4897_v32  ;;  %v2987_v34 = vpop.f32.mrf.mxu1 }
 0x5c2   :  { %v2986_v44 = vadd.f32 %v2985_v16, %v2973_v35  ;;  %v7171_v16 = vld [vmem:[#allocation107_spill] sm:$0xff] }
 0x5c3   :  { %4900 = vrcp.f32 %v3070_v47  ;;  %vm3093_vm7 = vweird.f32 %v3070_v47 }
 0x5c4   :  { %v3048_v56 = vrot.slane %v2986_v44, 3 }
 0x5c5   :  { %v2946_v28 = vpop.f32.mrf.mxu2 }
 0x5c6   :  { %v4899_v17 = vpop.eup %4898  ;;  %v3056_v7 = vadd.f32 %v3048_v56, %v7169_v29  ;;  %v2947_v14 = vadd.f32 %v2946_v28, %v7170_v4 }
 0x5c7   :  { %v3069_v45 = vadd.f32 1.0, %v4899_v17  ;;  %v2961_v41 = vpop.f32.mrf.mxu3  ;;  %v2974_v0 = vpop.f32.mrf.mxu0  ;;  %v3099_v17 = vand.u32 2147483648, %v3070_v47 }
 0x5c8   :  { %v4579_v23 = vmul.f32 -1.442695, %v3056_v7  ;;  %v2960_v15 = vadd.f32 %v2959_v40, %v2947_v14  ;;  %v7172_v40 = vld [vmem:[#allocation112_spill] sm:$0xff] }
 0x5c9   :  { %v4901_v3 = vpop.eup %4900  ;;  %4902 = vrcp.f32 %v3069_v45  ;;  %v3037_v21 = vpop.f32.mrf.mxu1  ;;  %vm3078_vm11 = vweird.f32 %v3069_v45 }
 0x5ca   :  { %4904 = vpow2.f32 %v4579_v23  ;;  %v3047_v52 = vrot.slane %v2960_v15, 3  ;;  %v3089_v34 = vmul.f32 %v4901_v3, %v3070_v47  ;;  %vm3094_vm6 = vweird.f32 %v4901_v3 }
 0x5cb   :  { %v3097_v15 = vand.u32 2147483647, %v3070_v47  ;;  %vm3095_vm8 = vmor %vm3093_vm7, %vm3094_vm6  ;;  %vm3739_vm6 = vcmask 1044480  }
 0x5cc   :  { %v3055_v32 = vadd.f32 %v3047_v52, %v7171_v16  ;;  %v3090_v35 = vsub.f32 1.0, %v3089_v34 }
 0x5cd   :  { %v2948_v44 = vpop.f32.mrf.mxu2  ;;  %vm3098_vm9 = vcmp.eq.f32.partialorder %v3097_v15, 8.507059e+37 }
 0x5ce   :  { %v4578_v53 = vmul.f32 -1.442695, %v3055_v32  ;;  %v3091_v26 = vmul.f32 %v4901_v3, %v3090_v35  ;;  %v3100_v35 = vor.u32 1.1754944e-38, %v3099_v17 }
 0x5cf   :  { %v4903_v56 = vpop.eup %4902  ;;  %v3011_v29 = vpop.f32.mrf.mxu3 }
 0x5d0   :  { %v3024_v28 = vpop.f32.mrf.mxu0  ;;  %v4905_v41 = vpop.eup %4904  ;;  %4906 = vpow2.f32 %v4578_v53  ;;  %v3092_v14 = vadd.f32 %v4901_v3, %v3091_v26  ;;  %v3074_v0 = vmul.f32 %v4903_v56, %v3069_v45  ;;  %vm3079_vm10 = vweird.f32 %v4903_v56 }
 0x5d1   :  { %v3025_v7 = vadd.f32 %v3024_v28, %v7172_v40  ;;  %v3072_v23 = vadd.f32 1.0, %v4905_v41  ;;  %v3039_v4 = vpop.f32.mrf.mxu1  ;;  %v3084_v41 = vand.u32 2147483648, %v3069_v45  ;;  %vm3080_vm12 = vmor %vm3078_vm11, %vm3079_vm10 }
 0x5d2   :  { %v3075_v34 = vsub.f32 1.0, %v3074_v0  ;;  %v3096_v32 = vsel %vm3095_vm8, %v4901_v3, %v3092_v14  ;;  %v3082_v4 = vand.u32 2147483647, %v3069_v45 }
 0x5d3   :  { %v3038_v52 = vadd.f32 %v3037_v21, %v3025_v7  ;;  %4908 = vrcp.f32 %v3072_v23  ;;  %v3101_v2 = vsel %vm3098_vm9, %v3100_v35, %v3096_v32  ;;  %v3085_v15 = vor.u32 1.1754944e-38, %v3084_v41 }
 0x5d4   :  { %v3076_v16 = vmul.f32 %v4903_v56, %v3075_v34  ;;  %vm3083_vm13 = vcmp.eq.f32.partialorder %v3082_v4, 8.507059e+37  ;;  %v3129_v32 = vand.u32 2147483648, %v3072_v23  ;;  %v3127_v45 = vand.u32 2147483647, %v3072_v23 }
 0x5d5   :  { %v3136_v44 = vrot.slane %v3038_v52, 3  ;;  %v2998_v1 = vpop.f32.mrf.mxu2  ;;  %vm3123_vm15 = vweird.f32 %v3072_v23 }
 0x5d6   :  { %v4907_v53 = vpop.eup %4906  ;;  %v2999_v26 = vadd.f32 %v2998_v1, %v5624_v12  ;;  %v3077_v28 = vadd.f32 %v4903_v56, %v3076_v16  ;;  %vm3128_vm1 = vcmp.eq.f32.partialorder %v3127_v45, 8.507059e+37 }
 0x5d7   :  { %v3071_v40 = vadd.f32 1.0, %v4907_v53  ;;  %v3140_v47 = vmul.f32 %v3136_v44, %v3101_v2  ;;  %v3013_v21 = vpop.f32.mrf.mxu3 }
 0x5d8   :  { %v3026_v7 = vpop.f32.mrf.mxu0  ;;  %v3012_v0 = vadd.f32 %v3011_v29, %v2999_v26  ;;  %v3081_v17 = vsel %vm3080_vm12, %v4903_v56, %v3077_v28  ;;  %v3130_v56 = vor.u32 1.1754944e-38, %v3129_v32 }
 0x5d9   :  { %v4909_v3 = vpop.eup %4908  ;;  %4910 = vrcp.f32 %v3071_v40  ;;  %v3142_v52 = vadd.f32 %v3140_v47, %v5544_v33  ;;  %v3086_v16 = vsel %vm3083_vm13, %v3085_v15, %v3081_v17  ;;  %v3114_v4 = vand.u32 2147483648, %v3071_v40 }
 0x5da   :  { %v3119_v14 = vmul.f32 %v4909_v3, %v3072_v23  ;;  %v3135_v34 = vrot.slane %v3012_v0, 3  ;;  %vm3124_vm14 = vweird.f32 %v4909_v3  ;;  %v3152_v7 = vrot.slane %v6152_v8, 7 }
 0x5db   :  { %4912 = vtanh.f32 %v3142_v52  ;;  %vm3125_vm0 = vmor %vm3123_vm15, %vm3124_vm14  ;;  %vm3108_vm3 = vweird.f32 %v3071_v40  ;;  %v3151_v8 = vrot.slane %v6162_v36, 7 }
 0x5dc   :  { %v3120_v1 = vsub.f32 1.0, %v3119_v14  ;;  %v3139_v35 = vmul.f32 %v3135_v34, %v3086_v16  ;;  %v3112_v14 = vand.u32 2147483647, %v3071_v40 }
 0x5dd   :  { %v3000_v2 = vpop.f32.mrf.mxu2 }
 0x5de   :  { %v3121_v44 = vmul.f32 %v4909_v3, %v3120_v1  ;;  %v3141_v28 = vadd.f32 %v3139_v35, %v5551_v10  ;;  %v3115_v1 = vor.u32 1.1754944e-38, %v3114_v4  ;;  %vm3113_vm5 = vcmp.eq.f32.partialorder %v3112_v14, 8.507059e+37  ;;  %v7175_v4 = vld [vmem:[#allocation20_spill] sm:$0xff]  ;;  %v7182_v14 = vld [vmem:[#allocation17_spill] sm:$0xff] }
 0x5df   :  { %v4911_v53 = vpop.eup %4910 }
 0x5e0   :  { %v3104_v29 = vmul.f32 %v4911_v53, %v3071_v40  ;;  %v3122_v26 = vadd.f32 %v4909_v3, %v3121_v44  ;;  %vm3109_vm2 = vweird.f32 %v4911_v53  ;;  %4914 = vtanh.f32 %v3141_v28 }
 0x5e1   :  { %v4913_v15 = vpop.eup %4912  ;;  %vm3110_vm4 = vmor %vm3108_vm3, %vm3109_vm2 }
 0x5e2   :  { %v3105_v41 = vsub.f32 1.0, %v3104_v29  ;;  %v3126_v47 = vsel %vm3125_vm0, %v4909_v3, %v3122_v26 }
 0x5e3   :  { %v3131_v21 = vsel %vm3128_vm1, %v3130_v56, %v3126_v47  ;;  %v7174_v47 = vld [vmem:[#allocation18_spill] sm:$0xff] }
 0x5e4   :  { %v3106_v0 = vmul.f32 %v4911_v53, %v3105_v41  ;;  %v3146_v17 = vsub.f32 1.0, %v3131_v21  ;;  %v3156_v52 = vmul.f32 %v3152_v7, %v3131_v21  ;;  %v7176_v21 = vld [vmem:[#allocation102_spill] sm:$0xff]  ;;  %v7177_v7 = vld [vmem:[#allocation103_spill] sm:$0xff] }
 0x5e6   :  { %v3148_v23 = vmul.f32 %v4913_v15, %v3146_v17  ;;  %v3107_v34 = vadd.f32 %v4911_v53, %v3106_v0  ;;  %v4915_v44 = vpop.eup %4914  ;;  %v7178_v0 = vld [vmem:[#allocation15_spill] sm:$0xff]  ;;  %v7179_v17 = vld [vmem:[#allocation16_spill] sm:$0xff] }
 0x5e7   :  { %v7183_v15 = vld [vmem:[#allocation19_spill] sm:$0xff] }
 0x5e8   :  { %v6280_v16 = vadd.f32 %v3156_v52, %v3148_v23  ;;  %v3111_v3 = vsel %vm3110_vm4, %v4911_v53, %v3107_v34  ;;  %v7184_v23 = vld [vmem:[#allocation26_spill] sm:$0xff]  ;;  %v7185_v52 = vld [vmem:[#allocation28_spill] sm:$0xff]  ;;  %v7186_v34 = vld [vmem:[#allocation21_spill] sm:$0xff] }
 0x5e9   :  { %v3116_v32 = vsel %vm3113_vm5, %v3115_v1, %v3111_v3  ;;  %v7187_v1 = vld [vmem:[#allocation23_spill] sm:$0xff]  ;;  %v7188_v3 = vld [vmem:[#allocation30_spill] sm:$0xff] }
 0x5ea   :  { %v3145_v35 = vsub.f32 1.0, %v3116_v32  ;;  %v3160_v2 = vpack.c.bf16 %v6280_v16, %v6280_v16  ;;  %v6287_v40 = vsel %vm3739_vm6, %v6160_v57, %v6280_v16  ;;  %v3155_v29 = vmul.f32 %v3151_v8, %v3116_v32  ;;  %v7189_v32 = vld [vmem:[#allocation32_spill] sm:$0xff]  ;;  %v7191_v8 = vld [vmem:[#allocation27_spill] sm:$0xff] }
 0x5ec   :  { %v3147_v45 = vmul.f32 %v4915_v44, %v3145_v35  ;;  %v3166_v26 = vshrl.u32 %v3160_v2, 16  ;;  %v7190_v35 = vld [vmem:[#allocation25_spill] sm:$0xff]  ;;  %v7192_v2 = vld [vmem:[#allocation34_spill] sm:$0xff]  ;;  %v7193_v44 = vld [vmem:[#allocation36_spill] sm:$0xff] }
 0x5ee   :  { %v6289_v56 = vadd.f32 %v3155_v29, %v3147_v45  ;;  %v3168_v53 = vrot.slane %v3166_v26, 2  ;;  %v7194_v45 = vld [vmem:[#allocation29_spill] sm:$0xff]  ;;  %v7195_v29 = vld [vmem:[#allocation31_spill] sm:$0xff]  ;;  %v7196_v26 = vld [vmem:[#allocation38_spill] sm:$0xff] }
 0x5f0   :  { %3192 = vmatmul.bf16.vlgmr.msrb.gmra.mxu3 %v3168_v53  ;;  %3218 = vmatmul.bf16.vlgmr.msra.gmra.mxu1 %v3168_v53  ;;  %v3159_v28 = vpack.c.bf16 %v6289_v56, %v6289_v56  ;;  %v6295_v36 = vsel %vm3739_vm6, %v6171_v20, %v6289_v56  ;;  %v7173_v20 = vld [vmem:[#allocation101_spill] sm:$0xff] }
 0x5f1   :  { %3288 = vmatpush.bf16.msrb.mxu3 %v6809_v24  ;;  %3314 = vmatpush.bf16.msra.mxu1 %v6810_v60 }
 0x5f2   :  { %v3162_v57 = vshrl.u32 %v3159_v28, 16  ;;  %v7198_v28 = vld [vmem:[#allocation33_spill] sm:$0xff] }
 0x5f4   :  { %v3164_v41 = vrot.slane %v3162_v57, 2  ;;  %v7199_v57 = vld [vmem:[#allocation35_spill] sm:$0xff] }
 0x5f5   :  { %3289 = vmatpush.bf16.msrb.mxu3 %v6811_v42  ;;  %3315 = vmatpush.bf16.msra.mxu1 %v6812_v11 }
 0x5f6   :  { %3179 = vmatmul.bf16.vlgmr.msrb.gmra.mxu2 %v3164_v41  ;;  %3205 = vmatmul.bf16.vlgmr.msra.gmra.mxu0 %v3164_v41 }
 0x5f7   :  { %3275 = vmatpush.bf16.msrb.mxu2 %v6813_v6  ;;  %3301 = vmatpush.bf16.msra.mxu0 %v6814_v50 }
 0x5f9   :  { %3290 = vmatpush.bf16.msrb.mxu3 %v6815_v48  ;;  %3316 = vmatpush.bf16.msra.mxu1 %v6816_v54 }
 0x5fb   :  { %3276 = vmatpush.bf16.msrb.mxu2 %v6817_v43  ;;  %3302 = vmatpush.bf16.msra.mxu0 %v6818_v62 }
 0x5fd   :  { %3291 = vmatpush.bf16.msrb.mxu3 %v6819_v59  ;;  %3317 = vmatpush.bf16.msra.mxu1 %v6820_v19 }
 0x5ff   :  { %3277 = vmatpush.bf16.msrb.mxu2 %v6821_v58  ;;  %3303 = vmatpush.bf16.msra.mxu0 %v6822_v37 }
 0x600   :  { %3244 = vmatmul.bf16.vlgmr.msra.gmra.mxu3 %v3168_v53  ;;  %3270 = vmatmul.bf16.vlgmr.msrb.gmra.mxu1 %v3168_v53 }
 0x601   :  { %3292 = vmatpush.bf16.msrb.mxu3 %v6823_v51  ;;  %3318 = vmatpush.bf16.msra.mxu1 %v6824_v61 }
 0x603   :  { %3278 = vmatpush.bf16.msrb.mxu2 %v6825_v22  ;;  %3304 = vmatpush.bf16.msra.mxu0 %v6826_v63 }
 0x605   :  { %3293 = vmatpush.bf16.msrb.mxu3 %v6827_v46  ;;  %3319 = vmatpush.bf16.msra.mxu1 %v5446_v18 }
 0x606   :  { %3231 = vmatmul.bf16.vlgmr.msra.gmra.mxu2 %v3164_v41  ;;  %3257 = vmatmul.bf16.vlgmr.msrb.gmra.mxu0 %v3164_v41 }
 0x607   :  { %3279 = vmatpush.bf16.msrb.mxu2 %v6828_v27  ;;  %3305 = vmatpush.bf16.msra.mxu0 %v6829_v38 }
 0x609   :  { %3294 = vmatpush.bf16.msrb.mxu3 %v5453_v39  ;;  %3320 = vmatpush.bf16.msra.mxu1 %v5458_v30 }
 0x60b   :  { %3280 = vmatpush.bf16.msrb.mxu2 %v6830_v25  ;;  %3306 = vmatpush.bf16.msra.mxu0 %v5443_v55 }
 0x60d   :  { %3295 = vmatpush.bf16.msrb.mxu3 %v5465_v31  ;;  %3321 = vmatpush.bf16.msra.mxu1 %v5470_v49 }
 0x60f   :  { %3281 = vmatpush.bf16.msrb.mxu2 %v5449_v13  ;;  %3307 = vmatpush.bf16.msra.mxu0 %v7173_v20 }
 0x610   :  { %3296 = vmatmul.bf16.vlgmr.msrb.gmra.mxu3 %v3168_v53  ;;  %3322 = vmatmul.bf16.vlgmr.msra.gmra.mxu1 %v3168_v53  ;;  %v7197_v53 = vld [vmem:[#allocation40_spill] sm:$0xff] }
 0x611   :  { %3466 = vmatpush.bf16.msra.mxu3 %v5166_v5  ;;  %3492 = vmatpush.bf16.msrb.mxu1 %v5170_v9  ;;  %v7180_v5 = vld [vmem:[#allocation22_spill] sm:$0xff]  ;;  %v7181_v9 = vld [vmem:[#allocation24_spill] sm:$0xff] }
 0x613   :  { %3282 = vmatpush.bf16.msrb.mxu2 %v7176_v21  ;;  %3308 = vmatpush.bf16.msra.mxu0 %v7177_v7 }
 0x615   :  { %3467 = vmatpush.bf16.msra.mxu3 %v7174_v47  ;;  %3493 = vmatpush.bf16.msrb.mxu1 %v7175_v4  ;;  %v7201_v47 = vld [vmem:[#allocation49_spill] sm:$0xff]  ;;  %v7202_v4 = vld [vmem:[#allocation47_spill] sm:$0xff] }
 0x616   :  { %3283 = vmatmul.bf16.vlgmr.msrb.gmra.mxu2 %v3164_v41  ;;  %3309 = vmatmul.bf16.vlgmr.msra.gmra.mxu0 %v3164_v41  ;;  %v7200_v41 = vld [vmem:[#allocation43_spill] sm:$0xff] }
 0x617   :  { %3453 = vmatpush.bf16.msra.mxu2 %v7178_v0  ;;  %3479 = vmatpush.bf16.msrb.mxu0 %v7179_v17  ;;  %v7203_v0 = vld [vmem:[#allocation50_spill] sm:$0xff]  ;;  %v7204_v17 = vld [vmem:[#allocation37_spill] sm:$0xff] }
 0x619   :  { %3468 = vmatpush.bf16.msra.mxu3 %v7180_v5  ;;  %3494 = vmatpush.bf16.msrb.mxu1 %v7181_v9  ;;  %v7205_v5 = vld [vmem:[#allocation39_spill] sm:$0xff]  ;;  %v7206_v9 = vld [vmem:[#allocation52_spill] sm:$0xff] }
 0x61b   :  { %3454 = vmatpush.bf16.msra.mxu2 %v7182_v14  ;;  %3480 = vmatpush.bf16.msrb.mxu0 %v7183_v15  ;;  %v7207_v14 = vld [vmem:[#allocation54_spill] sm:$0xff] }
 0x61c   :  { %v7208_v15 = vld [vmem:[#allocation42_spill] sm:$0xff] }
 0x61d   :  { %3469 = vmatpush.bf16.msra.mxu3 %v7184_v23  ;;  %3495 = vmatpush.bf16.msrb.mxu1 %v7185_v52  ;;  %v7209_v23 = vld [vmem:[#allocation44_spill] sm:$0xff]  ;;  %v7210_v52 = vld [vmem:[#allocation45_spill] sm:$0xff] }
 0x61f   :  { %3455 = vmatpush.bf16.msra.mxu2 %v7186_v34  ;;  %3481 = vmatpush.bf16.msrb.mxu0 %v7187_v1  ;;  %v7211_v34 = vld [vmem:[#allocation48_spill] sm:$0xff] }
 0x620   :  { %v7212_v1 = vld [vmem:[#allocation56_spill] sm:$0xff] }
 0x621   :  { %3470 = vmatpush.bf16.msra.mxu3 %v7188_v3  ;;  %3496 = vmatpush.bf16.msrb.mxu1 %v7189_v32  ;;  %v7213_v3 = vld [vmem:[#allocation58_spill] sm:$0xff]  ;;  %v7214_v32 = vld [vmem:[#allocation51_spill] sm:$0xff] }
 0x623   :  { %3456 = vmatpush.bf16.msra.mxu2 %v7190_v35  ;;  %3482 = vmatpush.bf16.msrb.mxu0 %v7191_v8  ;;  %v7215_v35 = vld [vmem:[#allocation53_spill] sm:$0xff]  ;;  %v7216_v8 = vld [vmem:[#allocation60_spill] sm:$0xff] }
 0x625   :  { %3471 = vmatpush.bf16.msra.mxu3 %v7192_v2  ;;  %3497 = vmatpush.bf16.msrb.mxu1 %v7193_v44  ;;  %v7217_v2 = vld [vmem:[#allocation62_spill] sm:$0xff]  ;;  %v7218_v44 = vld [vmem:[#allocation55_spill] sm:$0xff] }
 0x627   :  { %3457 = vmatpush.bf16.msra.mxu2 %v7194_v45  ;;  %3483 = vmatpush.bf16.msrb.mxu0 %v7195_v29  ;;  %v7219_v45 = vld [vmem:[#allocation57_spill] sm:$0xff]  ;;  %v7220_v29 = vld [vmem:[#allocation64_spill] sm:$0xff] }
 0x629   :  { %3472 = vmatpush.bf16.msra.mxu3 %v7196_v26  ;;  %3498 = vmatpush.bf16.msrb.mxu1 %v7197_v53  ;;  %v7221_v26 = vld [vmem:[#allocation66_spill] sm:$0xff]  ;;  %v7222_v53 = vld [vmem:[#allocation59_spill] sm:$0xff] }
 0x62b   :  { %3458 = vmatpush.bf16.msra.mxu2 %v7198_v28  ;;  %3484 = vmatpush.bf16.msrb.mxu0 %v7199_v57  ;;  %v7223_v28 = vld [vmem:[#allocation61_spill] sm:$0xff]  ;;  %v7224_v57 = vld [vmem:[#allocation68_spill] sm:$0xff] }
 0x62d   :  { %3473 = vmatpush.bf16.msra.mxu3 %v7200_v41  ;;  %3499 = vmatpush.bf16.msrb.mxu1 %v7201_v47  ;;  %v7225_v41 = vld [vmem:[#allocation70_spill] sm:$0xff]  ;;  %v7226_v47 = vld [vmem:[#allocation63_spill] sm:$0xff] }
 0x62f   :  { %3459 = vmatpush.bf16.msra.mxu2 %v7204_v17  ;;  %3485 = vmatpush.bf16.msrb.mxu0 %v7205_v5  ;;  %v7229_v17 = vld [vmem:[#allocation74_spill] sm:$0xff]  ;;  %v7230_v5 = vld [vmem:[#allocation67_spill] sm:$0xff] }
 0x631   :  { %3518 = vmatpush.bf16.msrb.mxu3 %v7202_v4  ;;  %3544 = vmatpush.bf16.msra.mxu1 %v7203_v0  ;;  %v7227_v4 = vld [vmem:[#allocation65_spill] sm:$0xff]  ;;  %v7228_v0 = vld [vmem:[#allocation72_spill] sm:$0xff] }
 0x633   :  { %3460 = vmatpush.bf16.msra.mxu2 %v7208_v15  ;;  %3486 = vmatpush.bf16.msrb.mxu0 %v7209_v23  ;;  %v7233_v15 = vld [vmem:[#allocation81_spill] sm:$0xff]  ;;  %v7234_v23 = vld [vmem:[#allocation71_spill] sm:$0xff] }
 0x635   :  { %3519 = vmatpush.bf16.msrb.mxu3 %v7206_v9  ;;  %3545 = vmatpush.bf16.msra.mxu1 %v7207_v14  ;;  %v7231_v9 = vld [vmem:[#allocation69_spill] sm:$0xff]  ;;  %v7232_v14 = vld [vmem:[#allocation76_spill] sm:$0xff] }
 0x637   :  { %3505 = vmatpush.bf16.msrb.mxu2 %v7210_v52  ;;  %3531 = vmatpush.bf16.msra.mxu0 %v7211_v34  ;;  %v7235_v52 = vld [vmem:[#allocation73_spill] sm:$0xff]  ;;  %v7236_v34 = vld [vmem:[#allocation75_spill] sm:$0xff] }
 0x639   :  { %3520 = vmatpush.bf16.msrb.mxu3 %v7212_v1  ;;  %3546 = vmatpush.bf16.msra.mxu1 %v7213_v3  ;;  %v7237_v1 = vld [vmem:[#allocation78_spill] sm:$0xff] }
 0x63b   :  { %3506 = vmatpush.bf16.msrb.mxu2 %v7214_v32  ;;  %3532 = vmatpush.bf16.msra.mxu0 %v7215_v35 }
 0x63d   :  { %3521 = vmatpush.bf16.msrb.mxu3 %v7216_v8  ;;  %3547 = vmatpush.bf16.msra.mxu1 %v7217_v2  ;;  %v7238_v8 = vld [vmem:[#allocation108_spill] sm:$0xff] }
 0x63f   :  { %3507 = vmatpush.bf16.msrb.mxu2 %v7218_v44  ;;  %3533 = vmatpush.bf16.msra.mxu0 %v7219_v45 }
 0x641   :  { %3522 = vmatpush.bf16.msrb.mxu3 %v7220_v29  ;;  %3548 = vmatpush.bf16.msra.mxu1 %v7221_v26 }
 0x643   :  { %3508 = vmatpush.bf16.msrb.mxu2 %v7222_v53  ;;  %3534 = vmatpush.bf16.msra.mxu0 %v7223_v28  ;;  %v7239_v53 = vld [vmem:[#allocation104_spill] sm:$0xff] }
 0x645   :  { %3523 = vmatpush.bf16.msrb.mxu3 %v7224_v57  ;;  %3549 = vmatpush.bf16.msra.mxu1 %v7225_v41  ;;  %v7240_v57 = vld [vmem:[#allocation109_spill] sm:$0xff] }
 0x647   :  { %3509 = vmatpush.bf16.msrb.mxu2 %v7226_v47  ;;  %3535 = vmatpush.bf16.msra.mxu0 %v7227_v4 }
 0x649   :  { %3524 = vmatpush.bf16.msrb.mxu3 %v7228_v0  ;;  %3550 = vmatpush.bf16.msra.mxu1 %v7229_v17 }
 0x64b   :  { %3510 = vmatpush.bf16.msrb.mxu2 %v7230_v5  ;;  %3536 = vmatpush.bf16.msra.mxu0 %v7231_v9 }
 0x64d   :  { %3525 = vmatpush.bf16.msrb.mxu3 %v7232_v14  ;;  %3551 = vmatpush.bf16.msra.mxu1 %v7233_v15  ;;  %v7241_v14 = vld [vmem:[#allocation105_spill] sm:$0xff] }
 0x64f   :  { %3511 = vmatpush.bf16.msrb.mxu2 %v7234_v23  ;;  %3537 = vmatpush.bf16.msra.mxu0 %v7235_v52 }
 0x653   :  { %3512 = vmatpush.bf16.msrb.mxu2 %v7236_v34  ;;  %3538 = vmatpush.bf16.msra.mxu0 %v7237_v1 }
 0x66d   :  { %v3219_v3 = vpop.f32.mrf.mxu1 }
 0x673   :  { %v3193_v32 = vpop.f32.mrf.mxu3  ;;  %v3206_v35 = vpop.f32.mrf.mxu0 }
 0x674   :  { %v3207_v2 = vadd.f32 %v3206_v35, %v7238_v8  ;;  %v7242_v35 = vld [vmem:[#allocation110_spill] sm:$0xff] }
 0x675   :  { %v3221_v44 = vpop.f32.mrf.mxu1 }
 0x676   :  { %v3220_v45 = vadd.f32 %v3219_v3, %v3207_v2 }
 0x678   :  { %v3332_v29 = vrot.slane %v3220_v45, 2 }
 0x679   :  { %v3180_v26 = vpop.f32.mrf.mxu2 }
 0x67a   :  { %v3340_v28 = vadd.f32 %v3332_v29, %v7239_v53  ;;  %v3181_v41 = vadd.f32 %v3180_v26, %v7240_v57 }
 0x67b   :  { %v3195_v47 = vpop.f32.mrf.mxu3  ;;  %v3208_v4 = vpop.f32.mrf.mxu0 }
 0x67c   :  { %v4581_v0 = vmul.f32 -1.442695, %v3340_v28  ;;  %v3194_v17 = vadd.f32 %v3193_v32, %v3181_v41  ;;  %v7243_v41 = vld [vmem:[#allocation106_spill] sm:$0xff]  ;;  %v7244_v4 = vld [vmem:[#allocation111_spill] sm:$0xff] }
 0x67d   :  { %v3271_v5 = vpop.f32.mrf.mxu1 }
 0x67e   :  { %4916 = vpow2.f32 %v4581_v0  ;;  %v3331_v9 = vrot.slane %v3194_v17, 2 }
 0x680   :  { %v3339_v15 = vadd.f32 %v3331_v9, %v7241_v14 }
 0x681   :  { %v3182_v23 = vpop.f32.mrf.mxu2 }
 0x682   :  { %v4580_v52 = vmul.f32 -1.442695, %v3339_v15 }
 0x683   :  { %v3245_v34 = vpop.f32.mrf.mxu3  ;;  %v3258_v1 = vpop.f32.mrf.mxu0 }
 0x684   :  { %v4917_v3 = vpop.eup %4916  ;;  %4918 = vpow2.f32 %v4580_v52  ;;  %v3259_v2 = vadd.f32 %v3258_v1, %v7242_v35 }
 0x685   :  { %v3356_v44 = vadd.f32 1.0, %v4917_v3  ;;  %v3273_v45 = vpop.f32.mrf.mxu1 }
 0x686   :  { %v3272_v29 = vadd.f32 %v3271_v5, %v3259_v2  ;;  %v7245_v5 = vld [vmem:[#allocation107_spill] sm:$0xff] }
 0x687   :  { %4920 = vrcp.f32 %v3356_v44  ;;  %vm3379_vm8 = vweird.f32 %v3356_v44 }
 0x688   :  { %v3334_v26 = vrot.slane %v3272_v29, 2 }
 0x689   :  { %v3232_v28 = vpop.f32.mrf.mxu2 }
 0x68a   :  { %v4919_v32 = vpop.eup %4918  ;;  %v3342_v47 = vadd.f32 %v3334_v26, %v7243_v41  ;;  %v3233_v0 = vadd.f32 %v3232_v28, %v7244_v4 }
 0x68b   :  { %v3355_v17 = vadd.f32 1.0, %v4919_v32  ;;  %v3247_v9 = vpop.f32.mrf.mxu3  ;;  %v3260_v15 = vpop.f32.mrf.mxu0  ;;  %v3385_v32 = vand.u32 2147483648, %v3356_v44 }
 0x68c   :  { %v4583_v23 = vmul.f32 -1.442695, %v3342_v47  ;;  %v3246_v14 = vadd.f32 %v3245_v34, %v3233_v0  ;;  %v7246_v34 = vld [vmem:[#allocation112_spill] sm:$0xff] }
 0x68d   :  { %v4921_v57 = vpop.eup %4920  ;;  %4922 = vrcp.f32 %v3355_v17  ;;  %v3323_v52 = vpop.f32.mrf.mxu1  ;;  %vm3364_vm12 = vweird.f32 %v3355_v17 }
 0x68e   :  { %4924 = vpow2.f32 %v4583_v23  ;;  %v3333_v1 = vrot.slane %v3246_v14, 2  ;;  %v3375_v3 = vmul.f32 %v4921_v57, %v3356_v44  ;;  %vm3380_vm7 = vweird.f32 %v4921_v57 }
 0x68f   :  { %v3383_v14 = vand.u32 2147483647, %v3356_v44  ;;  %vm3381_vm9 = vmor %vm3379_vm8, %vm3380_vm7  ;;  %vm3742_vm7 = vcmask 1045504  }
 0x690   :  { %v3341_v2 = vadd.f32 %v3333_v1, %v7245_v5  ;;  %v3376_v45 = vsub.f32 1.0, %v3375_v3 }
 0x691   :  { %v3234_v29 = vpop.f32.mrf.mxu2  ;;  %vm3384_vm10 = vcmp.eq.f32.partialorder %v3383_v14, 8.507059e+37 }
 0x692   :  { %v4582_v35 = vmul.f32 -1.442695, %v3341_v2  ;;  %v3377_v53 = vmul.f32 %v4921_v57, %v3376_v45  ;;  %v3386_v45 = vor.u32 1.1754944e-38, %v3385_v32 }
 0x693   :  { %v4923_v26 = vpop.eup %4922  ;;  %v3297_v41 = vpop.f32.mrf.mxu3 }
 0x694   :  { %v3310_v28 = vpop.f32.mrf.mxu0  ;;  %v4925_v9 = vpop.eup %4924  ;;  %4926 = vpow2.f32 %v4582_v35  ;;  %v3378_v0 = vadd.f32 %v4921_v57, %v3377_v53  ;;  %v3360_v15 = vmul.f32 %v4923_v26, %v3355_v17  ;;  %vm3365_vm11 = vweird.f32 %v4923_v26 }
 0x695   :  { %v3311_v47 = vadd.f32 %v3310_v28, %v7246_v34  ;;  %v3358_v23 = vadd.f32 1.0, %v4925_v9  ;;  %v3325_v4 = vpop.f32.mrf.mxu1  ;;  %v3370_v9 = vand.u32 2147483648, %v3355_v17  ;;  %vm3366_vm13 = vmor %vm3364_vm12, %vm3365_vm11 }
 0x696   :  { %v3361_v3 = vsub.f32 1.0, %v3360_v15  ;;  %v3382_v2 = vsel %vm3381_vm9, %v4921_v57, %v3378_v0  ;;  %v3368_v4 = vand.u32 2147483647, %v3355_v17 }
 0x697   :  { %v3324_v1 = vadd.f32 %v3323_v52, %v3311_v47  ;;  %4928 = vrcp.f32 %v3358_v23  ;;  %v3387_v7 = vsel %vm3384_vm10, %v3386_v45, %v3382_v2  ;;  %v3371_v14 = vor.u32 1.1754944e-38, %v3370_v9 }
 0x698   :  { %v3362_v5 = vmul.f32 %v4923_v26, %v3361_v3  ;;  %vm3369_vm14 = vcmp.eq.f32.partialorder %v3368_v4, 8.507059e+37  ;;  %v3415_v2 = vand.u32 2147483648, %v3358_v23  ;;  %v3413_v17 = vand.u32 2147483647, %v3358_v23 }
 0x699   :  { %v3422_v29 = vrot.slane %v3324_v1, 2  ;;  %v3284_v8 = vpop.f32.mrf.mxu2  ;;  %vm3409_vm0 = vweird.f32 %v3358_v23 }
 0x69a   :  { %v4927_v35 = vpop.eup %4926  ;;  %v3285_v53 = vadd.f32 %v3284_v8, %v5624_v12  ;;  %v3363_v28 = vadd.f32 %v4923_v26, %v3362_v5  ;;  %vm3414_vm2 = vcmp.eq.f32.partialorder %v3413_v17, 8.507059e+37 }
 0x69b   :  { %v3357_v34 = vadd.f32 1.0, %v4927_v35  ;;  %v3426_v44 = vmul.f32 %v3422_v29, %v3387_v7  ;;  %v3299_v52 = vpop.f32.mrf.mxu3 }
 0x69c   :  { %v3312_v47 = vpop.f32.mrf.mxu0  ;;  %v3298_v15 = vadd.f32 %v3297_v41, %v3285_v53  ;;  %v3367_v32 = vsel %vm3366_vm13, %v4923_v26, %v3363_v28  ;;  %v3416_v26 = vor.u32 1.1754944e-38, %v3415_v2 }
 0x69d   :  { %v4929_v57 = vpop.eup %4928  ;;  %4930 = vrcp.f32 %v3357_v34  ;;  %v3428_v1 = vadd.f32 %v3426_v44, %v5544_v33  ;;  %v3372_v5 = vsel %vm3369_vm14, %v3371_v14, %v3367_v32  ;;  %v3400_v4 = vand.u32 2147483648, %v3357_v34 }
 0x69e   :  { %v3405_v0 = vmul.f32 %v4929_v57, %v3358_v23  ;;  %v3421_v3 = vrot.slane %v3298_v15, 2  ;;  %vm3410_vm15 = vweird.f32 %v4929_v57  ;;  %v3438_v47 = vrot.slane %v6280_v16, 7 }
 0x69f   :  { %4932 = vtanh.f32 %v3428_v1  ;;  %vm3411_vm1 = vmor %vm3409_vm0, %vm3410_vm15  ;;  %vm3394_vm4 = vweird.f32 %v3357_v34  ;;  %v3437_v16 = vrot.slane %v6289_v56, 7 }
 0x6a0   :  { %v3406_v8 = vsub.f32 1.0, %v3405_v0  ;;  %v3425_v45 = vmul.f32 %v3421_v3, %v3372_v5  ;;  %v3398_v0 = vand.u32 2147483647, %v3357_v34 }
 0x6a1   :  { %v3286_v7 = vpop.f32.mrf.mxu2 }
 0x6a2   :  { %v3407_v29 = vmul.f32 %v4929_v57, %v3406_v8  ;;  %v3427_v28 = vadd.f32 %v3425_v45, %v5551_v10  ;;  %v3401_v8 = vor.u32 1.1754944e-38, %v3400_v4  ;;  %vm3399_vm6 = vcmp.eq.f32.partialorder %v3398_v0, 8.507059e+37  ;;  %v7253_v4 = vld [vmem:[#allocation106_spill] sm:$0xff] }
 0x6a3   :  { %v4931_v35 = vpop.eup %4930 }
 0x6a4   :  { %v3390_v41 = vmul.f32 %v4931_v35, %v3357_v34  ;;  %v3408_v53 = vadd.f32 %v4929_v57, %v3407_v29  ;;  %vm3395_vm3 = vweird.f32 %v4931_v35  ;;  %4934 = vtanh.f32 %v3427_v28 }
 0x6a5   :  { %v4933_v14 = vpop.eup %4932  ;;  %vm3396_vm5 = vmor %vm3394_vm4, %vm3395_vm3 }
 0x6a6   :  { %v3391_v9 = vsub.f32 1.0, %v3390_v41  ;;  %v3412_v44 = vsel %vm3411_vm1, %v4929_v57, %v3408_v53 }
 0x6a7   :  { %v3417_v52 = vsel %vm3414_vm2, %v3416_v26, %v3412_v44 }
 0x6a8   :  { %v3392_v15 = vmul.f32 %v4931_v35, %v3391_v9  ;;  %v3432_v32 = vsub.f32 1.0, %v3417_v52  ;;  %v3442_v1 = vmul.f32 %v3438_v47, %v3417_v52  ;;  %v7254_v47 = vld [vmem:[#allocation111_spill] sm:$0xff] }
 0x6aa   :  { %v3434_v23 = vmul.f32 %v4933_v14, %v3432_v32  ;;  %v3393_v3 = vadd.f32 %v4931_v35, %v3392_v15  ;;  %v4935_v29 = vpop.eup %4934 }
 0x6ac   :  { %v6406_v5 = vadd.f32 %v3442_v1, %v3434_v23  ;;  %v3397_v57 = vsel %vm3396_vm5, %v4931_v35, %v3393_v3 }
 0x6ad   :  { %v3402_v2 = vsel %vm3399_vm6, %v3401_v8, %v3397_v57 }
 0x6ae   :  { %v3431_v45 = vsub.f32 1.0, %v3402_v2  ;;  %v3446_v7 = vpack.c.bf16 %v6406_v5, %v6406_v5  ;;  %v6414_v34 = vsel %vm3742_vm7, %v6287_v40, %v6406_v5  ;;  %v3441_v41 = vmul.f32 %v3437_v16, %v3402_v2 }
 0x6b0   :  { %v3433_v17 = vmul.f32 %v4935_v29, %v3431_v45  ;;  %v3450_v53 = vrot.slane %v3446_v7, 3  ;;  %v7255_v45 = vld [vmem:[#allocation107_spill] sm:$0xff] }
 0x6b2   :  { %v6416_v26 = vadd.f32 %v3441_v41, %v3433_v17  ;;  %3474 = vmatmul.bf16.vlgmr.msra.gmra.mxu3 %v3450_v53  ;;  %3500 = vmatmul.bf16.vlgmr.msrb.gmra.mxu1 %v3450_v53 }
 0x6b3   :  { %3570 = vmatpush.bf16.msra.mxu3 %v6809_v24  ;;  %3596 = vmatpush.bf16.msrb.mxu1 %v6810_v60 }
 0x6b4   :  { %v3445_v56 = vpack.c.bf16 %v6416_v26, %v6416_v26  ;;  %v6425_v35 = vsel %vm3742_vm7, %v6295_v36, %v6416_v26  ;;  %vm3745_vm7 = vcmask 1046528  }
 0x6b6   :  { %v3449_v40 = vrot.slane %v3445_v56, 3 }
 0x6b7   :  { %3571 = vmatpush.bf16.msra.mxu3 %v6811_v42  ;;  %3597 = vmatpush.bf16.msrb.mxu1 %v6812_v11 }
 0x6b8   :  { %3461 = vmatmul.bf16.vlgmr.msra.gmra.mxu2 %v3449_v40  ;;  %3487 = vmatmul.bf16.vlgmr.msrb.gmra.mxu0 %v3449_v40 }
 0x6b9   :  { %3557 = vmatpush.bf16.msra.mxu2 %v6813_v6  ;;  %3583 = vmatpush.bf16.msrb.mxu0 %v6814_v50  ;;  %v7250_v50 = vld [vmem:[#allocation109_spill] sm:$0xff] }
 0x6bb   :  { %3572 = vmatpush.bf16.msra.mxu3 %v6815_v48  ;;  %3598 = vmatpush.bf16.msrb.mxu1 %v6816_v54 }
 0x6bd   :  { %3558 = vmatpush.bf16.msra.mxu2 %v6817_v43  ;;  %3584 = vmatpush.bf16.msrb.mxu0 %v6818_v62 }
 0x6bf   :  { %3573 = vmatpush.bf16.msra.mxu3 %v6819_v59  ;;  %3599 = vmatpush.bf16.msrb.mxu1 %v6820_v19 }
 0x6c1   :  { %3559 = vmatpush.bf16.msra.mxu2 %v6821_v58  ;;  %3585 = vmatpush.bf16.msrb.mxu0 %v6822_v37  ;;  %v7251_v37 = vld [vmem:[#allocation105_spill] sm:$0xff] }
 0x6c2   :  { %3526 = vmatmul.bf16.vlgmr.msrb.gmra.mxu3 %v3450_v53  ;;  %3552 = vmatmul.bf16.vlgmr.msra.gmra.mxu1 %v3450_v53 }
 0x6c3   :  { %3574 = vmatpush.bf16.msra.mxu3 %v6823_v51  ;;  %3600 = vmatpush.bf16.msrb.mxu1 %v6824_v61 }
 0x6c5   :  { %3560 = vmatpush.bf16.msra.mxu2 %v6825_v22  ;;  %3586 = vmatpush.bf16.msrb.mxu0 %v6826_v63 }
 0x6c7   :  { %3575 = vmatpush.bf16.msra.mxu3 %v6827_v46  ;;  %3601 = vmatpush.bf16.msrb.mxu1 %v5446_v18  ;;  %v7247_v18 = vld [vmem:[#allocation103_spill] sm:$0xff] }
 0x6c8   :  { %3513 = vmatmul.bf16.vlgmr.msrb.gmra.mxu2 %v3449_v40  ;;  %3539 = vmatmul.bf16.vlgmr.msra.gmra.mxu0 %v3449_v40 }
 0x6c9   :  { %3561 = vmatpush.bf16.msra.mxu2 %v6828_v27  ;;  %3587 = vmatpush.bf16.msrb.mxu0 %v6829_v38  ;;  %v7252_v38 = vld [vmem:[#allocation110_spill] sm:$0xff] }
 0x6cb   :  { %3576 = vmatpush.bf16.msra.mxu3 %v5453_v39  ;;  %3602 = vmatpush.bf16.msrb.mxu1 %v5458_v30 }
 0x6cd   :  { %3562 = vmatpush.bf16.msra.mxu2 %v6830_v25  ;;  %3588 = vmatpush.bf16.msrb.mxu0 %v5443_v55  ;;  %v7248_v55 = vld [vmem:[#allocation108_spill] sm:$0xff] }
 0x6cf   :  { %3577 = vmatpush.bf16.msra.mxu3 %v5465_v31  ;;  %3603 = vmatpush.bf16.msrb.mxu1 %v5470_v49 }
 0x6d1   :  { %3563 = vmatpush.bf16.msra.mxu2 %v5449_v13  ;;  %3589 = vmatpush.bf16.msrb.mxu0 %v7173_v20  ;;  %v7249_v13 = vld [vmem:[#allocation104_spill] sm:$0xff] }
 0x6d2   :  { %3578 = vmatmul.bf16.vlgmr.msra.gmra.mxu3 %v3450_v53  ;;  %3604 = vmatmul.bf16.vlgmr.msrb.gmra.mxu1 %v3450_v53 }
 0x6d5   :  { %3564 = vmatpush.bf16.msra.mxu2 %v7176_v21  ;;  %3590 = vmatpush.bf16.msrb.mxu0 %v7247_v18 }
 0x6d8   :  { %3565 = vmatmul.bf16.vlgmr.msra.gmra.mxu2 %v3449_v40  ;;  %3591 = vmatmul.bf16.vlgmr.msrb.gmra.mxu0 %v3449_v40 }
 0x72f   :  { %v3501_v39 = vpop.f32.mrf.mxu1 }
 0x735   :  { %v3475_v30 = vpop.f32.mrf.mxu3  ;;  %v3488_v24 = vpop.f32.mrf.mxu0 }
 0x736   :  { %v3489_v60 = vadd.f32 %v3488_v24, %v7248_v55 }
 0x737   :  { %v3503_v31 = vpop.f32.mrf.mxu1 }
 0x738   :  { %v3502_v42 = vadd.f32 %v3501_v39, %v3489_v60 }
 0x73a   :  { %v3614_v49 = vrot.slane %v3502_v42, 1 }
 0x73b   :  { %v3462_v11 = vpop.f32.mrf.mxu2 }
 0x73c   :  { %v3622_v6 = vadd.f32 %v3614_v49, %v7249_v13  ;;  %v3463_v48 = vadd.f32 %v3462_v11, %v7250_v50 }
 0x73d   :  { %v3477_v54 = vpop.f32.mrf.mxu3  ;;  %v3490_v43 = vpop.f32.mrf.mxu0 }
 0x73e   :  { %v4585_v62 = vmul.f32 -1.442695, %v3622_v6  ;;  %v3476_v59 = vadd.f32 %v3475_v30, %v3463_v48  ;;  %v7256_v30 = vld [vmem:[#allocation112_spill] sm:$0xff] }
 0x73f   :  { %v3553_v19 = vpop.f32.mrf.mxu1 }
 0x740   :  { %4936 = vpow2.f32 %v4585_v62  ;;  %v3613_v58 = vrot.slane %v3476_v59, 1 }
 0x742   :  { %v3621_v51 = vadd.f32 %v3613_v58, %v7251_v37 }
 0x743   :  { %v3464_v61 = vpop.f32.mrf.mxu2 }
 0x744   :  { %v4584_v22 = vmul.f32 -1.442695, %v3621_v51 }
 0x745   :  { %v3527_v63 = vpop.f32.mrf.mxu3  ;;  %v3540_v46 = vpop.f32.mrf.mxu0 }
 0x746   :  { %v4937_v27 = vpop.eup %4936  ;;  %4938 = vpow2.f32 %v4584_v22  ;;  %v3541_v25 = vadd.f32 %v3540_v46, %v7252_v38 }
 0x747   :  { %v3638_v36 = vadd.f32 1.0, %v4937_v27  ;;  %v3555_v20 = vpop.f32.mrf.mxu1 }
 0x748   :  { %v3554_v21 = vadd.f32 %v3553_v19, %v3541_v25 }
 0x749   :  { %4940 = vrcp.f32 %v3638_v36  ;;  %v3667_v18 = vand.u32 2147483648, %v3638_v36  ;;  %vm3661_vm9 = vweird.f32 %v3638_v36  ;;  %v3665_v42 = vand.u32 2147483647, %v3638_v36 }
 0x74a   :  { %v3616_v28 = vrot.slane %v3554_v21, 1 }
 0x74b   :  { %v3514_v9 = vpop.f32.mrf.mxu2  ;;  %v3668_v50 = vor.u32 1.1754944e-38, %v3667_v18  ;;  %vm3666_vm11 = vcmp.eq.f32.partialorder %v3665_v42, 8.507059e+37 }
 0x74c   :  { %v4939_v44 = vpop.eup %4938  ;;  %v3624_v52 = vadd.f32 %v3616_v28, %v7253_v4  ;;  %v3515_v15 = vadd.f32 %v3514_v9, %v7254_v47 }
 0x74d   :  { %v3637_v32 = vadd.f32 1.0, %v4939_v44  ;;  %v3529_v0 = vpop.f32.mrf.mxu3  ;;  %v3542_v14 = vpop.f32.mrf.mxu0 }
 0x74e   :  { %v4587_v23 = vmul.f32 -1.442695, %v3624_v52  ;;  %v3528_v1 = vadd.f32 %v3527_v63, %v3515_v15 }
 0x74f   :  { %v4941_v3 = vpop.eup %4940  ;;  %4942 = vrcp.f32 %v3637_v32  ;;  %v3605_v8 = vpop.f32.mrf.mxu1  ;;  %v3652_v37 = vand.u32 2147483648, %v3637_v32  ;;  %vm3646_vm13 = vweird.f32 %v3637_v32  ;;  %v3650_v22 = vand.u32 2147483647, %v3637_v32 }
 0x750   :  { %4944 = vpow2.f32 %v4587_v23  ;;  %v3615_v57 = vrot.slane %v3528_v1, 1  ;;  %v3657_v2 = vmul.f32 %v4941_v3, %v3638_v36  ;;  %vm3662_vm8 = vweird.f32 %v4941_v3 }
 0x751   :  { %vm3663_vm10 = vmor %vm3661_vm9, %vm3662_vm8  ;;  %v3653_v20 = vor.u32 1.1754944e-38, %v3652_v37  ;;  %vm3651_vm15 = vcmp.eq.f32.partialorder %v3650_v22, 8.507059e+37 }
 0x752   :  { %v3623_v16 = vadd.f32 %v3615_v57, %v7255_v45  ;;  %v3658_v7 = vsub.f32 1.0, %v3657_v2  ;;  %v3720_v2 = vrot.slane %v6406_v5, 7  ;;  %v3719_v5 = vrot.slane %v6416_v26, 7 }
 0x753   :  { %v3516_v29 = vpop.f32.mrf.mxu2 }
 0x754   :  { %v4586_v17 = vmul.f32 -1.442695, %v3623_v16  ;;  %v3659_v41 = vmul.f32 %v4941_v3, %v3658_v7 }
 0x755   :  { %v4943_v53 = vpop.eup %4942  ;;  %v3579_v56 = vpop.f32.mrf.mxu3 }
 0x756   :  { %v3592_v40 = vpop.f32.mrf.mxu0  ;;  %v4945_v39 = vpop.eup %4944  ;;  %4946 = vpow2.f32 %v4586_v17  ;;  %v3660_v55 = vadd.f32 %v4941_v3, %v3659_v41  ;;  %v3642_v60 = vmul.f32 %v4943_v53, %v3637_v32  ;;  %vm3647_vm12 = vweird.f32 %v4943_v53 }
 0x757   :  { %v3593_v24 = vadd.f32 %v3592_v40, %v7256_v30  ;;  %v3640_v31 = vadd.f32 1.0, %v4945_v39  ;;  %v3607_v49 = vpop.f32.mrf.mxu1  ;;  %vm3648_vm14 = vmor %vm3646_vm13, %vm3647_vm12 }
 0x758   :  { %v3643_v13 = vsub.f32 1.0, %v3642_v60  ;;  %v3664_v6 = vsel %vm3663_vm10, %v4941_v3, %v3660_v55 }
 0x759   :  { %v3606_v11 = vadd.f32 %v3605_v8, %v3593_v24  ;;  %4948 = vrcp.f32 %v3640_v31  ;;  %v3669_v59 = vsel %vm3666_vm11, %v3668_v50, %v3664_v6  ;;  %v3697_v52 = vand.u32 2147483648, %v3640_v31 }
 0x75a   :  { %v3644_v54 = vmul.f32 %v4943_v53, %v3643_v13  ;;  %v3695_v15 = vand.u32 2147483647, %v3640_v31  ;;  %vm3691_vm1 = vweird.f32 %v3640_v31 }
 0x75b   :  { %v3704_v48 = vrot.slane %v3606_v11, 1  ;;  %v3566_v43 = vpop.f32.mrf.mxu2  ;;  %v3698_v1 = vor.u32 1.1754944e-38, %v3697_v52 }
 0x75c   :  { %v4947_v62 = vpop.eup %4946  ;;  %v3567_v19 = vadd.f32 %v3566_v43, %v5624_v12  ;;  %v3645_v58 = vadd.f32 %v4943_v53, %v3644_v54  ;;  %vm3696_vm3 = vcmp.eq.f32.partialorder %v3695_v15, 8.507059e+37 }
 0x75d   :  { %v3639_v51 = vadd.f32 1.0, %v4947_v62  ;;  %v3708_v61 = vmul.f32 %v3704_v48, %v3669_v59  ;;  %v3581_v63 = vpop.f32.mrf.mxu3 }
 0x75e   :  { %v3594_v46 = vpop.f32.mrf.mxu0  ;;  %v3580_v27 = vadd.f32 %v3579_v56, %v3567_v19  ;;  %v3649_v25 = vsel %vm3648_vm14, %v4943_v53, %v3645_v58 }
 0x75f   :  { %v4949_v38 = vpop.eup %4948  ;;  %4950 = vrcp.f32 %v3639_v51  ;;  %v3710_v28 = vadd.f32 %v3708_v61, %v5544_v33  ;;  %v3654_v9 = vsel %vm3651_vm15, %v3653_v20, %v3649_v25  ;;  %v3682_v8 = vand.u32 2147483648, %v3639_v51 }
 0x760   :  { %v3687_v36 = vmul.f32 %v4949_v38, %v3640_v31  ;;  %v3703_v21 = vrot.slane %v3580_v27, 1  ;;  %vm3692_vm0 = vweird.f32 %v4949_v38  ;;  %v3680_v16 = vand.u32 2147483647, %v3639_v51 }
 0x761   :  { %4952 = vtanh.f32 %v3710_v28  ;;  %vm3693_vm2 = vmor %vm3691_vm1, %vm3692_vm0  ;;  %vm3676_vm5 = vweird.f32 %v3639_v51 }
 0x762   :  { %v3688_v12 = vsub.f32 1.0, %v3687_v36  ;;  %v3707_v44 = vmul.f32 %v3703_v21, %v3654_v9  ;;  %vm3681_vm8 = vcmp.eq.f32.partialorder %v3680_v16, 8.507059e+37 }
 0x763   :  { %v3568_v4 = vpop.f32.mrf.mxu2 }
 0x764   :  { %v3689_v47 = vmul.f32 %v4949_v38, %v3688_v12  ;;  %v3709_v23 = vadd.f32 %v3707_v44, %v5551_v10  ;;  %v3683_v10 = vor.u32 1.1754944e-38, %v3682_v8 }
 0x765   :  { %v4951_v32 = vpop.eup %4950 }
 0x766   :  { %v3672_v0 = vmul.f32 %v4951_v32, %v3639_v51  ;;  %v3690_v14 = vadd.f32 %v4949_v38, %v3689_v47  ;;  %vm3677_vm4 = vweird.f32 %v4951_v32  ;;  %4954 = vtanh.f32 %v3709_v23 }
 0x767   :  { %v4953_v29 = vpop.eup %4952  ;;  %vm3678_vm6 = vmor %vm3676_vm5, %vm3677_vm4 }
 0x768   :  { %v3673_v3 = vsub.f32 1.0, %v3672_v0  ;;  %v3694_v33 = vsel %vm3693_vm2, %v4949_v38, %v3690_v14 }
 0x769   :  { %v3699_v57 = vsel %vm3696_vm3, %v3698_v1, %v3694_v33 }
 0x76a   :  { %v3674_v45 = vmul.f32 %v4951_v32, %v3673_v3  ;;  %v3714_v7 = vsub.f32 1.0, %v3699_v57  ;;  %v3724_v53 = vmul.f32 %v3720_v2, %v3699_v57 }
 0x76c   :  { %v3675_v17 = vadd.f32 %v4951_v32, %v3674_v45  ;;  %v3716_v41 = vmul.f32 %v4953_v29, %v3714_v7  ;;  %v4955_v24 = vpop.eup %4954 }
 0x76e   :  { %v3679_v56 = vsel %vm3678_vm6, %v4951_v32, %v3675_v17  ;;  %v3726_v40 = vadd.f32 %v3724_v53, %v3716_v41 }
 0x76f   :  { %v3684_v18 = vsel %vm3681_vm8, %v3683_v10, %v3679_v56 }
 0x770   :  { %v3713_v39 = vsub.f32 1.0, %v3684_v18  ;;  %v3747_v30 = vsel %vm3745_vm7, %v6414_v34, %v3726_v40  ;;  %v3723_v60 = vmul.f32 %v3719_v5, %v3684_v18 }
 0x771   :  { %3749 = vst [vmem:[#allocation10 + $0x8] sm:$0xff] %v3747_v30 }
 0x772   :  { %v3715_v55 = vmul.f32 %v4955_v24, %v3713_v39 }
 0x774   :  { %v3725_v31 = vadd.f32 %v3723_v60, %v3715_v55 }
 0x776   :  { %v3746_v42 = vsel %vm3745_vm7, %v6425_v35, %v3725_v31 }
 0x777   :  { %3748 = vst [vmem:[#allocation10] sm:$0xff] %v3746_v42 }
 0x778   :  { %3760 = dma.vmem_to_hbm [thread:$0]  %s3756_s25, 256, %s3758_s28, [#allocation4]  }
 0x779   :  { %5082 = dma.done.wait [#allocation4], 256  }
 0x77a   :  { %5083 = vsyncadd [#allocation4], 4294967040 }
 0x77b   :  { %3765 = vsyncpa [#allocation3], 1 }
 0x77c   :  { %3766 = vsyncpa [#allocation6], 1 }
 0x77d   :  { %3767 = vsyncpa [#allocation9], 1 }
 0x77e   :  { %3768 = vsyncpa [#allocation4], 1 }

</bundles_post_ra>
